<compile_context>
chip_gen: v7x
topology: tpu7x:2x2x1
jax: 0.10.0
libtpu: 0.0.40
codegen_flags: <defaults>
</compile_context>

<pallas_src>
import jax
import jax.numpy as jnp
from jax.experimental import pallas as pl
from jax.experimental.pallas import tpu as pltpu

# ---- scaled-down config (codebert-base values in comments) -----------------
SEQ_LEN = 8         # 50
BATCH = 2           # 8
TOKEN_NUM = 8       # 25
HIDDEN = 128        # 768   (multiple of 128 -> lane-dense)
NUM_LAYERS = 2      # 12
NUM_HEADS = 4       # 12
HEAD_DIM = HIDDEN // NUM_HEADS
INTERMEDIATE = 256  # 3072
VOCAB = 512         # 50265
MAX_POS = 64        # 514
PAD_IDX = 1         # roberta padding_idx
LN_EPS = 1e-5
TILE_V = 128        # vocab tile for the tied decoder

_VMEM = pl.BlockSpec(memory_space=pltpu.MemorySpace.VMEM)
_SMEM = pl.BlockSpec(memory_space=pltpu.MemorySpace.SMEM)


def _layernorm(v, g, b):
    mu = jnp.mean(v, axis=-1, keepdims=True)
    var = jnp.mean(jnp.square(v - mu), axis=-1, keepdims=True)
    return (v - mu) * jax.lax.rsqrt(var + LN_EPS) * g + b


# ---------------------------- Pallas kernels --------------------------------
def _emb_tokendense_kernel(dw_ref, db_ref, we_ref, pe_ref, te_ref,
                           g_ref, b_ref, o_ref):
    """Fused roberta embedding LN + dense(token_num -> 1) contraction.

    we: (R, T, H) bf16 gathered word embeddings, pe: (R, T, H) f32 position
    embeddings, te: (1, H) token-type embedding.  Output: (R, H) f32.
    """
    x = we_ref[...].astype(jnp.float32) + pe_ref[...] + te_ref[...][None]
    xn = _layernorm(x, g_ref[...][None], b_ref[...][None])          # (R, T, H)
    # dense(emb.transpose(2,1)).squeeze(-1): out[r,h] = sum_t xn[r,t,h]*w[t]+b
    acc = xn[:, 0, :] * dw_ref[0]
    for t in range(1, TOKEN_NUM):
        acc = acc + xn[:, t, :] * dw_ref[t]
    o_ref[...] = acc + db_ref[0]


def _embed2_kernel(ie_ref, pe_ref, te_ref, g_ref, b_ref, o_ref):
    """Roberta embeddings when inputs_embeds is provided (grid over batch)."""
    x = ie_ref[0] + pe_ref[...] + te_ref[...]
    o_ref[0] = _layernorm(x, g_ref[...], b_ref[...])


def _layer_kernel(x_ref, mb_ref, qkv_w_ref, qkv_b_ref, o_w_ref, o_b_ref,
                  aln_g_ref, aln_b_ref, fi_w_ref, fi_b_ref, fo_w_ref,
                  fo_b_ref, fln_g_ref, fln_b_ref, o_ref):
    """Whole encoder layer for one batch element (grid over batch)."""
    x = x_ref[0]                                   # (S, H) f32
    mb = mb_ref[0]                                 # (1, S) additive mask bias

    xb = x.astype(jnp.bfloat16)
    qkv = jnp.dot(xb, qkv_w_ref[...],
                  preferred_element_type=jnp.float32) + qkv_b_ref[...]  # (S, 3H)

    scale = 1.0 / (HEAD_DIM ** 0.5)
    ctx_heads = []
    for h in range(NUM_HEADS):
        qh = qkv[:, h * HEAD_DIM:(h + 1) * HEAD_DIM]
        kh = qkv[:, HIDDEN + h * HEAD_DIM:HIDDEN + (h + 1) * HEAD_DIM]
        vh = qkv[:, 2 * HIDDEN + h * HEAD_DIM:2 * HIDDEN + (h + 1) * HEAD_DIM]
        s = jax.lax.dot_general(
            qh.astype(jnp.bfloat16), kh.astype(jnp.bfloat16),
            (((1,), (1,)), ((), ())),
            preferred_element_type=jnp.float32) * scale                 # (S, S)
        s = s + mb
        s = s - jnp.max(s, axis=-1, keepdims=True)
        p = jnp.exp(s)
        p = p * pl.reciprocal(jnp.sum(p, axis=-1, keepdims=True), approx=True)
        ctx_heads.append(
            jnp.dot(p.astype(jnp.bfloat16), vh.astype(jnp.bfloat16),
                    preferred_element_type=jnp.float32))                # (S, DH)
    ctx = jnp.concatenate(ctx_heads, axis=-1)                           # (S, H)

    attn_out = jnp.dot(ctx.astype(jnp.bfloat16), o_w_ref[...],
                       preferred_element_type=jnp.float32) + o_b_ref[...]
    h1 = _layernorm(attn_out + x, aln_g_ref[...], aln_b_ref[...])

    ff = jnp.dot(h1.astype(jnp.bfloat16), fi_w_ref[...],
                 preferred_element_type=jnp.float32) + fi_b_ref[...]
    # TODO(synk): HF "gelu" is erf-based; tanh approximation used here.
    ff = jax.nn.gelu(ff, approximate=True)
    ff2 = jnp.dot(ff.astype(jnp.bfloat16), fo_w_ref[...],
                  preferred_element_type=jnp.float32) + fo_b_ref[...]
    o_ref[0] = _layernorm(ff2 + h1, fln_g_ref[...], fln_b_ref[...])


def _lm_head_kernel(x_ref, w_ref, b_ref, g_ref, beta_ref, o_ref):
    """lm_head dense + gelu + LayerNorm (no residual, no zero-add)."""
    h = jnp.dot(x_ref[...].astype(jnp.bfloat16), w_ref[...],
                preferred_element_type=jnp.float32) + b_ref[...]
    h = jax.nn.gelu(h, approximate=True)
    o_ref[...] = _layernorm(h, g_ref[...], beta_ref[...])


def _decoder_kernel(h_ref, w_ref, bias_ref, o_ref):
    """Tied decoder: logits tile = h @ word_emb_tile^T + bias_tile."""
    hb = h_ref[...].astype(jnp.bfloat16)          # (R, H)
    w = w_ref[...]                                # (TILE_V, H) bf16
    logits = jax.lax.dot_general(hb, w, (((1,), (1,)), ((), ())),
                                 preferred_element_type=jnp.float32)
    o_ref[...] = logits + bias_ref[...]


# ---------------------------- kernel wrappers --------------------------------
def emb_token_dense(we, pe, p):
    R = we.shape[0]
    return pl.pallas_call(
        _emb_tokendense_kernel,
        out_shape=jax.ShapeDtypeStruct((R, HIDDEN), jnp.float32),
        in_specs=[_SMEM, _SMEM, _VMEM, _VMEM, _VMEM, _VMEM, _VMEM],
        out_specs=_VMEM,
    )(p["dense_w"], p["dense_b"], we, pe, p["type_emb"],
      p["emb_ln_g"], p["emb_ln_b"])


def embed_from_embeds(inputs_embeds, pe, p):
    B, S, H = inputs_embeds.shape
    return pl.pallas_call(
        _embed2_kernel,
        out_shape=jax.ShapeDtypeStruct((B, S, H), jnp.float32),
        grid=(B,),
        in_specs=[
            pl.BlockSpec((1, S, H), lambda b: (b, 0, 0)),
            pl.BlockSpec((S, H), lambda b: (0, 0)),
            pl.BlockSpec((1, H), lambda b: (0, 0)),
            pl.BlockSpec((1, H), lambda b: (0, 0)),
            pl.BlockSpec((1, H), lambda b: (0, 0)),
        ],
        out_specs=pl.BlockSpec((1, S, H), lambda b: (b, 0, 0)),
        compiler_params=pltpu.CompilerParams(dimension_semantics=("parallel",)),
    )(inputs_embeds, pe, p["type_emb"], p["emb_ln_g"], p["emb_ln_b"])


def encoder_layer(x, mask_bias, L):
    B, S, H = x.shape

    def rep_spec(arr):
        nd = arr.ndim
        return pl.BlockSpec(arr.shape, lambda b, _nd=nd: (0,) * _nd)

    weight_names = ("qkv_w", "qkv_b", "o_w", "o_b", "attn_ln_g", "attn_ln_b",
                    "ffn_in_w", "ffn_in_b", "ffn_out_w", "ffn_out_b",
                    "ffn_ln_g", "ffn_ln_b")
    in_specs = [pl.BlockSpec((1, S, H), lambda b: (b, 0, 0)),
                pl.BlockSpec((1, 1, S), lambda b: (b, 0, 0))]
    in_specs += [rep_spec(L[n]) for n in weight_names]

    return pl.pallas_call(
        _layer_kernel,
        out_shape=jax.ShapeDtypeStruct((B, S, H), jnp.float32),
        grid=(B,),
        in_specs=in_specs,
        out_specs=pl.BlockSpec((1, S, H), lambda b: (b, 0, 0)),
        compiler_params=pltpu.CompilerParams(dimension_semantics=("parallel",)),
    )(x, mask_bias, *[L[n] for n in weight_names])


def lm_head(x2, p):
    R = x2.shape[0]
    return pl.pallas_call(
        _lm_head_kernel,
        out_shape=jax.ShapeDtypeStruct((R, HIDDEN), jnp.float32),
        in_specs=[_VMEM, _VMEM, _VMEM, _VMEM, _VMEM],
        out_specs=_VMEM,
    )(x2, p["lm_dense_w"], p["lm_dense_b"], p["lm_ln_g"], p["lm_ln_b"])


def tied_decoder(h, p):
    R = h.shape[0]
    n_tiles = VOCAB // TILE_V
    return pl.pallas_call(
        _decoder_kernel,
        out_shape=jax.ShapeDtypeStruct((R, VOCAB), jnp.float32),
        grid=(n_tiles,),
        in_specs=[
            pl.BlockSpec((R, HIDDEN), lambda j: (0, 0)),
            pl.BlockSpec((TILE_V, HIDDEN), lambda j: (j, 0)),   # streams word_emb
            pl.BlockSpec((1, TILE_V), lambda j: (0, j)),
        ],
        out_specs=pl.BlockSpec((R, TILE_V), lambda j: (0, j)),
        compiler_params=pltpu.CompilerParams(dimension_semantics=("parallel",)),
    )(h, p["word_emb"], p["lm_bias"])


# ---------------------------- parameters -------------------------------------
def init_params(key):
    def normal(k, shape, dtype=jnp.float32, scale=0.02):
        return (scale * jax.random.normal(k, shape, dtype=jnp.float32)).astype(dtype)

    keys = iter(jax.random.split(key, 64))
    p = {}
    p["word_emb"] = normal(next(keys), (VOCAB, HIDDEN), jnp.bfloat16)
    p["pos_emb"] = normal(next(keys), (MAX_POS, HIDDEN))
    p["type_emb"] = normal(next(keys), (1, HIDDEN))
    p["emb_ln_g"] = jnp.ones((1, HIDDEN), jnp.float32)
    p["emb_ln_b"] = jnp.zeros((1, HIDDEN), jnp.float32)
    layers = []
    for _ in range(NUM_LAYERS):
        L = {}
        L["qkv_w"] = normal(next(keys), (HIDDEN, 3 * HIDDEN), jnp.bfloat16)
        L["qkv_b"] = jnp.zeros((1, 3 * HIDDEN), jnp.float32)
        L["o_w"] = normal(next(keys), (HIDDEN, HIDDEN), jnp.bfloat16)
        L["o_b"] = jnp.zeros((1, HIDDEN), jnp.float32)
        L["ffn_in_w"] = normal(next(keys), (HIDDEN, INTERMEDIATE), jnp.bfloat16)
        L["ffn_in_b"] = jnp.zeros((1, INTERMEDIATE), jnp.float32)
        L["ffn_out_w"] = normal(next(keys), (INTERMEDIATE, HIDDEN), jnp.bfloat16)
        L["ffn_out_b"] = jnp.zeros((1, HIDDEN), jnp.float32)
        L["attn_ln_g"] = jnp.ones((1, HIDDEN), jnp.float32)
        L["attn_ln_b"] = jnp.zeros((1, HIDDEN), jnp.float32)
        L["ffn_ln_g"] = jnp.ones((1, HIDDEN), jnp.float32)
        L["ffn_ln_b"] = jnp.zeros((1, HIDDEN), jnp.float32)
        layers.append(L)
    p["layers"] = layers
    p["lm_dense_w"] = normal(next(keys), (HIDDEN, HIDDEN), jnp.bfloat16)
    p["lm_dense_b"] = jnp.zeros((1, HIDDEN), jnp.float32)
    p["lm_ln_g"] = jnp.ones((1, HIDDEN), jnp.float32)
    p["lm_ln_b"] = jnp.zeros((1, HIDDEN), jnp.float32)
    p["lm_bias"] = jnp.zeros((1, VOCAB), jnp.float32)
    # self.dense = nn.Linear(token_num, 1)  (stored as SMEM-friendly scalars)
    p["dense_w"] = normal(next(keys), (TOKEN_NUM,))
    p["dense_b"] = jnp.zeros((1,), jnp.float32)
    return p


# ---------------------------- model forward -----------------------------------
def bert_model_forward(input_ids, attention_mask, p):
    # input_ids: (SEQ_LEN, BATCH, TOKEN_NUM) int32
    # attention_mask: (SEQ_LEN, BATCH, TOKEN_NUM) float32 {0,1}
    S_outer, B, T = input_ids.shape

    # ---- per-step embeddings + dense(token_num -> 1), vectorized over loop ----
    # TODO(synk): embedding gathers stay in plain JAX (glue); the LN + token
    # dense contraction run fused in one Pallas kernel.
    flat_ids = input_ids.reshape(S_outer * B, T)
    pad_mask = (flat_ids != PAD_IDX).astype(jnp.int32)
    position_ids = jnp.cumsum(pad_mask, axis=1) * pad_mask + PAD_IDX
    we = jnp.take(p["word_emb"], flat_ids, axis=0)            # (R, T, H) bf16
    pe = jnp.take(p["pos_emb"], position_ids, axis=0)         # (R, T, H) f32
    seq_emb = emb_token_dense(we, pe, p)                      # (R, H) f32
    seq_emb = seq_emb.reshape(S_outer, B, HIDDEN)
    inputs_embeds = jnp.transpose(seq_emb, (1, 0, 2))         # (B, S, H)

    # ---- attention mask: transpose(1,0) then max over token dim ----
    am = jnp.transpose(attention_mask, (1, 0, 2))             # (B, S, T)
    am = jnp.max(am, axis=-1)                                 # (B, S)
    mask_bias = ((1.0 - am) * -1e9)[:, None, :]               # (B, 1, S)

    # ---- roberta embeddings for inputs_embeds path ----
    pos_ids2 = jnp.arange(PAD_IDX + 1, PAD_IDX + 1 + S_outer)
    pe2 = jnp.take(p["pos_emb"], pos_ids2, axis=0)            # (S, H)
    x = embed_from_embeds(inputs_embeds, pe2, p)              # (B, S, H)

    # ---- encoder: one fused pallas_call per layer ----
    for L in p["layers"]:
        x = encoder_layer(x, mask_bias, L)

    # ---- MLM head (labels=None => logits only) ----
    # TODO(synk): labels / cross-entropy loss path not implemented.
    x2 = x.reshape(B * S_outer, HIDDEN)
    h = lm_head(x2, p)                                        # (R, H)
    logits = tied_decoder(h, p)                               # (R, V)
    return logits.reshape(B, S_outer, VOCAB)


# ---------------------------- main -------------------------------------------
if __name__ == "__main__":
    key = jax.random.PRNGKey(0)
    pkey, ikey, mkey = jax.random.split(key, 3)
    params = init_params(pkey)

    input_ids = jax.random.randint(ikey, (SEQ_LEN, BATCH, TOKEN_NUM), 0, VOCAB,
                                   dtype=jnp.int32)
    attention_mask = (jax.random.uniform(mkey, (SEQ_LEN, BATCH, TOKEN_NUM))
                      > 0.1).astype(jnp.float32)

    fwd = jax.jit(lambda i, m: bert_model_forward(i, m, params))
    logits = fwd(input_ids, attention_mask)
    jax.block_until_ready(logits)

    assert logits.shape == (BATCH, SEQ_LEN, VOCAB), logits.shape
    assert bool(jnp.all(jnp.isfinite(logits)))
    print("KERNEL_OK")
</pallas_src>

<mosaic_0001>
module attributes {stable_mosaic.version = 11 : i64} {
  func.func @_emb_tokendense_kernel(%arg0: memref<8xf32, #tpu.memory_space<smem>>, %arg1: memref<1xf32, #tpu.memory_space<smem>>, %arg2: memref<16x8x128xbf16, #tpu.memory_space<vmem>>, %arg3: memref<16x8x128xf32, #tpu.memory_space<vmem>>, %arg4: memref<1x128xf32, #tpu.memory_space<vmem>>, %arg5: memref<1x128xf32, #tpu.memory_space<vmem>>, %arg6: memref<1x128xf32, #tpu.memory_space<vmem>>, %arg7: memref<16x128xf32, #tpu.memory_space<vmem>>) attributes {dimension_semantics = [], scalar_prefetch = 0 : i64, scratch_operands = 0 : i64, tpu.core_type = #tpu.core_type<tc>} {
    %c0 = arith.constant 0 : index
    %c0_0 = arith.constant 0 : index
    %c0_1 = arith.constant 0 : index
    %0 = vector.load %arg2[%c0, %c0_0, %c0_1] : memref<16x8x128xbf16, #tpu.memory_space<vmem>>, vector<16x8x128xbf16>
    %1 = arith.extf %0 : vector<16x8x128xbf16> to vector<16x8x128xf32>
    %c0_2 = arith.constant 0 : index
    %c0_3 = arith.constant 0 : index
    %c0_4 = arith.constant 0 : index
    %2 = vector.load %arg3[%c0_2, %c0_3, %c0_4] : memref<16x8x128xf32, #tpu.memory_space<vmem>>, vector<16x8x128xf32>
    %3 = arith.addf %1, %2 : vector<16x8x128xf32>
    %c0_5 = arith.constant 0 : index
    %c0_6 = arith.constant 0 : index
    %4 = vector.load %arg4[%c0_5, %c0_6] : memref<1x128xf32, #tpu.memory_space<vmem>>, vector<1x128xf32>
    %5 = vector.shape_cast %4 : vector<1x128xf32> to vector<1x1x128xf32>
    %6 = vector.broadcast %5 : vector<1x1x128xf32> to vector<16x8x128xf32>
    %7 = arith.addf %3, %6 : vector<16x8x128xf32>
    %c0_7 = arith.constant 0 : index
    %c0_8 = arith.constant 0 : index
    %8 = vector.load %arg5[%c0_7, %c0_8] : memref<1x128xf32, #tpu.memory_space<vmem>>, vector<1x128xf32>
    %9 = vector.shape_cast %8 : vector<1x128xf32> to vector<1x1x128xf32>
    %c0_9 = arith.constant 0 : index
    %c0_10 = arith.constant 0 : index
    %10 = vector.load %arg6[%c0_9, %c0_10] : memref<1x128xf32, #tpu.memory_space<vmem>>, vector<1x128xf32>
    %11 = vector.shape_cast %10 : vector<1x128xf32> to vector<1x1x128xf32>
    %cst = arith.constant dense<0.000000e+00> : vector<16x8xf32>
    %12 = vector.multi_reduction <add>, %7, %cst [2] : vector<16x8x128xf32> to vector<16x8xf32>
    %13 = vector.shape_cast %12 : vector<16x8xf32> to vector<16x8x1xf32>
    %cst_11 = arith.constant 1.280000e+02 : f32
    %14 = vector.broadcast %cst_11 : f32 to vector<16x8x1xf32>
    %15 = arith.divf %13, %14 : vector<16x8x1xf32>
    %16 = vector.broadcast %15 : vector<16x8x1xf32> to vector<16x8x128xf32>
    %17 = arith.subf %7, %16 : vector<16x8x128xf32>
    %18 = arith.mulf %17, %17 : vector<16x8x128xf32>
    %cst_12 = arith.constant dense<0.000000e+00> : vector<16x8xf32>
    %19 = vector.multi_reduction <add>, %18, %cst_12 [2] : vector<16x8x128xf32> to vector<16x8xf32>
    %20 = vector.shape_cast %19 : vector<16x8xf32> to vector<16x8x1xf32>
    %cst_13 = arith.constant 1.280000e+02 : f32
    %21 = vector.broadcast %cst_13 : f32 to vector<16x8x1xf32>
    %22 = arith.divf %20, %21 : vector<16x8x1xf32>
    %23 = vector.broadcast %15 : vector<16x8x1xf32> to vector<16x8x128xf32>
    %24 = arith.subf %7, %23 : vector<16x8x128xf32>
    %cst_14 = arith.constant 9.99999974E-6 : f32
    %25 = vector.broadcast %cst_14 : f32 to vector<16x8x1xf32>
    %26 = arith.addf %22, %25 : vector<16x8x1xf32>
    %27 = math.rsqrt %26 : vector<16x8x1xf32>
    %28 = vector.broadcast %27 : vector<16x8x1xf32> to vector<16x8x128xf32>
    %29 = arith.mulf %24, %28 : vector<16x8x128xf32>
    %30 = vector.broadcast %9 : vector<1x1x128xf32> to vector<16x8x128xf32>
    %31 = arith.mulf %29, %30 : vector<16x8x128xf32>
    %32 = vector.broadcast %11 : vector<1x1x128xf32> to vector<16x8x128xf32>
    %33 = arith.addf %31, %32 : vector<16x8x128xf32>
    %34 = vector.extract_strided_slice %33 {offsets = [0, 0, 0], sizes = [16, 1, 128], strides = [1, 1, 1]} : vector<16x8x128xf32> to vector<16x1x128xf32>
    %35 = vector.shape_cast %34 : vector<16x1x128xf32> to vector<16x128xf32>
    %c0_15 = arith.constant 0 : index
    %36 = memref.load %arg0[%c0_15] : memref<8xf32, #tpu.memory_space<smem>>
    %37 = vector.broadcast %36 : f32 to vector<16x128xf32>
    %38 = arith.mulf %35, %37 : vector<16x128xf32>
    %39 = vector.extract_strided_slice %33 {offsets = [0, 1, 0], sizes = [16, 1, 128], strides = [1, 1, 1]} : vector<16x8x128xf32> to vector<16x1x128xf32>
    %40 = vector.shape_cast %39 : vector<16x1x128xf32> to vector<16x128xf32>
    %c1 = arith.constant 1 : index
    %41 = memref.load %arg0[%c1] : memref<8xf32, #tpu.memory_space<smem>>
    %42 = vector.broadcast %41 : f32 to vector<16x128xf32>
    %43 = arith.mulf %40, %42 : vector<16x128xf32>
    %44 = arith.addf %38, %43 : vector<16x128xf32>
    %45 = vector.extract_strided_slice %33 {offsets = [0, 2, 0], sizes = [16, 1, 128], strides = [1, 1, 1]} : vector<16x8x128xf32> to vector<16x1x128xf32>
    %46 = vector.shape_cast %45 : vector<16x1x128xf32> to vector<16x128xf32>
    %c2 = arith.constant 2 : index
    %47 = memref.load %arg0[%c2] : memref<8xf32, #tpu.memory_space<smem>>
    %48 = vector.broadcast %47 : f32 to vector<16x128xf32>
    %49 = arith.mulf %46, %48 : vector<16x128xf32>
    %50 = arith.addf %44, %49 : vector<16x128xf32>
    %51 = vector.extract_strided_slice %33 {offsets = [0, 3, 0], sizes = [16, 1, 128], strides = [1, 1, 1]} : vector<16x8x128xf32> to vector<16x1x128xf32>
    %52 = vector.shape_cast %51 : vector<16x1x128xf32> to vector<16x128xf32>
    %c3 = arith.constant 3 : index
    %53 = memref.load %arg0[%c3] : memref<8xf32, #tpu.memory_space<smem>>
    %54 = vector.broadcast %53 : f32 to vector<16x128xf32>
    %55 = arith.mulf %52, %54 : vector<16x128xf32>
    %56 = arith.addf %50, %55 : vector<16x128xf32>
    %57 = vector.extract_strided_slice %33 {offsets = [0, 4, 0], sizes = [16, 1, 128], strides = [1, 1, 1]} : vector<16x8x128xf32> to vector<16x1x128xf32>
    %58 = vector.shape_cast %57 : vector<16x1x128xf32> to vector<16x128xf32>
    %c4 = arith.constant 4 : index
    %59 = memref.load %arg0[%c4] : memref<8xf32, #tpu.memory_space<smem>>
    %60 = vector.broadcast %59 : f32 to vector<16x128xf32>
    %61 = arith.mulf %58, %60 : vector<16x128xf32>
    %62 = arith.addf %56, %61 : vector<16x128xf32>
    %63 = vector.extract_strided_slice %33 {offsets = [0, 5, 0], sizes = [16, 1, 128], strides = [1, 1, 1]} : vector<16x8x128xf32> to vector<16x1x128xf32>
    %64 = vector.shape_cast %63 : vector<16x1x128xf32> to vector<16x128xf32>
    %c5 = arith.constant 5 : index
    %65 = memref.load %arg0[%c5] : memref<8xf32, #tpu.memory_space<smem>>
    %66 = vector.broadcast %65 : f32 to vector<16x128xf32>
    %67 = arith.mulf %64, %66 : vector<16x128xf32>
    %68 = arith.addf %62, %67 : vector<16x128xf32>
    %69 = vector.extract_strided_slice %33 {offsets = [0, 6, 0], sizes = [16, 1, 128], strides = [1, 1, 1]} : vector<16x8x128xf32> to vector<16x1x128xf32>
    %70 = vector.shape_cast %69 : vector<16x1x128xf32> to vector<16x128xf32>
    %c6 = arith.constant 6 : index
    %71 = memref.load %arg0[%c6] : memref<8xf32, #tpu.memory_space<smem>>
    %72 = vector.broadcast %71 : f32 to vector<16x128xf32>
    %73 = arith.mulf %70, %72 : vector<16x128xf32>
    %74 = arith.addf %68, %73 : vector<16x128xf32>
    %75 = vector.extract_strided_slice %33 {offsets = [0, 7, 0], sizes = [16, 1, 128], strides = [1, 1, 1]} : vector<16x8x128xf32> to vector<16x1x128xf32>
    %76 = vector.shape_cast %75 : vector<16x1x128xf32> to vector<16x128xf32>
    %c7 = arith.constant 7 : index
    %77 = memref.load %arg0[%c7] : memref<8xf32, #tpu.memory_space<smem>>
    %78 = vector.broadcast %77 : f32 to vector<16x128xf32>
    %79 = arith.mulf %76, %78 : vector<16x128xf32>
    %80 = arith.addf %74, %79 : vector<16x128xf32>
    %c0_16 = arith.constant 0 : index
    %81 = memref.load %arg1[%c0_16] : memref<1xf32, #tpu.memory_space<smem>>
    %82 = vector.broadcast %81 : f32 to vector<16x128xf32>
    %83 = arith.addf %80, %82 : vector<16x128xf32>
    %c0_17 = arith.constant 0 : index
    %c0_18 = arith.constant 0 : index
    %84 = vector.load %arg7[%c0_17, %c0_18] : memref<16x128xf32, #tpu.memory_space<vmem>>, vector<16x128xf32>
    tpu.vector_store %arg7[%c0_17, %c0_18], %83 {strides = array<i32>} : memref<16x128xf32, #tpu.memory_space<vmem>>, vector<16x128xf32>,
    return
  }
}

module attributes {stable_mosaic.version = 11 : i64} {
  func.func @_embed2_kernel(%arg0: i32, %arg1: memref<1x8x128xf32, #tpu.memory_space<vmem>>, %arg2: memref<8x128xf32, #tpu.memory_space<vmem>>, %arg3: memref<1x128xf32, #tpu.memory_space<vmem>>, %arg4: memref<1x128xf32, #tpu.memory_space<vmem>>, %arg5: memref<1x128xf32, #tpu.memory_space<vmem>>, %arg6: memref<1x8x128xf32, #tpu.memory_space<vmem>>) attributes {dimension_semantics = [#tpu.dimension_semantics<parallel>], iteration_bounds = array<i64: 2>, scalar_prefetch = 0 : i64, scratch_operands = 0 : i64, tpu.core_type = #tpu.core_type<tc>, window_params = [{transform_indices = @transform_0, window_bounds = array<i64: 1, 8, 128>}, {pipeline_mode = #tpu.pipeline_mode<synchronous>, transform_indices = @transform_1, window_bounds = array<i64: 8, 128>}, {pipeline_mode = #tpu.pipeline_mode<synchronous>, transform_indices = @transform_2, window_bounds = array<i64: 1, 128>}, {pipeline_mode = #tpu.pipeline_mode<synchronous>, transform_indices = @transform_3, window_bounds = array<i64: 1, 128>}, {pipeline_mode = #tpu.pipeline_mode<synchronous>, transform_indices = @transform_4, window_bounds = array<i64: 1, 128>}, {transform_indices = @transform_5, window_bounds = array<i64: 1, 8, 128>}]} {
    %c0 = arith.constant 0 : index
    %c0_0 = arith.constant 0 : index
    %c0_1 = arith.constant 0 : index
    %0 = vector.load %arg1[%c0, %c0_0, %c0_1] : memref<1x8x128xf32, #tpu.memory_space<vmem>>, vector<1x8x128xf32>
    %1 = vector.shape_cast %0 : vector<1x8x128xf32> to vector<8x128xf32>
    %c0_2 = arith.constant 0 : index
    %c0_3 = arith.constant 0 : index
    %2 = vector.load %arg2[%c0_2, %c0_3] : memref<8x128xf32, #tpu.memory_space<vmem>>, vector<8x128xf32>
    %3 = arith.addf %1, %2 : vector<8x128xf32>
    %c0_4 = arith.constant 0 : index
    %c0_5 = arith.constant 0 : index
    %4 = vector.load %arg3[%c0_4, %c0_5] : memref<1x128xf32, #tpu.memory_space<vmem>>, vector<1x128xf32>
    %5 = vector.broadcast %4 : vector<1x128xf32> to vector<8x128xf32>
    %6 = arith.addf %3, %5 : vector<8x128xf32>
    %c0_6 = arith.constant 0 : index
    %c0_7 = arith.constant 0 : index
    %7 = vector.load %arg4[%c0_6, %c0_7] : memref<1x128xf32, #tpu.memory_space<vmem>>, vector<1x128xf32>
    %c0_8 = arith.constant 0 : index
    %c0_9 = arith.constant 0 : index
    %8 = vector.load %arg5[%c0_8, %c0_9] : memref<1x128xf32, #tpu.memory_space<vmem>>, vector<1x128xf32>
    %cst = arith.constant dense<0.000000e+00> : vector<8xf32>
    %9 = vector.multi_reduction <add>, %6, %cst [1] : vector<8x128xf32> to vector<8xf32>
    %10 = vector.shape_cast %9 : vector<8xf32> to vector<8x1xf32>
    %cst_10 = arith.constant 1.280000e+02 : f32
    %11 = vector.broadcast %cst_10 : f32 to vector<8x1xf32>
    %12 = arith.divf %10, %11 : vector<8x1xf32>
    %13 = vector.broadcast %12 : vector<8x1xf32> to vector<8x128xf32>
    %14 = arith.subf %6, %13 : vector<8x128xf32>
    %15 = arith.mulf %14, %14 : vector<8x128xf32>
    %cst_11 = arith.constant dense<0.000000e+00> : vector<8xf32>
    %16 = vector.multi_reduction <add>, %15, %cst_11 [1] : vector<8x128xf32> to vector<8xf32>
    %17 = vector.shape_cast %16 : vector<8xf32> to vector<8x1xf32>
    %cst_12 = arith.constant 1.280000e+02 : f32
    %18 = vector.broadcast %cst_12 : f32 to vector<8x1xf32>
    %19 = arith.divf %17, %18 : vector<8x1xf32>
    %20 = vector.broadcast %12 : vector<8x1xf32> to vector<8x128xf32>
    %21 = arith.subf %6, %20 : vector<8x128xf32>
    %cst_13 = arith.constant 9.99999974E-6 : f32
    %22 = vector.broadcast %cst_13 : f32 to vector<8x1xf32>
    %23 = arith.addf %19, %22 : vector<8x1xf32>
    %24 = math.rsqrt %23 : vector<8x1xf32>
    %25 = vector.broadcast %24 : vector<8x1xf32> to vector<8x128xf32>
    %26 = arith.mulf %21, %25 : vector<8x128xf32>
    %27 = vector.broadcast %7 : vector<1x128xf32> to vector<8x128xf32>
    %28 = arith.mulf %26, %27 : vector<8x128xf32>
    %29 = vector.broadcast %8 : vector<1x128xf32> to vector<8x128xf32>
    %30 = arith.addf %28, %29 : vector<8x128xf32>
    %c0_14 = arith.constant 0 : index
    %c0_15 = arith.constant 0 : index
    %c0_16 = arith.constant 0 : index
    %31 = vector.load %arg6[%c0_14, %c0_15, %c0_16] : memref<1x8x128xf32, #tpu.memory_space<vmem>>, vector<1x8x128xf32>
    %32 = vector.shape_cast %31 : vector<1x8x128xf32> to vector<8x128xf32>
    %33 = vector.shape_cast %30 : vector<8x128xf32> to vector<1x8x128xf32>
    tpu.vector_store %arg6[%c0_14, %c0_15, %c0_16], %33 {strides = array<i32>} : memref<1x8x128xf32, #tpu.memory_space<vmem>>, vector<1x8x128xf32>,
    return
  }
  func.func @transform_0(%arg0: i32) -> (i32, i32, i32) {
    %c0_i32 = arith.constant 0 : i32
    %c0_i32_0 = arith.constant 0 : i32
    %c0_i32_1 = arith.constant 0 : i32
    return %arg0, %c0_i32, %c0_i32_0 : i32, i32, i32
  }
  func.func @transform_1(%arg0: i32) -> (i32, i32) {
    %c0_i32 = arith.constant 0 : i32
    %c0_i32_0 = arith.constant 0 : i32
    %c0_i32_1 = arith.constant 0 : i32
    return %c0_i32, %c0_i32_0 : i32, i32
  }
  func.func @transform_2(%arg0: i32) -> (i32, i32) {
    %c0_i32 = arith.constant 0 : i32
    %c0_i32_0 = arith.constant 0 : i32
    %c0_i32_1 = arith.constant 0 : i32
    return %c0_i32, %c0_i32_0 : i32, i32
  }
  func.func @transform_3(%arg0: i32) -> (i32, i32) {
    %c0_i32 = arith.constant 0 : i32
    %c0_i32_0 = arith.constant 0 : i32
    %c0_i32_1 = arith.constant 0 : i32
    return %c0_i32, %c0_i32_0 : i32, i32
  }
  func.func @transform_4(%arg0: i32) -> (i32, i32) {
    %c0_i32 = arith.constant 0 : i32
    %c0_i32_0 = arith.constant 0 : i32
    %c0_i32_1 = arith.constant 0 : i32
    return %c0_i32, %c0_i32_0 : i32, i32
  }
  func.func @transform_5(%arg0: i32) -> (i32, i32, i32) {
    %c0_i32 = arith.constant 0 : i32
    %c0_i32_0 = arith.constant 0 : i32
    %c0_i32_1 = arith.constant 0 : i32
    return %arg0, %c0_i32, %c0_i32_0 : i32, i32, i32
  }
}

module attributes {stable_mosaic.version = 11 : i64} {
  func.func @_layer_kernel(%arg0: i32, %arg1: memref<1x8x128xf32, #tpu.memory_space<vmem>>, %arg2: memref<1x1x8xf32, #tpu.memory_space<vmem>>, %arg3: memref<128x384xbf16, #tpu.memory_space<vmem>>, %arg4: memref<1x384xf32, #tpu.memory_space<vmem>>, %arg5: memref<128x128xbf16, #tpu.memory_space<vmem>>, %arg6: memref<1x128xf32, #tpu.memory_space<vmem>>, %arg7: memref<1x128xf32, #tpu.memory_space<vmem>>, %arg8: memref<1x128xf32, #tpu.memory_space<vmem>>, %arg9: memref<128x256xbf16, #tpu.memory_space<vmem>>, %arg10: memref<1x256xf32, #tpu.memory_space<vmem>>, %arg11: memref<256x128xbf16, #tpu.memory_space<vmem>>, %arg12: memref<1x128xf32, #tpu.memory_space<vmem>>, %arg13: memref<1x128xf32, #tpu.memory_space<vmem>>, %arg14: memref<1x128xf32, #tpu.memory_space<vmem>>, %arg15: memref<1x8x128xf32, #tpu.memory_space<vmem>>) attributes {dimension_semantics = [#tpu.dimension_semantics<parallel>], iteration_bounds = array<i64: 2>, scalar_prefetch = 0 : i64, scratch_operands = 0 : i64, tpu.core_type = #tpu.core_type<tc>, window_params = [{transform_indices = @transform_0, window_bounds = array<i64: 1, 8, 128>}, {transform_indices = @transform_1, window_bounds = array<i64: 1, 1, 8>}, {pipeline_mode = #tpu.pipeline_mode<synchronous>, transform_indices = @transform_2, window_bounds = array<i64: 128, 384>}, {pipeline_mode = #tpu.pipeline_mode<synchronous>, transform_indices = @transform_3, window_bounds = array<i64: 1, 384>}, {pipeline_mode = #tpu.pipeline_mode<synchronous>, transform_indices = @transform_4, window_bounds = array<i64: 128, 128>}, {pipeline_mode = #tpu.pipeline_mode<synchronous>, transform_indices = @transform_5, window_bounds = array<i64: 1, 128>}, {pipeline_mode = #tpu.pipeline_mode<synchronous>, transform_indices = @transform_6, window_bounds = array<i64: 1, 128>}, {pipeline_mode = #tpu.pipeline_mode<synchronous>, transform_indices = @transform_7, window_bounds = array<i64: 1, 128>}, {pipeline_mode = #tpu.pipeline_mode<synchronous>, transform_indices = @transform_8, window_bounds = array<i64: 128, 256>}, {pipeline_mode = #tpu.pipeline_mode<synchronous>, transform_indices = @transform_9, window_bounds = array<i64: 1, 256>}, {pipeline_mode = #tpu.pipeline_mode<synchronous>, transform_indices = @transform_10, window_bounds = array<i64: 256, 128>}, {pipeline_mode = #tpu.pipeline_mode<synchronous>, transform_indices = @transform_11, window_bounds = array<i64: 1, 128>}, {pipeline_mode = #tpu.pipeline_mode<synchronous>, transform_indices = @transform_12, window_bounds = array<i64: 1, 128>}, {pipeline_mode = #tpu.pipeline_mode<synchronous>, transform_indices = @transform_13, window_bounds = array<i64: 1, 128>}, {transform_indices = @transform_14, window_bounds = array<i64: 1, 8, 128>}]} {
    %c0 = arith.constant 0 : index
    %c0_0 = arith.constant 0 : index
    %c0_1 = arith.constant 0 : index
    %0 = vector.load %arg1[%c0, %c0_0, %c0_1] : memref<1x8x128xf32, #tpu.memory_space<vmem>>, vector<1x8x128xf32>
    %1 = vector.shape_cast %0 : vector<1x8x128xf32> to vector<8x128xf32>
    %c0_2 = arith.constant 0 : index
    %c0_3 = arith.constant 0 : index
    %c0_4 = arith.constant 0 : index
    %2 = vector.load %arg2[%c0_2, %c0_3, %c0_4] : memref<1x1x8xf32, #tpu.memory_space<vmem>>, vector<1x1x8xf32>
    %3 = vector.shape_cast %2 : vector<1x1x8xf32> to vector<1x8xf32>
    %4 = arith.truncf %1 : vector<8x128xf32> to vector<8x128xbf16>
    %c0_5 = arith.constant 0 : index
    %c0_6 = arith.constant 0 : index
    %5 = vector.load %arg3[%c0_5, %c0_6] : memref<128x384xbf16, #tpu.memory_space<vmem>>, vector<128x384xbf16>
    %cst = arith.constant dense<0.000000e+00> : vector<8x384xf32>
    %6 = tpu.matmul %4, %5, %cst {dimension_numbers = #tpu.dot_dimension_numbers<[1], [0], [0], [1], [0, 0, 1, 1], [], []>} : vector<8x128xbf16>, vector<128x384xbf16>, vector<8x384xf32> -> vector<8x384xf32>
    %c0_7 = arith.constant 0 : index
    %c0_8 = arith.constant 0 : index
    %7 = vector.load %arg4[%c0_7, %c0_8] : memref<1x384xf32, #tpu.memory_space<vmem>>, vector<1x384xf32>
    %8 = vector.broadcast %7 : vector<1x384xf32> to vector<8x384xf32>
    %9 = arith.addf %6, %8 : vector<8x384xf32>
    %10 = vector.extract_strided_slice %9 {offsets = [0, 0], sizes = [8, 32], strides = [1, 1]} : vector<8x384xf32> to vector<8x32xf32>
    %11 = vector.extract_strided_slice %9 {offsets = [0, 128], sizes = [8, 32], strides = [1, 1]} : vector<8x384xf32> to vector<8x32xf32>
    %12 = vector.extract_strided_slice %9 {offsets = [0, 256], sizes = [8, 32], strides = [1, 1]} : vector<8x384xf32> to vector<8x32xf32>
    %13 = arith.truncf %10 : vector<8x32xf32> to vector<8x32xbf16>
    %14 = arith.truncf %11 : vector<8x32xf32> to vector<8x32xbf16>
    %cst_9 = arith.constant dense<0.000000e+00> : vector<8x8xf32>
    %15 = tpu.matmul %13, %14, %cst_9 {dimension_numbers = #tpu.dot_dimension_numbers<[1], [1], [0], [0], [0, 0, 1, 0], [], []>} : vector<8x32xbf16>, vector<8x32xbf16>, vector<8x8xf32> -> vector<8x8xf32>
    %cst_10 = arith.constant 0.176776692 : f32
    %16 = vector.broadcast %cst_10 : f32 to vector<8x8xf32>
    %17 = arith.mulf %15, %16 : vector<8x8xf32>
    %18 = vector.broadcast %3 : vector<1x8xf32> to vector<8x8xf32>
    %19 = arith.addf %17, %18 : vector<8x8xf32>
    %cst_11 = arith.constant dense<0xFF800000> : vector<8xf32>
    %20 = vector.multi_reduction <maximumf>, %19, %cst_11 [1] : vector<8x8xf32> to vector<8xf32>
    %21 = vector.shape_cast %20 : vector<8xf32> to vector<8x1xf32>
    %22 = vector.broadcast %21 : vector<8x1xf32> to vector<8x8xf32>
    %23 = arith.subf %19, %22 : vector<8x8xf32>
    %24 = math.exp %23 : vector<8x8xf32>
    %cst_12 = arith.constant dense<0.000000e+00> : vector<8xf32>
    %25 = vector.multi_reduction <add>, %24, %cst_12 [1] : vector<8x8xf32> to vector<8xf32>
    %26 = vector.shape_cast %25 : vector<8xf32> to vector<8x1xf32>
    %27 = tpu.reciprocal %26 {approx = true} : vector<8x1xf32> -> vector<8x1xf32>
    %28 = vector.broadcast %27 : vector<8x1xf32> to vector<8x8xf32>
    %29 = arith.mulf %24, %28 : vector<8x8xf32>
    %30 = arith.truncf %29 : vector<8x8xf32> to vector<8x8xbf16>
    %31 = arith.truncf %12 : vector<8x32xf32> to vector<8x32xbf16>
    %cst_13 = arith.constant dense<0.000000e+00> : vector<8x32xf32>
    %32 = tpu.matmul %30, %31, %cst_13 {dimension_numbers = #tpu.dot_dimension_numbers<[1], [0], [0], [1], [0, 0, 1, 1], [], []>} : vector<8x8xbf16>, vector<8x32xbf16>, vector<8x32xf32> -> vector<8x32xf32>
    %33 = vector.extract_strided_slice %9 {offsets = [0, 32], sizes = [8, 32], strides = [1, 1]} : vector<8x384xf32> to vector<8x32xf32>
    %34 = vector.extract_strided_slice %9 {offsets = [0, 160], sizes = [8, 32], strides = [1, 1]} : vector<8x384xf32> to vector<8x32xf32>
    %35 = vector.extract_strided_slice %9 {offsets = [0, 288], sizes = [8, 32], strides = [1, 1]} : vector<8x384xf32> to vector<8x32xf32>
    %36 = arith.truncf %33 : vector<8x32xf32> to vector<8x32xbf16>
    %37 = arith.truncf %34 : vector<8x32xf32> to vector<8x32xbf16>
    %cst_14 = arith.constant dense<0.000000e+00> : vector<8x8xf32>
    %38 = tpu.matmul %36, %37, %cst_14 {dimension_numbers = #tpu.dot_dimension_numbers<[1], [1], [0], [0], [0, 0, 1, 0], [], []>} : vector<8x32xbf16>, vector<8x32xbf16>, vector<8x8xf32> -> vector<8x8xf32>
    %cst_15 = arith.constant 0.176776692 : f32
    %39 = vector.broadcast %cst_15 : f32 to vector<8x8xf32>
    %40 = arith.mulf %38, %39 : vector<8x8xf32>
    %41 = vector.broadcast %3 : vector<1x8xf32> to vector<8x8xf32>
    %42 = arith.addf %40, %41 : vector<8x8xf32>
    %cst_16 = arith.constant dense<0xFF800000> : vector<8xf32>
    %43 = vector.multi_reduction <maximumf>, %42, %cst_16 [1] : vector<8x8xf32> to vector<8xf32>
    %44 = vector.shape_cast %43 : vector<8xf32> to vector<8x1xf32>
    %45 = vector.broadcast %44 : vector<8x1xf32> to vector<8x8xf32>
    %46 = arith.subf %42, %45 : vector<8x8xf32>
    %47 = math.exp %46 : vector<8x8xf32>
    %cst_17 = arith.constant dense<0.000000e+00> : vector<8xf32>
    %48 = vector.multi_reduction <add>, %47, %cst_17 [1] : vector<8x8xf32> to vector<8xf32>
    %49 = vector.shape_cast %48 : vector<8xf32> to vector<8x1xf32>
    %50 = tpu.reciprocal %49 {approx = true} : vector<8x1xf32> -> vector<8x1xf32>
    %51 = vector.broadcast %50 : vector<8x1xf32> to vector<8x8xf32>
    %52 = arith.mulf %47, %51 : vector<8x8xf32>
    %53 = arith.truncf %52 : vector<8x8xf32> to vector<8x8xbf16>
    %54 = arith.truncf %35 : vector<8x32xf32> to vector<8x32xbf16>
    %cst_18 = arith.constant dense<0.000000e+00> : vector<8x32xf32>
    %55 = tpu.matmul %53, %54, %cst_18 {dimension_numbers = #tpu.dot_dimension_numbers<[1], [0], [0], [1], [0, 0, 1, 1], [], []>} : vector<8x8xbf16>, vector<8x32xbf16>, vector<8x32xf32> -> vector<8x32xf32>
    %56 = vector.extract_strided_slice %9 {offsets = [0, 64], sizes = [8, 32], strides = [1, 1]} : vector<8x384xf32> to vector<8x32xf32>
    %57 = vector.extract_strided_slice %9 {offsets = [0, 192], sizes = [8, 32], strides = [1, 1]} : vector<8x384xf32> to vector<8x32xf32>
    %58 = vector.extract_strided_slice %9 {offsets = [0, 320], sizes = [8, 32], strides = [1, 1]} : vector<8x384xf32> to vector<8x32xf32>
    %59 = arith.truncf %56 : vector<8x32xf32> to vector<8x32xbf16>
    %60 = arith.truncf %57 : vector<8x32xf32> to vector<8x32xbf16>
    %cst_19 = arith.constant dense<0.000000e+00> : vector<8x8xf32>
    %61 = tpu.matmul %59, %60, %cst_19 {dimension_numbers = #tpu.dot_dimension_numbers<[1], [1], [0], [0], [0, 0, 1, 0], [], []>} : vector<8x32xbf16>, vector<8x32xbf16>, vector<8x8xf32> -> vector<8x8xf32>
    %cst_20 = arith.constant 0.176776692 : f32
    %62 = vector.broadcast %cst_20 : f32 to vector<8x8xf32>
    %63 = arith.mulf %61, %62 : vector<8x8xf32>
    %64 = vector.broadcast %3 : vector<1x8xf32> to vector<8x8xf32>
    %65 = arith.addf %63, %64 : vector<8x8xf32>
    %cst_21 = arith.constant dense<0xFF800000> : vector<8xf32>
    %66 = vector.multi_reduction <maximumf>, %65, %cst_21 [1] : vector<8x8xf32> to vector<8xf32>
    %67 = vector.shape_cast %66 : vector<8xf32> to vector<8x1xf32>
    %68 = vector.broadcast %67 : vector<8x1xf32> to vector<8x8xf32>
    %69 = arith.subf %65, %68 : vector<8x8xf32>
    %70 = math.exp %69 : vector<8x8xf32>
    %cst_22 = arith.constant dense<0.000000e+00> : vector<8xf32>
    %71 = vector.multi_reduction <add>, %70, %cst_22 [1] : vector<8x8xf32> to vector<8xf32>
    %72 = vector.shape_cast %71 : vector<8xf32> to vector<8x1xf32>
    %73 = tpu.reciprocal %72 {approx = true} : vector<8x1xf32> -> vector<8x1xf32>
    %74 = vector.broadcast %73 : vector<8x1xf32> to vector<8x8xf32>
    %75 = arith.mulf %70, %74 : vector<8x8xf32>
    %76 = arith.truncf %75 : vector<8x8xf32> to vector<8x8xbf16>
    %77 = arith.truncf %58 : vector<8x32xf32> to vector<8x32xbf16>
    %cst_23 = arith.constant dense<0.000000e+00> : vector<8x32xf32>
    %78 = tpu.matmul %76, %77, %cst_23 {dimension_numbers = #tpu.dot_dimension_numbers<[1], [0], [0], [1], [0, 0, 1, 1], [], []>} : vector<8x8xbf16>, vector<8x32xbf16>, vector<8x32xf32> -> vector<8x32xf32>
    %79 = vector.extract_strided_slice %9 {offsets = [0, 96], sizes = [8, 32], strides = [1, 1]} : vector<8x384xf32> to vector<8x32xf32>
    %80 = vector.extract_strided_slice %9 {offsets = [0, 224], sizes = [8, 32], strides = [1, 1]} : vector<8x384xf32> to vector<8x32xf32>
    %81 = vector.extract_strided_slice %9 {offsets = [0, 352], sizes = [8, 32], strides = [1, 1]} : vector<8x384xf32> to vector<8x32xf32>
    %82 = arith.truncf %79 : vector<8x32xf32> to vector<8x32xbf16>
    %83 = arith.truncf %80 : vector<8x32xf32> to vector<8x32xbf16>
    %cst_24 = arith.constant dense<0.000000e+00> : vector<8x8xf32>
    %84 = tpu.matmul %82, %83, %cst_24 {dimension_numbers = #tpu.dot_dimension_numbers<[1], [1], [0], [0], [0, 0, 1, 0], [], []>} : vector<8x32xbf16>, vector<8x32xbf16>, vector<8x8xf32> -> vector<8x8xf32>
    %cst_25 = arith.constant 0.176776692 : f32
    %85 = vector.broadcast %cst_25 : f32 to vector<8x8xf32>
    %86 = arith.mulf %84, %85 : vector<8x8xf32>
    %87 = vector.broadcast %3 : vector<1x8xf32> to vector<8x8xf32>
    %88 = arith.addf %86, %87 : vector<8x8xf32>
    %cst_26 = arith.constant dense<0xFF800000> : vector<8xf32>
    %89 = vector.multi_reduction <maximumf>, %88, %cst_26 [1] : vector<8x8xf32> to vector<8xf32>
    %90 = vector.shape_cast %89 : vector<8xf32> to vector<8x1xf32>
    %91 = vector.broadcast %90 : vector<8x1xf32> to vector<8x8xf32>
    %92 = arith.subf %88, %91 : vector<8x8xf32>
    %93 = math.exp %92 : vector<8x8xf32>
    %cst_27 = arith.constant dense<0.000000e+00> : vector<8xf32>
    %94 = vector.multi_reduction <add>, %93, %cst_27 [1] : vector<8x8xf32> to vector<8xf32>
    %95 = vector.shape_cast %94 : vector<8xf32> to vector<8x1xf32>
    %96 = tpu.reciprocal %95 {approx = true} : vector<8x1xf32> -> vector<8x1xf32>
    %97 = vector.broadcast %96 : vector<8x1xf32> to vector<8x8xf32>
    %98 = arith.mulf %93, %97 : vector<8x8xf32>
    %99 = arith.truncf %98 : vector<8x8xf32> to vector<8x8xbf16>
    %100 = arith.truncf %81 : vector<8x32xf32> to vector<8x32xbf16>
    %cst_28 = arith.constant dense<0.000000e+00> : vector<8x32xf32>
    %101 = tpu.matmul %99, %100, %cst_28 {dimension_numbers = #tpu.dot_dimension_numbers<[1], [0], [0], [1], [0, 0, 1, 1], [], []>} : vector<8x8xbf16>, vector<8x32xbf16>, vector<8x32xf32> -> vector<8x32xf32>
    %102 = tpu.concatenate %32, %55, %78, %101 in 1 : vector<8x32xf32>, vector<8x32xf32>, vector<8x32xf32>, vector<8x32xf32> -> vector<8x128xf32>
    %103 = arith.truncf %102 : vector<8x128xf32> to vector<8x128xbf16>
    %c0_29 = arith.constant 0 : index
    %c0_30 = arith.constant 0 : index
    %104 = vector.load %arg5[%c0_29, %c0_30] : memref<128x128xbf16, #tpu.memory_space<vmem>>, vector<128x128xbf16>
    %cst_31 = arith.constant dense<0.000000e+00> : vector<8x128xf32>
    %105 = tpu.matmul %103, %104, %cst_31 {dimension_numbers = #tpu.dot_dimension_numbers<[1], [0], [0], [1], [0, 0, 1, 1], [], []>} : vector<8x128xbf16>, vector<128x128xbf16>, vector<8x128xf32> -> vector<8x128xf32>
    %c0_32 = arith.constant 0 : index
    %c0_33 = arith.constant 0 : index
    %106 = vector.load %arg6[%c0_32, %c0_33] : memref<1x128xf32, #tpu.memory_space<vmem>>, vector<1x128xf32>
    %107 = vector.broadcast %106 : vector<1x128xf32> to vector<8x128xf32>
    %108 = arith.addf %105, %107 : vector<8x128xf32>
    %109 = arith.addf %108, %1 : vector<8x128xf32>
    %c0_34 = arith.constant 0 : index
    %c0_35 = arith.constant 0 : index
    %110 = vector.load %arg7[%c0_34, %c0_35] : memref<1x128xf32, #tpu.memory_space<vmem>>, vector<1x128xf32>
    %c0_36 = arith.constant 0 : index
    %c0_37 = arith.constant 0 : index
    %111 = vector.load %arg8[%c0_36, %c0_37] : memref<1x128xf32, #tpu.memory_space<vmem>>, vector<1x128xf32>
    %cst_38 = arith.constant dense<0.000000e+00> : vector<8xf32>
    %112 = vector.multi_reduction <add>, %109, %cst_38 [1] : vector<8x128xf32> to vector<8xf32>
    %113 = vector.shape_cast %112 : vector<8xf32> to vector<8x1xf32>
    %cst_39 = arith.constant 1.280000e+02 : f32
    %114 = vector.broadcast %cst_39 : f32 to vector<8x1xf32>
    %115 = arith.divf %113, %114 : vector<8x1xf32>
    %116 = vector.broadcast %115 : vector<8x1xf32> to vector<8x128xf32>
    %117 = arith.subf %109, %116 : vector<8x128xf32>
    %118 = arith.mulf %117, %117 : vector<8x128xf32>
    %cst_40 = arith.constant dense<0.000000e+00> : vector<8xf32>
    %119 = vector.multi_reduction <add>, %118, %cst_40 [1] : vector<8x128xf32> to vector<8xf32>
    %120 = vector.shape_cast %119 : vector<8xf32> to vector<8x1xf32>
    %cst_41 = arith.constant 1.280000e+02 : f32
    %121 = vector.broadcast %cst_41 : f32 to vector<8x1xf32>
    %122 = arith.divf %120, %121 : vector<8x1xf32>
    %123 = vector.broadcast %115 : vector<8x1xf32> to vector<8x128xf32>
    %124 = arith.subf %109, %123 : vector<8x128xf32>
    %cst_42 = arith.constant 9.99999974E-6 : f32
    %125 = vector.broadcast %cst_42 : f32 to vector<8x1xf32>
    %126 = arith.addf %122, %125 : vector<8x1xf32>
    %127 = math.rsqrt %126 : vector<8x1xf32>
    %128 = vector.broadcast %127 : vector<8x1xf32> to vector<8x128xf32>
    %129 = arith.mulf %124, %128 : vector<8x128xf32>
    %130 = vector.broadcast %110 : vector<1x128xf32> to vector<8x128xf32>
    %131 = arith.mulf %129, %130 : vector<8x128xf32>
    %132 = vector.broadcast %111 : vector<1x128xf32> to vector<8x128xf32>
    %133 = arith.addf %131, %132 : vector<8x128xf32>
    %134 = arith.truncf %133 : vector<8x128xf32> to vector<8x128xbf16>
    %c0_43 = arith.constant 0 : index
    %c0_44 = arith.constant 0 : index
    %135 = vector.load %arg9[%c0_43, %c0_44] : memref<128x256xbf16, #tpu.memory_space<vmem>>, vector<128x256xbf16>
    %cst_45 = arith.constant dense<0.000000e+00> : vector<8x256xf32>
    %136 = tpu.matmul %134, %135, %cst_45 {dimension_numbers = #tpu.dot_dimension_numbers<[1], [0], [0], [1], [0, 0, 1, 1], [], []>} : vector<8x128xbf16>, vector<128x256xbf16>, vector<8x256xf32> -> vector<8x256xf32>
    %c0_46 = arith.constant 0 : index
    %c0_47 = arith.constant 0 : index
    %137 = vector.load %arg10[%c0_46, %c0_47] : memref<1x256xf32, #tpu.memory_space<vmem>>, vector<1x256xf32>
    %138 = vector.broadcast %137 : vector<1x256xf32> to vector<8x256xf32>
    %139 = arith.addf %136, %138 : vector<8x256xf32>
    %140 = arith.mulf %139, %139 : vector<8x256xf32>
    %141 = arith.mulf %139, %140 : vector<8x256xf32>
    %cst_48 = arith.constant 4.471500e-02 : f32
    %142 = vector.broadcast %cst_48 : f32 to vector<8x256xf32>
    %143 = arith.mulf %142, %141 : vector<8x256xf32>
    %144 = arith.addf %139, %143 : vector<8x256xf32>
    %cst_49 = arith.constant 0.797884583 : f32
    %145 = vector.broadcast %cst_49 : f32 to vector<8x256xf32>
    %146 = arith.mulf %145, %144 : vector<8x256xf32>
    %147 = math.tanh %146 : vector<8x256xf32>
    %cst_50 = arith.constant 1.000000e+00 : f32
    %148 = vector.broadcast %cst_50 : f32 to vector<8x256xf32>
    %149 = arith.addf %148, %147 : vector<8x256xf32>
    %cst_51 = arith.constant 5.000000e-01 : f32
    %150 = vector.broadcast %cst_51 : f32 to vector<8x256xf32>
    %151 = arith.mulf %150, %149 : vector<8x256xf32>
    %152 = arith.mulf %139, %151 : vector<8x256xf32>
    %153 = arith.truncf %152 : vector<8x256xf32> to vector<8x256xbf16>
    %c0_52 = arith.constant 0 : index
    %c0_53 = arith.constant 0 : index
    %154 = vector.load %arg11[%c0_52, %c0_53] : memref<256x128xbf16, #tpu.memory_space<vmem>>, vector<256x128xbf16>
    %cst_54 = arith.constant dense<0.000000e+00> : vector<8x128xf32>
    %155 = tpu.matmul %153, %154, %cst_54 {dimension_numbers = #tpu.dot_dimension_numbers<[1], [0], [0], [1], [0, 0, 1, 1], [], []>} : vector<8x256xbf16>, vector<256x128xbf16>, vector<8x128xf32> -> vector<8x128xf32>
    %c0_55 = arith.constant 0 : index
    %c0_56 = arith.constant 0 : index
    %156 = vector.load %arg12[%c0_55, %c0_56] : memref<1x128xf32, #tpu.memory_space<vmem>>, vector<1x128xf32>
    %157 = vector.broadcast %156 : vector<1x128xf32> to vector<8x128xf32>
    %158 = arith.addf %155, %157 : vector<8x128xf32>
    %159 = arith.addf %158, %133 : vector<8x128xf32>
    %c0_57 = arith.constant 0 : index
    %c0_58 = arith.constant 0 : index
    %160 = vector.load %arg13[%c0_57, %c0_58] : memref<1x128xf32, #tpu.memory_space<vmem>>, vector<1x128xf32>
    %c0_59 = arith.constant 0 : index
    %c0_60 = arith.constant 0 : index
    %161 = vector.load %arg14[%c0_59, %c0_60] : memref<1x128xf32, #tpu.memory_space<vmem>>, vector<1x128xf32>
    %cst_61 = arith.constant dense<0.000000e+00> : vector<8xf32>
    %162 = vector.multi_reduction <add>, %159, %cst_61 [1] : vector<8x128xf32> to vector<8xf32>
    %163 = vector.shape_cast %162 : vector<8xf32> to vector<8x1xf32>
    %cst_62 = arith.constant 1.280000e+02 : f32
    %164 = vector.broadcast %cst_62 : f32 to vector<8x1xf32>
    %165 = arith.divf %163, %164 : vector<8x1xf32>
    %166 = vector.broadcast %165 : vector<8x1xf32> to vector<8x128xf32>
    %167 = arith.subf %159, %166 : vector<8x128xf32>
    %168 = arith.mulf %167, %167 : vector<8x128xf32>
    %cst_63 = arith.constant dense<0.000000e+00> : vector<8xf32>
    %169 = vector.multi_reduction <add>, %168, %cst_63 [1] : vector<8x128xf32> to vector<8xf32>
    %170 = vector.shape_cast %169 : vector<8xf32> to vector<8x1xf32>
    %cst_64 = arith.constant 1.280000e+02 : f32
    %171 = vector.broadcast %cst_64 : f32 to vector<8x1xf32>
    %172 = arith.divf %170, %171 : vector<8x1xf32>
    %173 = vector.broadcast %165 : vector<8x1xf32> to vector<8x128xf32>
    %174 = arith.subf %159, %173 : vector<8x128xf32>
    %cst_65 = arith.constant 9.99999974E-6 : f32
    %175 = vector.broadcast %cst_65 : f32 to vector<8x1xf32>
    %176 = arith.addf %172, %175 : vector<8x1xf32>
    %177 = math.rsqrt %176 : vector<8x1xf32>
    %178 = vector.broadcast %177 : vector<8x1xf32> to vector<8x128xf32>
    %179 = arith.mulf %174, %178 : vector<8x128xf32>
    %180 = vector.broadcast %160 : vector<1x128xf32> to vector<8x128xf32>
    %181 = arith.mulf %179, %180 : vector<8x128xf32>
    %182 = vector.broadcast %161 : vector<1x128xf32> to vector<8x128xf32>
    %183 = arith.addf %181, %182 : vector<8x128xf32>
    %c0_66 = arith.constant 0 : index
    %c0_67 = arith.constant 0 : index
    %c0_68 = arith.constant 0 : index
    %184 = vector.load %arg15[%c0_66, %c0_67, %c0_68] : memref<1x8x128xf32, #tpu.memory_space<vmem>>, vector<1x8x128xf32>
    %185 = vector.shape_cast %184 : vector<1x8x128xf32> to vector<8x128xf32>
    %186 = vector.shape_cast %183 : vector<8x128xf32> to vector<1x8x128xf32>
    tpu.vector_store %arg15[%c0_66, %c0_67, %c0_68], %186 {strides = array<i32>} : memref<1x8x128xf32, #tpu.memory_space<vmem>>, vector<1x8x128xf32>,
    return
  }
  func.func @transform_0(%arg0: i32) -> (i32, i32, i32) {
    %c0_i32 = arith.constant 0 : i32
    %c0_i32_0 = arith.constant 0 : i32
    %c0_i32_1 = arith.constant 0 : i32
    return %arg0, %c0_i32, %c0_i32_0 : i32, i32, i32
  }
  func.func @transform_1(%arg0: i32) -> (i32, i32, i32) {
    %c0_i32 = arith.constant 0 : i32
    %c0_i32_0 = arith.constant 0 : i32
    %c0_i32_1 = arith.constant 0 : i32
    return %arg0, %c0_i32, %c0_i32_0 : i32, i32, i32
  }
  func.func @transform_2(%arg0: i32) -> (i32, i32) {
    %c0_i32 = arith.constant 0 : i32
    %c0_i32_0 = arith.constant 0 : i32
    %c0_i32_1 = arith.constant 0 : i32
    return %c0_i32, %c0_i32_0 : i32, i32
  }
  func.func @transform_3(%arg0: i32) -> (i32, i32) {
    %c0_i32 = arith.constant 0 : i32
    %c0_i32_0 = arith.constant 0 : i32
    %c0_i32_1 = arith.constant 0 : i32
    return %c0_i32, %c0_i32_0 : i32, i32
  }
  func.func @transform_4(%arg0: i32) -> (i32, i32) {
    %c0_i32 = arith.constant 0 : i32
    %c0_i32_0 = arith.constant 0 : i32
    %c0_i32_1 = arith.constant 0 : i32
    return %c0_i32, %c0_i32_0 : i32, i32
  }
  func.func @transform_5(%arg0: i32) -> (i32, i32) {
    %c0_i32 = arith.constant 0 : i32
    %c0_i32_0 = arith.constant 0 : i32
    %c0_i32_1 = arith.constant 0 : i32
    return %c0_i32, %c0_i32_0 : i32, i32
  }
  func.func @transform_6(%arg0: i32) -> (i32, i32) {
    %c0_i32 = arith.constant 0 : i32
    %c0_i32_0 = arith.constant 0 : i32
    %c0_i32_1 = arith.constant 0 : i32
    return %c0_i32, %c0_i32_0 : i32, i32
  }
  func.func @transform_7(%arg0: i32) -> (i32, i32) {
    %c0_i32 = arith.constant 0 : i32
    %c0_i32_0 = arith.constant 0 : i32
    %c0_i32_1 = arith.constant 0 : i32
    return %c0_i32, %c0_i32_0 : i32, i32
  }
  func.func @transform_8(%arg0: i32) -> (i32, i32) {
    %c0_i32 = arith.constant 0 : i32
    %c0_i32_0 = arith.constant 0 : i32
    %c0_i32_1 = arith.constant 0 : i32
    return %c0_i32, %c0_i32_0 : i32, i32
  }
  func.func @transform_9(%arg0: i32) -> (i32, i32) {
    %c0_i32 = arith.constant 0 : i32
    %c0_i32_0 = arith.constant 0 : i32
    %c0_i32_1 = arith.constant 0 : i32
    return %c0_i32, %c0_i32_0 : i32, i32
  }
  func.func @transform_10(%arg0: i32) -> (i32, i32) {
    %c0_i32 = arith.constant 0 : i32
    %c0_i32_0 = arith.constant 0 : i32
    %c0_i32_1 = arith.constant 0 : i32
    return %c0_i32, %c0_i32_0 : i32, i32
  }
  func.func @transform_11(%arg0: i32) -> (i32, i32) {
    %c0_i32 = arith.constant 0 : i32
    %c0_i32_0 = arith.constant 0 : i32
    %c0_i32_1 = arith.constant 0 : i32
    return %c0_i32, %c0_i32_0 : i32, i32
  }
  func.func @transform_12(%arg0: i32) -> (i32, i32) {
    %c0_i32 = arith.constant 0 : i32
    %c0_i32_0 = arith.constant 0 : i32
    %c0_i32_1 = arith.constant 0 : i32
    return %c0_i32, %c0_i32_0 : i32, i32
  }
  func.func @transform_13(%arg0: i32) -> (i32, i32) {
    %c0_i32 = arith.constant 0 : i32
    %c0_i32_0 = arith.constant 0 : i32
    %c0_i32_1 = arith.constant 0 : i32
    return %c0_i32, %c0_i32_0 : i32, i32
  }
  func.func @transform_14(%arg0: i32) -> (i32, i32, i32) {
    %c0_i32 = arith.constant 0 : i32
    %c0_i32_0 = arith.constant 0 : i32
    %c0_i32_1 = arith.constant 0 : i32
    return %arg0, %c0_i32, %c0_i32_0 : i32, i32, i32
  }
}

module attributes {stable_mosaic.version = 11 : i64} {
  func.func @_decoder_kernel(%arg0: i32, %arg1: memref<16x128xf32, #tpu.memory_space<vmem>>, %arg2: memref<128x128xbf16, #tpu.memory_space<vmem>>, %arg3: memref<1x128xf32, #tpu.memory_space<vmem>>, %arg4: memref<16x128xf32, #tpu.memory_space<vmem>>) attributes {dimension_semantics = [#tpu.dimension_semantics<parallel>], iteration_bounds = array<i64: 4>, scalar_prefetch = 0 : i64, scratch_operands = 0 : i64, tpu.core_type = #tpu.core_type<tc>, window_params = [{pipeline_mode = #tpu.pipeline_mode<synchronous>, transform_indices = @transform_0, window_bounds = array<i64: 16, 128>}, {transform_indices = @transform_1, window_bounds = array<i64: 128, 128>}, {transform_indices = @transform_2, window_bounds = array<i64: 1, 128>}, {transform_indices = @transform_3, window_bounds = array<i64: 16, 128>}]} {
    %c0 = arith.constant 0 : index
    %c0_0 = arith.constant 0 : index
    %0 = vector.load %arg1[%c0, %c0_0] : memref<16x128xf32, #tpu.memory_space<vmem>>, vector<16x128xf32>
    %1 = arith.truncf %0 : vector<16x128xf32> to vector<16x128xbf16>
    %c0_1 = arith.constant 0 : index
    %c0_2 = arith.constant 0 : index
    %2 = vector.load %arg2[%c0_1, %c0_2] : memref<128x128xbf16, #tpu.memory_space<vmem>>, vector<128x128xbf16>
    %cst = arith.constant dense<0.000000e+00> : vector<16x128xf32>
    %3 = tpu.matmul %1, %2, %cst {dimension_numbers = #tpu.dot_dimension_numbers<[1], [1], [0], [0], [0, 0, 1, 0], [], []>} : vector<16x128xbf16>, vector<128x128xbf16>, vector<16x128xf32> -> vector<16x128xf32>
    %c0_3 = arith.constant 0 : index
    %c0_4 = arith.constant 0 : index
    %4 = vector.load %arg3[%c0_3, %c0_4] : memref<1x128xf32, #tpu.memory_space<vmem>>, vector<1x128xf32>
    %5 = vector.broadcast %4 : vector<1x128xf32> to vector<16x128xf32>
    %6 = arith.addf %3, %5 : vector<16x128xf32>
    %c0_5 = arith.constant 0 : index
    %c0_6 = arith.constant 0 : index
    %7 = vector.load %arg4[%c0_5, %c0_6] : memref<16x128xf32, #tpu.memory_space<vmem>>, vector<16x128xf32>
    tpu.vector_store %arg4[%c0_5, %c0_6], %6 {strides = array<i32>} : memref<16x128xf32, #tpu.memory_space<vmem>>, vector<16x128xf32>,
    return
  }
  func.func @transform_0(%arg0: i32) -> (i32, i32) {
    %c0_i32 = arith.constant 0 : i32
    %c0_i32_0 = arith.constant 0 : i32
    %c0_i32_1 = arith.constant 0 : i32
    return %c0_i32, %c0_i32_0 : i32, i32
  }
  func.func @transform_1(%arg0: i32) -> (i32, i32) {
    %c0_i32 = arith.constant 0 : i32
    %c0_i32_0 = arith.constant 0 : i32
    return %arg0, %c0_i32 : i32, i32
  }
  func.func @transform_2(%arg0: i32) -> (i32, i32) {
    %c0_i32 = arith.constant 0 : i32
    %c0_i32_0 = arith.constant 0 : i32
    return %c0_i32, %arg0 : i32, i32
  }
  func.func @transform_3(%arg0: i32) -> (i32, i32) {
    %c0_i32 = arith.constant 0 : i32
    %c0_i32_0 = arith.constant 0 : i32
    return %c0_i32, %arg0 : i32, i32
  }
}

module attributes {stable_mosaic.version = 11 : i64} {
  func.func @_lm_head_kernel(%arg0: memref<16x128xf32, #tpu.memory_space<vmem>>, %arg1: memref<128x128xbf16, #tpu.memory_space<vmem>>, %arg2: memref<1x128xf32, #tpu.memory_space<vmem>>, %arg3: memref<1x128xf32, #tpu.memory_space<vmem>>, %arg4: memref<1x128xf32, #tpu.memory_space<vmem>>, %arg5: memref<16x128xf32, #tpu.memory_space<vmem>>) attributes {dimension_semantics = [], scalar_prefetch = 0 : i64, scratch_operands = 0 : i64, tpu.core_type = #tpu.core_type<tc>} {
    %c0 = arith.constant 0 : index
    %c0_0 = arith.constant 0 : index
    %0 = vector.load %arg0[%c0, %c0_0] : memref<16x128xf32, #tpu.memory_space<vmem>>, vector<16x128xf32>
    %1 = arith.truncf %0 : vector<16x128xf32> to vector<16x128xbf16>
    %c0_1 = arith.constant 0 : index
    %c0_2 = arith.constant 0 : index
    %2 = vector.load %arg1[%c0_1, %c0_2] : memref<128x128xbf16, #tpu.memory_space<vmem>>, vector<128x128xbf16>
    %cst = arith.constant dense<0.000000e+00> : vector<16x128xf32>
    %3 = tpu.matmul %1, %2, %cst {dimension_numbers = #tpu.dot_dimension_numbers<[1], [0], [0], [1], [0, 0, 1, 1], [], []>} : vector<16x128xbf16>, vector<128x128xbf16>, vector<16x128xf32> -> vector<16x128xf32>
    %c0_3 = arith.constant 0 : index
    %c0_4 = arith.constant 0 : index
    %4 = vector.load %arg2[%c0_3, %c0_4] : memref<1x128xf32, #tpu.memory_space<vmem>>, vector<1x128xf32>
    %5 = vector.broadcast %4 : vector<1x128xf32> to vector<16x128xf32>
    %6 = arith.addf %3, %5 : vector<16x128xf32>
    %7 = arith.mulf %6, %6 : vector<16x128xf32>
    %8 = arith.mulf %6, %7 : vector<16x128xf32>
    %cst_5 = arith.constant 4.471500e-02 : f32
    %9 = vector.broadcast %cst_5 : f32 to vector<16x128xf32>
    %10 = arith.mulf %9, %8 : vector<16x128xf32>
    %11 = arith.addf %6, %10 : vector<16x128xf32>
    %cst_6 = arith.constant 0.797884583 : f32
    %12 = vector.broadcast %cst_6 : f32 to vector<16x128xf32>
    %13 = arith.mulf %12, %11 : vector<16x128xf32>
    %14 = math.tanh %13 : vector<16x128xf32>
    %cst_7 = arith.constant 1.000000e+00 : f32
    %15 = vector.broadcast %cst_7 : f32 to vector<16x128xf32>
    %16 = arith.addf %15, %14 : vector<16x128xf32>
    %cst_8 = arith.constant 5.000000e-01 : f32
    %17 = vector.broadcast %cst_8 : f32 to vector<16x128xf32>
    %18 = arith.mulf %17, %16 : vector<16x128xf32>
    %19 = arith.mulf %6, %18 : vector<16x128xf32>
    %c0_9 = arith.constant 0 : index
    %c0_10 = arith.constant 0 : index
    %20 = vector.load %arg3[%c0_9, %c0_10] : memref<1x128xf32, #tpu.memory_space<vmem>>, vector<1x128xf32>
    %c0_11 = arith.constant 0 : index
    %c0_12 = arith.constant 0 : index
    %21 = vector.load %arg4[%c0_11, %c0_12] : memref<1x128xf32, #tpu.memory_space<vmem>>, vector<1x128xf32>
    %cst_13 = arith.constant dense<0.000000e+00> : vector<16xf32>
    %22 = vector.multi_reduction <add>, %19, %cst_13 [1] : vector<16x128xf32> to vector<16xf32>
    %23 = vector.shape_cast %22 : vector<16xf32> to vector<16x1xf32>
    %cst_14 = arith.constant 1.280000e+02 : f32
    %24 = vector.broadcast %cst_14 : f32 to vector<16x1xf32>
    %25 = arith.divf %23, %24 : vector<16x1xf32>
    %26 = vector.broadcast %25 : vector<16x1xf32> to vector<16x128xf32>
    %27 = arith.subf %19, %26 : vector<16x128xf32>
    %28 = arith.mulf %27, %27 : vector<16x128xf32>
    %cst_15 = arith.constant dense<0.000000e+00> : vector<16xf32>
    %29 = vector.multi_reduction <add>, %28, %cst_15 [1] : vector<16x128xf32> to vector<16xf32>
    %30 = vector.shape_cast %29 : vector<16xf32> to vector<16x1xf32>
    %cst_16 = arith.constant 1.280000e+02 : f32
    %31 = vector.broadcast %cst_16 : f32 to vector<16x1xf32>
    %32 = arith.divf %30, %31 : vector<16x1xf32>
    %33 = vector.broadcast %25 : vector<16x1xf32> to vector<16x128xf32>
    %34 = arith.subf %19, %33 : vector<16x128xf32>
    %cst_17 = arith.constant 9.99999974E-6 : f32
    %35 = vector.broadcast %cst_17 : f32 to vector<16x1xf32>
    %36 = arith.addf %32, %35 : vector<16x1xf32>
    %37 = math.rsqrt %36 : vector<16x1xf32>
    %38 = vector.broadcast %37 : vector<16x1xf32> to vector<16x128xf32>
    %39 = arith.mulf %34, %38 : vector<16x128xf32>
    %40 = vector.broadcast %20 : vector<1x128xf32> to vector<16x128xf32>
    %41 = arith.mulf %39, %40 : vector<16x128xf32>
    %42 = vector.broadcast %21 : vector<1x128xf32> to vector<16x128xf32>
    %43 = arith.addf %41, %42 : vector<16x128xf32>
    %c0_18 = arith.constant 0 : index
    %c0_19 = arith.constant 0 : index
    %44 = vector.load %arg5[%c0_18, %c0_19] : memref<16x128xf32, #tpu.memory_space<vmem>>, vector<16x128xf32>
    tpu.vector_store %arg5[%c0_18, %c0_19], %43 {strides = array<i32>} : memref<16x128xf32, #tpu.memory_space<vmem>>, vector<16x128xf32>,
    return
  }
}

</mosaic_0001>

<bundles_post_ra>
// kernel: _lambda_.7
= control target key start
LH: loop header
LB: loop body
LE: loop exit
PB: predicated region body
PF: predicated region fallthrough
CT: control target
= control target key end

     0   :  { %s373_s18 = smov 0   ;;  %s402_s0 = inlined_call_operand.vmem [shape: f32[2,8,128], index: 0, kind: input, shape index: {}]   ;;  %s403_s1 = inlined_call_operand.vmem [shape: f32[8,128], index: 1, kind: input, shape index: {}]   ;;  %s404_s2 = inlined_call_operand.vmem [shape: f32[1,128], index: 2, kind: input, shape index: {}]   ;;  %s405_s3 = inlined_call_operand.vmem [shape: f32[1,128], index: 3, kind: input, shape index: {}]   ;;  %s406_s4 = inlined_call_operand.vmem [shape: f32[1,128], index: 4, kind: input, shape index: {}]   ;;  %s407_s5 = inlined_call_operand.vmem [shape: f32[2,8,128], index: 5, kind: output, shape index: {}]  }
   0x1 LB: > { %s313_s19 = sadd.s32 4294967295, %s341_s18   ;;  %p317_p0 = scmp.ge.s32.totalorder %s341_s18, 1  ;;  %s341_s18 = sphi %s373_s18, %s15_s18  }
   0x2   : > { %p186_p1 = scmp.lt.s32.totalorder %s341_s18, 3 }
   0x4   : > { %p187_p2 = pnand %p317_p0, %p186_p1 }
   0x5   : > { %p212_p3 = scmp.lt.s32.totalorder (!%p187_p2), %s313_s19, 1  ;;  %v221_v0 = vld [vmem:[%s403_s1] sm:$0xff] (!%p187_p2) }
   0x6   : > { %190 = sbr.rel (%p187_p2) target bundleno = 333 (0x14d), region = 40  ;;  %v320_v2 = vld [vmem:[%s404_s2] ss:$0 sm:$0xff] (!%p187_p2) }
   0x7   : > { %v321_v13 = vld [vmem:[%s405_s3] ss:$0 sm:$0xff] (!%p187_p2) }
   0x8   : > { %v322_v15 = vld [vmem:[%s406_s4] ss:$0 sm:$0xff] (!%p187_p2) }
   0xd   : > { %s409_s19 = smov (!%p212_p3, %s313_s19), 1 }
   0xe   : > { %s318_s20 = sshll.u32 %s409_s19, 3 }
   0xf   : > { %s215_s25 = scalar_lea.vmem %s402_s0, %s318_s20  ;;  %s219_s9 = scalar_lea.vmem %s407_s5, %s318_s20 }
  0x10   : > { %v220_v1 = vld [vmem:[%s215_s25] sm:$0xff] }
  0x11   : > { %v222_v3 = vadd.f32 %v221_v0, %v220_v1 }
  0x13   : > { %v230_v4 = vadd.f32 %v320_v2, %v222_v3 }
  0x15   : > { %233 = vadd.xlane.f32.xlu0 %v230_v4 }
  0xa2   : > { %v234_v5 = vpop.xlane.xlu0 %233 }
  0xa3   : > { %v236_v6 = vmul.f32 0.0078125, %v234_v5 }
  0xa5   : > { %v237_v7 = vsub.f32 %v230_v4, %v236_v6 }
  0xa7   : > { %v238_v8 = vmul.f32 %v237_v7, %v237_v7 }
  0xa9   : > { %239 = vadd.xlane.f32.xlu0 %v238_v8 }
 0x136   : > { %v240_v9 = vpop.xlane.xlu0 %239 }
 0x137   : > { %v241_v10 = vmul.f32 0.0078125, %v240_v9 }
 0x139   : > { %v242_v11 = vadd.f32 1e-05, %v241_v10 }
 0x13b   : > { %333 = vrsqrt.f32 %v242_v11 }
 0x145   : > { %v334_v12 = vpop.eup %333 }
 0x146   : > { %v244_v14 = vmul.f32 %v334_v12, %v237_v7 }
 0x148   : > { %v251_v16 = vmul.f32 %v321_v13, %v244_v14 }
 0x14a   : > { %v258_v17 = vadd.f32 %v322_v15, %v251_v16 }
 0x14c   : > { %259 = vst [vmem:[%s219_s9] sm:$0xff] %v258_v17 }
 0x14d PF: > { %s15_s18 = sadd.s32 1, %s341_s18  }
 0x14e   : > { %p12_p4 = scmp.ge.s32.totalorder %s15_s18, 4  }
 0x150   :  { %14 = sbr.rel (!%p12_p4) target bundleno = 1 (0x1), region = 70 }

// kernel: _lambda_.6
= control target key start
LH: loop header
LB: loop body
LE: loop exit
PB: predicated region body
PF: predicated region fallthrough
CT: control target
= control target key end

     0   :  { %13 = vsyncpa [#allocation4], 0  ;;  %s1828_s0 = inlined_call_operand.vmem [shape: f32[8], index: 0, kind: input, shape index: {}]   ;;  %s1829_s1 = inlined_call_operand.<no memory space> [shape: f32[1], index: 1, kind: input, shape index: {}]   ;;  %s1830_s2 = inlined_call_operand.vmem [shape: bf16[16,8,128], index: 2, kind: input, shape index: {}]   ;;  %s1831_s3 = inlined_call_operand.vmem [shape: f32[16,8,128], index: 3, kind: input, shape index: {}]   ;;  %s1832_s4 = inlined_call_operand.vmem [shape: f32[1,128], index: 4, kind: input, shape index: {}]   ;;  %s1833_s5 = inlined_call_operand.vmem [shape: f32[1,128], index: 5, kind: input, shape index: {}]   ;;  %s1834_s6 = inlined_call_operand.vmem [shape: f32[1,128], index: 6, kind: input, shape index: {}]   ;;  %s1835_s7 = inlined_call_operand.vmem [shape: f32[16,128], index: 7, kind: output, shape index: {}]  }
   0x1   :  { %s20_s26 = sshll.u32 %s1828_s0, 4  ;;  %s21_s26 = int_to_ptr.vmem [resolvable:$true] %s20_s26 }
   0x2   :  { %s1102_s27 = scalar_lea.vmem %s21_s26, 16  ;;  %p1107_p1 = scmp.lt.s32.totalorder %s21_s26, %s21_s26 }
   0x3   :  { %p1103_p0 = scmp.ne.s32.totalorder %s21_s26, %s1102_s27  ;;  %p1108_p2 = scmp.lt.s32.totalorder %s1102_s27, %s1102_s27 }
   0x5   :  { %p1109_p3 = por %p1108_p2, %p1107_p1 }
   0x7   :  { %p1110_p4 = pnand %p1109_p3, %p1103_p0 }
   0x9   :  { %1113 = shalt.err (!%p1110_p4)
}
   0xa   :  { %s1116_s28 = smov [#allocation3]  }
   0xb   :  { %23 = dma.vmem_to_smem %s21_s26, 16, %s1116_s28, [#allocation4]  }
   0xc   :  { %1114 = dma.done.wait [#allocation4], 16  }
   0xd   :  { %1115 = vsyncadd [#allocation4], 4294967280 }
   0xe   :  { %39 = sfence }
   0xf   :  { %v1031_v0 = vld [vmem:[%s1830_s2] sm:$0xff]   ;;  %v73_v1 = vld [vmem:[%s1831_s3 + $0x8] sm:$0xff]  ;;  %v74_v5 = vld [vmem:[%s1831_s3 + $0x10] sm:$0xff]  ;;  %s1024_s28 = sld [smem:[#allocation3 + $0x2]]  ;;  %s350_s29 = sld [smem:[#allocation3]]  ;;  %vm977_vm0 = vcmask 1041409  }
  0x10   :  { %v1169_v2 = vld [vmem:[%s1832_s4] ss:$0 sm:$0xff]  ;;  %v1033_v3 = vunpack.c.h.bf16 %v1031_v0  ;;  %v1062_v4 = vld [vmem:[%s1830_s2 + $0x8] sm:$0xff]   ;;  %v82_v11 = vld [vmem:[%s1831_s3 + $0x50] sm:$0xff]  ;;  %v1032_v14 = vunpack.c.l.bf16 %v1031_v0  ;;  %s1025_s9 = sld [smem:[#allocation3 + $0x3]]  ;;  %s1026_s11 = sld [smem:[#allocation3 + $0x4]] }
  0x11   :  { %v1065_v6 = vld [vmem:[%s1830_s2 + $0x20] sm:$0xff]   ;;  %v1036_v7 = vunpack.c.l.bf16 %v1062_v4  ;;  %v81_v9 = vld [vmem:[%s1831_s3 + $0x48] sm:$0xff]  ;;  %v1037_v18 = vunpack.c.h.bf16 %v1062_v4  ;;  %v75_v21 = vld [vmem:[%s1831_s3 + $0x18] sm:$0xff]  ;;  %s1029_s12 = sld [smem:[#allocation3 + $0x7]]  ;;  %vm980_vm1 = vcmask 1042434   ;;  %vm983_vm2 = vcmask 1043459  }
  0x12   :  { %v1049_v8 = vunpack.c.h.bf16 %v1065_v6  ;;  %v1066_v10 = vld [vmem:[%s1830_s2 + $0x28] sm:$0xff]   ;;  %v89_v12 = vadd.f32 %v1033_v3, %v73_v1  ;;  %v72_v17 = vld [vmem:[%s1831_s3] sm:$0xff]  ;;  %v1048_v25 = vunpack.c.l.bf16 %v1065_v6  ;;  %v1063_v30 = vld [vmem:[%s1830_s2 + $0x10] sm:$0xff]   ;;  %vm986_vm3 = vcmask 1044484  }
  0x13   :  { %v1052_v13 = vunpack.c.l.bf16 %v1066_v10  ;;  %v90_v15 = vadd.f32 %v1036_v7, %v74_v5  ;;  %v88_v24 = vadd.f32 %v1032_v14, %v72_v17  ;;  %v91_v27 = vadd.f32 %v1037_v18, %v75_v21  ;;  %v80_v28 = vld [vmem:[%s1831_s3 + $0x40] sm:$0xff]  ;;  %v83_v31 = vld [vmem:[%s1831_s3 + $0x58] sm:$0xff]  ;;  %v1067_v32 = vld [vmem:[%s1830_s2 + $0x30] sm:$0xff]  }
  0x14   :  { %v97_v16 = vadd.f32 %v1049_v8, %v81_v9  ;;  %v1193_v19 = vadd.f32 %v1169_v2, %v89_v12  ;;  %v1053_v29 = vunpack.c.h.bf16 %v1066_v10  ;;  %v96_v34 = vadd.f32 %v1048_v25, %v80_v28  ;;  %v76_v38 = vld [vmem:[%s1831_s3 + $0x20] sm:$0xff]  ;;  %v77_v46 = vld [vmem:[%s1831_s3 + $0x28] sm:$0xff]  ;;  %v1064_v48 = vld [vmem:[%s1830_s2 + $0x18] sm:$0xff]  }
  0x15   :  { %v98_v20 = vadd.f32 %v1052_v13, %v82_v11  ;;  %v1199_v22 = vadd.f32 %v1169_v2, %v90_v15  ;;  %v1223_v33 = vadd.f32 %v1169_v2, %v88_v24  ;;  %v1040_v35 = vunpack.c.l.bf16 %v1063_v30  ;;  %v84_v40 = vld [vmem:[%s1831_s3 + $0x60] sm:$0xff]  ;;  %v85_v49 = vld [vmem:[%s1831_s3 + $0x68] sm:$0xff]  ;;  %v1068_v50 = vld [vmem:[%s1830_s2 + $0x38] sm:$0xff]  }
  0x16   :  { %131 = vadd.xlane.f32.xlu0 %v1193_v19  ;;  %v1203_v23 = vadd.f32 %v1169_v2, %v97_v16  ;;  %v1227_v36 = vadd.f32 %v1169_v2, %v91_v27  ;;  %v99_v37 = vadd.f32 %v1053_v29, %v83_v31  ;;  %v1056_v39 = vunpack.c.l.bf16 %v1067_v32  ;;  %v78_v56 = vld [vmem:[%s1831_s3 + $0x30] sm:$0xff]  ;;  %v79_v0 = vld [vmem:[%s1831_s3 + $0x38] sm:$0xff] }
  0x17   :  { %133 = vadd.xlane.f32.xlu1 %v1199_v22  ;;  %v1207_v26 = vadd.f32 %v1169_v2, %v98_v20  ;;  %v1237_v41 = vadd.f32 %v1169_v2, %v96_v34  ;;  %v92_v42 = vadd.f32 %v1040_v35, %v76_v38  ;;  %v1041_v43 = vunpack.c.h.bf16 %v1063_v30  ;;  %v86_v58 = vld [vmem:[%s1831_s3 + $0x70] sm:$0xff]  ;;  %v87_v3 = vld [vmem:[%s1831_s3 + $0x78] sm:$0xff]  ;;  %s1023_s3 = sld [smem:[#allocation3 + $0x1]] }
  0x18   :  { %v1241_v44 = vadd.f32 %v1169_v2, %v99_v37  ;;  %v100_v45 = vadd.f32 %v1056_v39, %v84_v40  ;;  %v1057_v47 = vunpack.c.h.bf16 %v1067_v32  ;;  %v1044_v53 = vunpack.c.l.bf16 %v1064_v48 }
  0x19   :  { %v1257_v51 = vadd.f32 %v1169_v2, %v92_v42  ;;  %v93_v52 = vadd.f32 %v1041_v43, %v77_v46  ;;  %v1060_v57 = vunpack.c.l.bf16 %v1068_v50  ;;  %v1045_v61 = vunpack.c.h.bf16 %v1064_v48 }
  0x1a   :  { %147 = vadd.xlane.f32.xlu0 %v1203_v23  ;;  %v1261_v54 = vadd.f32 %v1169_v2, %v100_v45  ;;  %v101_v55 = vadd.f32 %v1057_v47, %v85_v49  ;;  %v94_v60 = vadd.f32 %v1044_v53, %v78_v56  ;;  %v1061_v1 = vunpack.c.h.bf16 %v1068_v50 }
  0x1b   :  { %149 = vadd.xlane.f32.xlu1 %v1207_v26  ;;  %v1271_v59 = vadd.f32 %v1169_v2, %v93_v52  ;;  %v102_v63 = vadd.f32 %v1060_v57, %v86_v58  ;;  %v95_v5 = vadd.f32 %v1045_v61, %v79_v0  ;;  %vm989_vm4 = vcmask 1045509  }
  0x1c   :  { %v1275_v62 = vadd.f32 %v1169_v2, %v101_v55  ;;  %v1285_v4 = vadd.f32 %v1169_v2, %v94_v60  ;;  %v103_v7 = vadd.f32 %v1061_v1, %v87_v3  ;;  %vm992_vm5 = vcmask 1046534  }
  0x1d   :  { %v1289_v6 = vadd.f32 %v1169_v2, %v102_v63  ;;  %v1293_v8 = vadd.f32 %v1169_v2, %v95_v5  ;;  %vm995_vm6 = vcmask 1047559  }
  0x1e   :  { %129 = vadd.xlane.f32.xlu0 %v1223_v33  ;;  %v1297_v9 = vadd.f32 %v1169_v2, %v103_v7 }
  0x1f   :  { %135 = vadd.xlane.f32.xlu1 %v1227_v36 }
  0x22   :  { %145 = vadd.xlane.f32.xlu0 %v1237_v41 }
  0x23   :  { %151 = vadd.xlane.f32.xlu1 %v1241_v44 }
  0x26   :  { %137 = vadd.xlane.f32.xlu0 %v1257_v51 }
  0x27   :  { %153 = vadd.xlane.f32.xlu1 %v1261_v54 }
  0x2a   :  { %139 = vadd.xlane.f32.xlu0 %v1271_v59 }
  0x2b   :  { %155 = vadd.xlane.f32.xlu1 %v1275_v62 }
  0x2e   :  { %141 = vadd.xlane.f32.xlu0 %v1285_v4 }
  0x2f   :  { %157 = vadd.xlane.f32.xlu1 %v1289_v6 }
  0x32   :  { %143 = vadd.xlane.f32.xlu0 %v1293_v8 }
  0x33   :  { %159 = vadd.xlane.f32.xlu1 %v1297_v9 }
  0xa3   :  { %v132_v10 = vpop.xlane.xlu0 %131 }
  0xa4   :  { %v163_v11 = vmul.f32 0.0078125, %v132_v10  ;;  %v134_v12 = vpop.xlane.xlu1 %133 }
  0xa5   :  { %v164_v13 = vmul.f32 0.0078125, %v134_v12 }
  0xa6   :  { %v1302_v14 = vsub.f32 %v1193_v19, %v163_v11 }
  0xa7   :  { %v1305_v15 = vsub.f32 %v1199_v22, %v164_v13  ;;  %v148_v16 = vpop.xlane.xlu0 %147 }
  0xa8   :  { %v171_v17 = vmul.f32 0.0078125, %v148_v16  ;;  %v195_v2 = vmul.f32 %v1302_v14, %v1302_v14  ;;  %v150_v18 = vpop.xlane.xlu1 %149 }
  0xa9   :  { %v172_v20 = vmul.f32 0.0078125, %v150_v18  ;;  %v196_v24 = vmul.f32 %v1305_v15, %v1305_v15 }
  0xaa   :  { %v1310_v21 = vsub.f32 %v1203_v23, %v171_v17  ;;  %212 = vadd.xlane.f32.xlu0 %v195_v2 }
  0xab   :  { %v1315_v19 = vsub.f32 %v1207_v26, %v172_v20  ;;  %v130_v25 = vpop.xlane.xlu0 %129 }
  0xac   :  { %v162_v22 = vmul.f32 0.0078125, %v130_v25  ;;  %v203_v27 = vmul.f32 %v1310_v21, %v1310_v21  ;;  %v136_v28 = vpop.xlane.xlu1 %135 }
  0xad   :  { %v165_v29 = vmul.f32 0.0078125, %v136_v28  ;;  %v204_v23 = vmul.f32 %v1315_v19, %v1315_v19  ;;  %v1384_v28 = vld [vmem:[%s1833_s5] ss:$0 sm:$0xff]  ;;  %s1027_s5 = sld [smem:[#allocation3 + $0x5]] }
  0xae   :  { %v1320_v30 = vsub.f32 %v1223_v33, %v162_v22  ;;  %228 = vadd.xlane.f32.xlu1 %v203_v27  ;;  %214 = vadd.xlane.f32.xlu0 %v196_v24 }
  0xaf   :  { %v1325_v31 = vsub.f32 %v1227_v36, %v165_v29  ;;  %v146_v26 = vpop.xlane.xlu0 %145 }
  0xb0   :  { %v170_v32 = vmul.f32 0.0078125, %v146_v26  ;;  %v194_v34 = vmul.f32 %v1320_v30, %v1320_v30  ;;  %v152_v35 = vpop.xlane.xlu1 %151  ;;  %v1390_v26 = vld [vmem:[%s1834_s6] ss:$0 sm:$0xff]  ;;  %s1028_s6 = sld [smem:[#allocation3 + $0x6]] }
  0xb1   :  { %v173_v37 = vmul.f32 0.0078125, %v152_v35  ;;  %v197_v33 = vmul.f32 %v1325_v31, %v1325_v31 }
  0xb2   :  { %v1330_v38 = vsub.f32 %v1237_v41, %v170_v32  ;;  %230 = vadd.xlane.f32.xlu1 %v204_v23  ;;  %210 = vadd.xlane.f32.xlu0 %v194_v34 }
  0xb3   :  { %v1335_v39 = vsub.f32 %v1241_v44, %v173_v37  ;;  %v138_v36 = vpop.xlane.xlu0 %137  ;;  %v1393_v37 = vstv %s1023_s3 }
  0xb4   :  { %v166_v40 = vmul.f32 0.0078125, %v138_v36  ;;  %v202_v42 = vmul.f32 %v1330_v38, %v1330_v38  ;;  %v154_v43 = vpop.xlane.xlu1 %153 }
  0xb5   :  { %v174_v45 = vmul.f32 0.0078125, %v154_v43  ;;  %v205_v41 = vmul.f32 %v1335_v39, %v1335_v39 }
  0xb6   :  { %v1340_v46 = vsub.f32 %v1257_v51, %v166_v40  ;;  %216 = vadd.xlane.f32.xlu1 %v197_v33  ;;  %226 = vadd.xlane.f32.xlu0 %v202_v42  ;;  %v1395_v33 = vstv %s1024_s28 }
  0xb7   :  { %v1345_v47 = vsub.f32 %v1261_v54, %v174_v45  ;;  %v140_v44 = vpop.xlane.xlu0 %139  ;;  %v1401_v45 = vstv %s350_s29 }
  0xb8   :  { %v167_v48 = vmul.f32 0.0078125, %v140_v44  ;;  %v198_v49 = vmul.f32 %v1340_v46, %v1340_v46  ;;  %v156_v50 = vpop.xlane.xlu1 %155 }
  0xb9   :  { %v175_v52 = vmul.f32 0.0078125, %v156_v50  ;;  %v206_v51 = vmul.f32 %v1345_v47, %v1345_v47 }
  0xba   :  { %v1350_v53 = vsub.f32 %v1271_v59, %v167_v48  ;;  %232 = vadd.xlane.f32.xlu1 %v205_v41  ;;  %218 = vadd.xlane.f32.xlu0 %v198_v49  ;;  %v1407_v48 = vstv %s1025_s9 }
  0xbb   :  { %v1355_v55 = vsub.f32 %v1275_v62, %v175_v52  ;;  %v142_v54 = vpop.xlane.xlu0 %141 }
  0xbc   :  { %v168_v56 = vmul.f32 0.0078125, %v142_v54  ;;  %v199_v57 = vmul.f32 %v1350_v53, %v1350_v53  ;;  %v158_v58 = vpop.xlane.xlu1 %157 }
  0xbd   :  { %v176_v60 = vmul.f32 0.0078125, %v158_v58  ;;  %v207_v59 = vmul.f32 %v1355_v55, %v1355_v55 }
  0xbe   :  { %v1360_v61 = vsub.f32 %v1285_v4, %v168_v56  ;;  %234 = vadd.xlane.f32.xlu1 %v206_v51  ;;  %220 = vadd.xlane.f32.xlu0 %v199_v57 }
  0xbf   :  { %v1365_v63 = vsub.f32 %v1289_v6, %v176_v60  ;;  %v144_v62 = vpop.xlane.xlu0 %143 }
  0xc0   :  { %v169_v0 = vmul.f32 0.0078125, %v144_v62  ;;  %v200_v1 = vmul.f32 %v1360_v61, %v1360_v61  ;;  %v160_v3 = vpop.xlane.xlu1 %159 }
  0xc1   :  { %v177_v5 = vmul.f32 0.0078125, %v160_v3  ;;  %v208_v4 = vmul.f32 %v1365_v63, %v1365_v63 }
  0xc2   :  { %v1370_v7 = vsub.f32 %v1293_v8, %v169_v0  ;;  %236 = vadd.xlane.f32.xlu1 %v207_v59  ;;  %222 = vadd.xlane.f32.xlu0 %v200_v1  ;;  %v1418_v59 = vstv %s1026_s11 }
  0xc3   :  { %v1375_v10 = vsub.f32 %v1297_v9, %v177_v5 }
  0xc4   :  { %v201_v6 = vmul.f32 %v1370_v7, %v1370_v7 }
  0xc5   :  { %v209_v11 = vmul.f32 %v1375_v10, %v1375_v10 }
  0xc6   :  { %238 = vadd.xlane.f32.xlu1 %v208_v4  ;;  %224 = vadd.xlane.f32.xlu0 %v201_v6  ;;  %v1425_v6 = vstv %s1027_s5 }
  0xca   :  { %240 = vadd.xlane.f32.xlu1 %v209_v11 }
 0x137   :  { %v213_v12 = vpop.xlane.xlu0 %212 }
 0x138   :  { %v243_v8 = vmul.f32 0.0078125, %v213_v12 }
 0x13a   :  { %v259_v13 = vadd.f32 1e-05, %v243_v8 }
 0x13b   :  { %v229_v16 = vpop.xlane.xlu1 %228  ;;  %v215_v17 = vpop.xlane.xlu0 %214 }
 0x13c   :  { %1070 = vrsqrt.f32 %v259_v13  ;;  %v251_v2 = vmul.f32 0.0078125, %v229_v16  ;;  %v244_v18 = vmul.f32 0.0078125, %v215_v17 }
 0x13e   :  { %v267_v20 = vadd.f32 1e-05, %v251_v2  ;;  %v260_v9 = vadd.f32 1e-05, %v244_v18 }
 0x13f   :  { %v211_v24 = vpop.xlane.xlu0 %210  ;;  %v231_v25 = vpop.xlane.xlu1 %230 }
 0x140   :  { %1072 = vrsqrt.f32 %v267_v20  ;;  %v242_v22 = vmul.f32 0.0078125, %v211_v24  ;;  %v252_v29 = vmul.f32 0.0078125, %v231_v25 }
 0x141   :  { %1074 = vrsqrt.f32 %v260_v9 }
 0x142   :  { %v258_v34 = vadd.f32 1e-05, %v242_v22  ;;  %v268_v36 = vadd.f32 1e-05, %v252_v29  ;;  %v1438_v22 = vstv %s1028_s6 }
 0x143   :  { %v217_v42 = vpop.xlane.xlu1 %216  ;;  %v227_v60 = vpop.xlane.xlu0 %226 }
 0x144   :  { %1076 = vrsqrt.f32 %v258_v34  ;;  %v245_v49 = vmul.f32 0.0078125, %v217_v42 }
 0x145   :  { %1078 = vrsqrt.f32 %v268_v36 }
 0x146   :  { %v1071_v27 = vpop.eup %1070  ;;  %v261_v62 = vadd.f32 1e-05, %v245_v49 }
 0x147   :  { %v291_v23 = vmul.f32 %v1071_v27, %v1302_v14  ;;  %v233_v25 = vpop.xlane.xlu1 %232 }
 0x148   :  { %1080 = vrsqrt.f32 %v261_v62 }
 0x149   :  { %v313_v32 = vmul.f32 %v1384_v28, %v291_v23 }
 0x14a   :  { %v1073_v35 = vpop.eup %1072 }
 0x14b   :  { %v1398_v40 = vadd.f32 %v1390_v26, %v313_v32  ;;  %v299_v14 = vmul.f32 %v1073_v35, %v1310_v21  ;;  %v1075_v43 = vpop.eup %1074  ;;  %v219_v32 = vpop.xlane.xlu0 %218 }
 0x14c   :  { %v292_v51 = vmul.f32 %v1075_v43, %v1305_v15  ;;  %v250_v15 = vmul.f32 0.0078125, %v227_v60 }
 0x14d   :  { %v371_v41 = vmul.f32 %v1393_v37, %v1398_v40  ;;  %v453_v44 = vmul.f32 %v1395_v33, %v1398_v40  ;;  %v353_v50 = vmul.f32 %v1401_v45, %v1398_v40  ;;  %v321_v52 = vmul.f32 %v1384_v28, %v299_v14 }
 0x14e   :  { %v535_v57 = vmul.f32 %v1407_v48, %v1398_v40  ;;  %v314_v3 = vmul.f32 %v1384_v28, %v292_v51  ;;  %v617_v4 = vmul.f32 %v1418_v59, %v1398_v40  ;;  %v1077_v12 = vpop.eup %1076  ;;  %v266_v18 = vadd.f32 1e-05, %v250_v15  ;;  %v235_v51 = vpop.xlane.xlu1 %234 }
 0x14f   :  { %v403_v21 = vrot.slane %v371_v41, 1  ;;  %v485_v56 = vrot.slane %v453_v44, 2  ;;  %v1416_v58 = vadd.f32 %v1390_v26, %v321_v52  ;;  %v1079_v16 = vpop.eup %1078  ;;  %v699_v9 = vmul.f32 %v1425_v6, %v1398_v40  ;;  %v221_v15 = vpop.xlane.xlu0 %220 }
 0x150   :  { %v567_v5 = vrot.slane %v535_v57, 3  ;;  %v1428_v13 = vadd.f32 %v1390_v26, %v314_v3  ;;  %v649_v20 = vrot.slane %v617_v4, 4  ;;  %v290_v29 = vmul.f32 %v1077_v12, %v1320_v30 }
 0x151   :  { %v435_v54 = vadd.f32 %v403_v21, %v353_v50  ;;  %v379_v1 = vmul.f32 %v1393_v37, %v1416_v58  ;;  %v361_v17 = vmul.f32 %v1401_v45, %v1416_v58  ;;  %v461_v2 = vmul.f32 %v1395_v33, %v1416_v58 }
 0x152   :  { %v372_v24 = vmul.f32 %v1393_v37, %v1428_v13  ;;  %v543_v35 = vmul.f32 %v1407_v48, %v1416_v58  ;;  %v300_v36 = vmul.f32 %v1079_v16, %v1315_v19  ;;  %1082 = vrsqrt.f32 %v266_v18 }
 0x153   :  { %v517_v0 = vadd.f32 %v485_v56, %v435_v54  ;;  %v411_v11 = vrot.slane %v379_v1, 1  ;;  %v493_v34 = vrot.slane %v461_v2, 2  ;;  %v731_v14 = vrot.slane %v699_v9, 5  ;;  %v1081_v54 = vpop.eup %1080 }
 0x154   :  { %v781_v42 = vmul.f32 %v1438_v22, %v1398_v40  ;;  %v404_v43 = vrot.slane %v372_v24, 1  ;;  %v253_v41 = vmul.f32 0.0078125, %v233_v25  ;;  %v1446_v44 = vstv %s1029_s12 }
 0x155   :  { %v599_v8 = vadd.f32 %v567_v5, %v517_v0  ;;  %v443_v27 = vadd.f32 %v411_v11, %v361_v17  ;;  %v312_v30 = vmul.f32 %v1384_v28, %v290_v29  ;;  %v246_v50 = vmul.f32 0.0078125, %v219_v32 }
 0x156   :  { %v354_v52 = vmul.f32 %v1401_v45, %v1428_v13  ;;  %v454_v19 = vmul.f32 %v1395_v33, %v1428_v13  ;;  %v575_v56 = vrot.slane %v543_v35, 3  ;;  %v625_v57 = vmul.f32 %v1418_v59, %v1416_v58 }
 0x157   :  { %v681_v23 = vadd.f32 %v649_v20, %v599_v8  ;;  %v525_v49 = vadd.f32 %v493_v34, %v443_v27  ;;  %v322_v60 = vmul.f32 %v1384_v28, %v300_v36  ;;  %v813_v62 = vrot.slane %v781_v42, 6 }
 0x158   :  { %v863_v0 = vmul.f32 %v1446_v44, %v1398_v40  ;;  %v436_v1 = vadd.f32 %v404_v43, %v354_v52  ;;  %v269_v3 = vadd.f32 1e-05, %v253_v41  ;;  %v1459_v4 = vadd.f32 %v1390_v26, %v312_v30 }
 0x159   :  { %v763_v21 = vadd.f32 %v731_v14, %v681_v23  ;;  %v607_v5 = vadd.f32 %v575_v56, %v525_v49  ;;  %v262_v11 = vadd.f32 1e-05, %v246_v50  ;;  %v254_v12 = vmul.f32 0.0078125, %v235_v51 }
 0x15a   :  { %v486_v16 = vrot.slane %v454_v19, 2  ;;  %v536_v17 = vmul.f32 %v1407_v48, %v1428_v13  ;;  %v293_v2 = vmul.f32 %v1081_v54, %v1325_v31  ;;  %v657_v18 = vrot.slane %v625_v57, 4 }
 0x15b   :  { %v845_v8 = vadd.f32 %v813_v62, %v763_v21  ;;  %v707_v40 = vmul.f32 %v1425_v6, %v1416_v58  ;;  %v344_v20 = vadd.f32 %v1390_v26, %v322_v60  ;;  %v247_v9 = vmul.f32 0.0078125, %v221_v15 }
 0x15c   :  { %v895_v24 = vrot.slane %v863_v0, 7  ;;  %v789_v25 = vmul.f32 %v1438_v22, %v1416_v58  ;;  %v518_v27 = vadd.f32 %v486_v16, %v436_v1  ;;  %1084 = vrsqrt.f32 %v269_v3  ;;  %v1083_v29 = vpop.eup %1082 }
 0x15d   :  { %v1472_v23 = vstv %s1829_s1  ;;  %v689_v31 = vadd.f32 %v657_v18, %v607_v5  ;;  %v370_v32 = vmul.f32 %v1393_v37, %v1459_v4  ;;  %1086 = vrsqrt.f32 %v262_v11 }
 0x15e   :  { %v927_v34 = vadd.f32 %v895_v24, %v845_v8  ;;  %v568_v35 = vrot.slane %v536_v17, 3  ;;  %v618_v36 = vmul.f32 %v1418_v59, %v1428_v13  ;;  %v315_v14 = vmul.f32 %v1384_v28, %v293_v2 }
 0x15f   :  { %v739_v42 = vrot.slane %v707_v40, 5  ;;  %v380_v43 = vmul.f32 %v1393_v37, %v344_v20  ;;  %v1480_v41 = vadd.f32 1e-05, %v254_v12  ;;  %v1482_v49 = vadd.f32 1e-05, %v247_v9 }
 0x160   :  { %v821_v30 = vrot.slane %v789_v25, 6  ;;  %v871_v50 = vmul.f32 %v1446_v44, %v1416_v58  ;;  %v600_v21 = vadd.f32 %v568_v35, %v518_v27  ;;  %v298_v52 = vmul.f32 %v1083_v29, %v1330_v38 }
 0x161   :  { %v771_v19 = vadd.f32 %v739_v42, %v689_v31  ;;  %v700_v51 = vmul.f32 %v1425_v6, %v1428_v13  ;;  %v782_v54 = vmul.f32 %v1438_v22, %v1428_v13  ;;  %v402_v56 = vrot.slane %v370_v32, 1 }
 0x162   :  { %v1492_v57 = vadd.f32 %v1472_v23, %v927_v34  ;;  %v650_v60 = vrot.slane %v618_v36, 4  ;;  %v864_v62 = vmul.f32 %v1446_v44, %v1428_v13  ;;  %v1497_v58 = vadd.f32 %v1390_v26, %v315_v14 }
 0x163   :  { %v412_v0 = vrot.slane %v380_v43, 1  ;;  %v462_v38 = vmul.f32 %v1395_v33, %v344_v20  ;;  %v352_v1 = vmul.f32 %v1401_v45, %v1459_v4  ;;  %v452_v3 = vmul.f32 %v1395_v33, %v1459_v4 }
 0x164   :  { %v903_v15 = vrot.slane %v871_v50, 7  ;;  %v682_v5 = vadd.f32 %v650_v60, %v600_v21  ;;  %v373_v11 = vmul.f32 %v1393_v37, %v1497_v58  ;;  %v320_v12 = vmul.f32 %v1384_v28, %v298_v52 }
 0x165   :  { %v853_v13 = vadd.f32 %v821_v30, %v771_v19  ;;  %v732_v8 = vrot.slane %v700_v51, 5  ;;  %v362_v16 = vmul.f32 %v1401_v45, %v344_v20  ;;  %v434_v17 = vadd.f32 %v402_v56, %v352_v1 }
 0x166   :  { %v1085_v2 = vpop.eup %1084  ;;  %v976_v18 = vrot.slane %v1492_v57, 7  ;;  %v814_v40 = vrot.slane %v782_v54, 6  ;;  %v896_v9 = vrot.slane %v864_v62, 7  ;;  %v544_v24 = vmul.f32 %v1407_v48, %v344_v20 }
 0x167   :  { %v1087_v25 = vpop.eup %1086  ;;  %v444_v27 = vadd.f32 %v412_v0, %v362_v16  ;;  %v494_v29 = vrot.slane %v462_v38, 2  ;;  %v484_v31 = vrot.slane %v452_v3, 2  ;;  %v534_v32 = vmul.f32 %v1407_v48, %v1459_v4 }
 0x168   :  { %v764_v34 = vadd.f32 %v732_v8, %v682_v5  ;;  %v626_v35 = vmul.f32 %v1418_v59, %v344_v20  ;;  %v405_v36 = vrot.slane %v373_v11, 1  ;;  %v1514_v14 = vadd.f32 %v1390_v26, %v320_v12 }
 0x169   :  { %v935_v42 = vadd.f32 %v903_v15, %v853_v13  ;;  %v708_v43 = vmul.f32 %v1425_v6, %v344_v20  ;;  %v1518_v30 = vmul.f32 %v1438_v22, %v344_v20  ;;  %v516_v50 = vadd.f32 %v484_v31, %v434_v17 }
 0x16a   :  { %v1521_v21 = vmul.f32 %v1446_v44, %v344_v20  ;;  %v355_v52 = vmul.f32 %v1401_v45, %v1497_v58  ;;  %v455_v19 = vmul.f32 %v1395_v33, %v1497_v58  ;;  %v301_v51 = vmul.f32 %v1085_v2, %v1335_v39 }
 0x16b   :  { %v526_v54 = vadd.f32 %v494_v29, %v444_v27  ;;  %v576_v56 = vrot.slane %v544_v24, 3  ;;  %v566_v60 = vrot.slane %v534_v32, 3  ;;  %v616_v62 = vmul.f32 %v1418_v59, %v1459_v4 }
 0x16c   :  { %v846_v0 = vadd.f32 %v814_v40, %v764_v34  ;;  %v658_v38 = vrot.slane %v626_v35, 4  ;;  %v437_v1 = vadd.f32 %v405_v36, %v355_v52  ;;  %v378_v20 = vmul.f32 %v1393_v37, %v1514_v14 }
 0x16d   :  { %v1533_v3 = vadd.f32 %v1472_v23, %v935_v42  ;;  %v740_v15 = vrot.slane %v708_v43, 5  ;;  %v822_v5 = vrot.slane %v1518_v30, 6  ;;  %v598_v11 = vadd.f32 %v566_v60, %v516_v50 }
 0x16e   :  { %v904_v39 = vrot.slane %v1521_v21, 7  ;;  %v487_v12 = vrot.slane %v455_v19, 2  ;;  %v537_v13 = vmul.f32 %v1407_v48, %v1497_v58  ;;  %v323_v8 = vmul.f32 %v1384_v28, %v301_v51 }
 0x16f   :  { %v608_v16 = vadd.f32 %v576_v56, %v526_v54  ;;  %v648_v17 = vrot.slane %v616_v62, 4  ;;  %v698_v2 = vmul.f32 %v1425_v6, %v1459_v4  ;;  %v294_v40 = vmul.f32 %v1087_v25, %v1340_v46 }
 0x170   :  { %v928_v24 = vadd.f32 %v896_v9, %v846_v0  ;;  %v780_v27 = vmul.f32 %v1438_v22, %v1459_v4  ;;  %v519_v29 = vadd.f32 %v487_v12, %v437_v1  ;;  %v410_v31 = vrot.slane %v378_v20, 1 }
 0x171   :  { %v680_v32 = vadd.f32 %v648_v17, %v598_v11  ;;  %v619_v34 = vmul.f32 %v1418_v59, %v1497_v58  ;;  %v1548_v35 = vadd.f32 %v1390_v26, %v323_v8  ;;  %1088 = vrsqrt.f32 %v1480_v41 }
 0x172   :  { %v569_v36 = vrot.slane %v537_v13, 3  ;;  %v360_v42 = vmul.f32 %v1401_v45, %v1514_v14  ;;  %v460_v46 = vmul.f32 %v1395_v33, %v1514_v14  ;;  %1090 = vrsqrt.f32 %v1482_v49 }
 0x173   :  { %v690_v9 = vadd.f32 %v658_v38, %v608_v16  ;;  %v730_v25 = vrot.slane %v698_v2, 5  ;;  %v862_v43 = vmul.f32 %v1446_v44, %v1459_v4  ;;  %v316_v50 = vmul.f32 %v1384_v28, %v294_v40  ;;  %v237_v2 = vpop.xlane.xlu1 %236 }
 0x174   :  { %v601_v52 = vadd.f32 %v569_v36, %v519_v29  ;;  %v701_v41 = vmul.f32 %v1425_v6, %v1497_v58  ;;  %v783_v19 = vmul.f32 %v1438_v22, %v1497_v58  ;;  %v442_v51 = vadd.f32 %v410_v31, %v360_v42  ;;  %v223_v31 = vpop.xlane.xlu0 %222 }
 0x175   :  { %v997_v54 = vrot.slane %v1533_v3, 7  ;;  %v1565_v56 = vadd.f32 %v1472_v23, %v928_v24  ;;  %v762_v49 = vadd.f32 %v730_v25, %v680_v32  ;;  %v381_v60 = vmul.f32 %v1393_v37, %v1548_v35 }
 0x176   :  { %v651_v4 = vrot.slane %v619_v34, 4  ;;  %v1571_v62 = vmul.f32 %v1446_v44, %v1497_v58  ;;  %v492_v0 = vrot.slane %v460_v46, 2  ;;  %v542_v38 = vmul.f32 %v1407_v48, %v1514_v14 }
 0x177   :  { %v772_v1 = vadd.f32 %v740_v15, %v690_v9  ;;  %v812_v20 = vrot.slane %v780_v27, 6  ;;  %v894_v11 = vrot.slane %v862_v43, 7  ;;  %v1576_v12 = vadd.f32 %v1390_v26, %v316_v50 }
 0x178   :  { %v683_v13 = vadd.f32 %v651_v4, %v601_v52  ;;  %v733_v8 = vrot.slane %v701_v41, 5  ;;  %v815_v16 = vrot.slane %v783_v19, 6  ;;  %v524_v17 = vadd.f32 %v492_v0, %v442_v51 }
 0x179   :  { %v844_v40 = vadd.f32 %v812_v20, %v762_v49  ;;  %v624_v58 = vmul.f32 %v1418_v59, %v1514_v14  ;;  %v413_v24 = vrot.slane %v381_v60, 1  ;;  %v374_v29 = vmul.f32 %v1393_v37, %v1576_v12 }
 0x17a   :  { %v897_v15 = vrot.slane %v1571_v62, 7  ;;  %v574_v27 = vrot.slane %v542_v38, 3  ;;  %v363_v32 = vmul.f32 %v1401_v45, %v1548_v35  ;;  %v456_v34 = vmul.f32 %v1395_v33, %v1576_v12 }
 0x17b   :  { %v1089_v36 = vpop.eup %1088  ;;  %v463_v42 = vmul.f32 %v1395_v33, %v1548_v35  ;;  %v356_v46 = vmul.f32 %v1401_v45, %v1576_v12  ;;  %v406_v9 = vrot.slane %v374_v29, 1  ;;  %v255_v25 = vmul.f32 0.0078125, %v237_v2 }
 0x17c   :  { %v1091_v43 = vpop.eup %1090  ;;  %v765_v50 = vadd.f32 %v733_v8, %v683_v13  ;;  %v606_v52 = vadd.f32 %v574_v27, %v524_v17  ;;  %v706_v41 = vmul.f32 %v1425_v6, %v1514_v14  ;;  %v248_v19 = vmul.f32 0.0078125, %v223_v31  ;;  %v239_v13 = vpop.xlane.xlu1 %238 }
 0x17d   :  { %v926_v51 = vadd.f32 %v894_v11, %v844_v40  ;;  %v656_v49 = vrot.slane %v624_v58, 4  ;;  %v445_v60 = vadd.f32 %v413_v24, %v363_v32  ;;  %v438_v4 = vadd.f32 %v406_v9, %v356_v46 }
 0x17e   :  { %v788_v62 = vmul.f32 %v1438_v22, %v1514_v14  ;;  %v545_v0 = vmul.f32 %v1407_v48, %v1548_v35  ;;  %v488_v38 = vrot.slane %v456_v34, 2  ;;  %v538_v20 = vmul.f32 %v1407_v48, %v1576_v12 }
 0x17f   :  { %v495_v8 = vrot.slane %v463_v42, 2  ;;  %v302_v17 = vmul.f32 %v1089_v36, %v1345_v47  ;;  %v295_v2 = vmul.f32 %v1091_v43, %v1350_v53  ;;  %v271_v11 = vadd.f32 1e-05, %v255_v25 }
 0x180   :  { %v847_v40 = vadd.f32 %v815_v16, %v765_v50  ;;  %v688_v58 = vadd.f32 %v656_v49, %v606_v52  ;;  %v520_v24 = vadd.f32 %v488_v38, %v438_v4  ;;  %v264_v29 = vadd.f32 1e-05, %v248_v19 }
 0x181   :  { %v527_v31 = vadd.f32 %v495_v8, %v445_v60  ;;  %v324_v27 = vmul.f32 %v1384_v28, %v302_v17  ;;  %1092 = vrsqrt.f32 %v271_v11  ;;  %v256_v32 = vmul.f32 0.0078125, %v239_v13 }
 0x182   :  { %v738_v34 = vrot.slane %v706_v41, 5  ;;  %v570_v46 = vrot.slane %v538_v20, 3  ;;  %v620_v42 = vmul.f32 %v1418_v59, %v1576_v12  ;;  %1094 = vrsqrt.f32 %v264_v29 }
 0x183   :  { %v577_v47 = vrot.slane %v545_v0, 3  ;;  %v627_v53 = vmul.f32 %v1418_v59, %v1548_v35  ;;  %v1607_v16 = vadd.f32 %v1390_v26, %v324_v27  ;;  %v317_v36 = vmul.f32 %v1384_v28, %v295_v2 }
 0x184   :  { %v979_v9 = vrot.slane %v1565_v56, 6  ;;  %v854_v25 = vadd.f32 %v822_v5, %v772_v1  ;;  %v944_v43 = vadd.f32 %v1472_v23, %v926_v51  ;;  %v602_v50 = vadd.f32 %v570_v46, %v520_v24 }
 0x185   :  { %v929_v52 = vadd.f32 %v897_v15, %v847_v40  ;;  %v770_v41 = vadd.f32 %v738_v34, %v688_v58  ;;  %v609_v19 = vadd.f32 %v577_v47, %v527_v31  ;;  %v272_v49 = vadd.f32 1e-05, %v256_v32 }
 0x186   :  { %v870_v60 = vmul.f32 %v1446_v44, %v1514_v14  ;;  %v652_v4 = vrot.slane %v620_v42, 4  ;;  %v702_v0 = vmul.f32 %v1425_v6, %v1576_v12  ;;  %v382_v56 = vmul.f32 %v1393_v37, %v1607_v16 }
 0x187   :  { %v820_v38 = vrot.slane %v788_v62, 6  ;;  %v659_v30 = vrot.slane %v627_v53, 4  ;;  %v709_v5 = vmul.f32 %v1425_v6, %v1548_v35  ;;  %v1623_v1 = vadd.f32 %v1390_v26, %v317_v36  ;;  %v225_v62 = vpop.xlane.xlu0 %224 }
 0x188   :  { %v1627_v15 = vadd.f32 %v904_v39, %v854_v25  ;;  %v978_v14 = vsel %vm977_vm0, %v976_v18, %v944_v43  ;;  %v791_v51 = vmul.f32 %v1438_v22, %v1548_v35  ;;  %v684_v20 = vadd.f32 %v652_v4, %v602_v50  ;;  %v241_v43 = vpop.xlane.xlu1 %240 }
 0x189   :  { %v1635_v13 = vadd.f32 %v1472_v23, %v929_v52  ;;  %v852_v8 = vadd.f32 %v820_v38, %v770_v41  ;;  %v691_v17 = vadd.f32 %v659_v30, %v609_v19  ;;  %1096 = vrsqrt.f32 %v272_v49 }
 0x18a   :  { %v902_v2 = vrot.slane %v870_v60, 7  ;;  %v734_v11 = vrot.slane %v702_v0, 5  ;;  %v784_v21 = vmul.f32 %v1438_v22, %v1576_v12  ;;  %v414_v39 = vrot.slane %v382_v56, 1 }
 0x18b   :  { %v1093_v57 = vpop.eup %1092  ;;  %v741_v40 = vrot.slane %v709_v5, 5  ;;  %v873_v18 = vmul.f32 %v1446_v44, %v1548_v35  ;;  %v375_v58 = vmul.f32 %v1393_v37, %v1623_v1  ;;  %v249_v24 = vmul.f32 0.0078125, %v225_v62 }
 0x18c   :  { %v1095_v29 = vpop.eup %1094  ;;  %v1644_v31 = vsel %vm980_vm1, %v979_v9, %v978_v14  ;;  %v766_v27 = vadd.f32 %v734_v11, %v684_v20  ;;  %v364_v32 = vmul.f32 %v1401_v45, %v1607_v16  ;;  %v464_v34 = vmul.f32 %v1395_v33, %v1607_v16 }
 0x18d   :  { %v982_v46 = vrot.slane %v1635_v13, 5  ;;  %v934_v42 = vadd.f32 %v902_v2, %v852_v8  ;;  %v773_v47 = vadd.f32 %v741_v40, %v691_v17  ;;  %v823_v35 = vrot.slane %v791_v51, 6 }
 0x18e   :  { %v816_v53 = vrot.slane %v784_v21, 6  ;;  %v866_v36 = vmul.f32 %v1446_v44, %v1576_v12  ;;  %v446_v25 = vadd.f32 %v414_v39, %v364_v32  ;;  %v303_v9 = vmul.f32 %v1093_v57, %v1355_v55 }
 0x18f   :  { %v905_v50 = vrot.slane %v873_v18, 7  ;;  %v407_v52 = vrot.slane %v375_v58, 1  ;;  %v296_v41 = vmul.f32 %v1095_v29, %v1360_v61  ;;  %v265_v19 = vadd.f32 1e-05, %v249_v24 }
 0x190   :  { %v848_v49 = vadd.f32 %v816_v53, %v766_v27  ;;  %v496_v60 = vrot.slane %v464_v34, 2  ;;  %v546_v4 = vmul.f32 %v1407_v48, %v1607_v16  ;;  %v325_v0 = vmul.f32 %v1384_v28, %v303_v9 }
 0x191   :  { %v357_v56 = vmul.f32 %v1401_v45, %v1623_v1  ;;  %v457_v12 = vmul.f32 %v1395_v33, %v1623_v1  ;;  %v318_v55 = vmul.f32 %v1384_v28, %v296_v41  ;;  %v257_v38 = vmul.f32 0.0078125, %v241_v43 }
 0x192   :  { %v855_v30 = vadd.f32 %v823_v35, %v773_v47  ;;  %v898_v5 = vrot.slane %v866_v36, 7  ;;  %v528_v61 = vadd.f32 %v496_v60, %v446_v25  ;;  %v628_v14 = vmul.f32 %v1418_v59, %v1607_v16 }
 0x193   :  { %v1097_v51 = vpop.eup %1096  ;;  %v710_v20 = vmul.f32 %v1425_v6, %v1607_v16  ;;  %v1669_v62 = vmul.f32 %v1438_v22, %v1607_v16  ;;  %v439_v8 = vadd.f32 %v407_v52, %v357_v56  ;;  %v1672_v17 = vadd.f32 %v1390_v26, %v325_v0 }
 0x194   :  { %v930_v2 = vadd.f32 %v898_v5, %v848_v49  ;;  %v578_v11 = vrot.slane %v546_v4, 3  ;;  %v539_v21 = vmul.f32 %v1407_v48, %v1623_v1  ;;  %1098 = vrsqrt.f32 %v265_v19 }
 0x195   :  { %v1677_v39 = vadd.f32 %v1472_v23, %v934_v42  ;;  %v489_v57 = vrot.slane %v457_v12, 2  ;;  %v1680_v40 = vadd.f32 %v1390_v26, %v318_v55  ;;  %v273_v18 = vadd.f32 1e-05, %v257_v38 }
 0x196   :  { %v1682_v58 = vadd.f32 %v905_v50, %v855_v30  ;;  %v610_v24 = vadd.f32 %v578_v11, %v528_v61  ;;  %v660_v29 = vrot.slane %v628_v14, 4  ;;  %v304_v27 = vmul.f32 %v1097_v51, %v1365_v63 }
 0x197   :  { %v742_v32 = vrot.slane %v710_v20, 5  ;;  %v824_v34 = vrot.slane %v1669_v62, 6  ;;  %v521_v47 = vadd.f32 %v489_v57, %v439_v8  ;;  %v383_v35 = vmul.f32 %v1393_v37, %v1672_v17 }
 0x198   :  { %v1689_v42 = vadd.f32 %v1472_v23, %v930_v2  ;;  %v1693_v53 = vmul.f32 %v1446_v44, %v1607_v16  ;;  %v571_v36 = vrot.slane %v539_v21, 3  ;;  %v621_v25 = vmul.f32 %v1418_v59, %v1623_v1 }
 0x199   :  { %v703_v63 = vmul.f32 %v1425_v6, %v1623_v1  ;;  %v376_v9 = vmul.f32 %v1393_v37, %v1680_v40  ;;  %v458_v43 = vmul.f32 %v1395_v33, %v1680_v40  ;;  %1100 = vrsqrt.f32 %v273_v18 }
 0x19a   :  { %v692_v50 = vadd.f32 %v660_v29, %v610_v24  ;;  %v785_v52 = vmul.f32 %v1438_v22, %v1623_v1  ;;  %v1707_v16 = vmul.f32 %v1446_v44, %v1623_v1  ;;  %v326_v41 = vmul.f32 %v1384_v28, %v304_v27 }
 0x19b   :  { %v603_v19 = vadd.f32 %v571_v36, %v521_v47  ;;  %v415_v49 = vrot.slane %v383_v35, 1  ;;  %v358_v60 = vmul.f32 %v1401_v45, %v1680_v40  ;;  %v408_v4 = vrot.slane %v376_v9, 1 }
 0x19c   :  { %v985_v0 = vrot.slane %v1689_v42, 4  ;;  %v906_v56 = vrot.slane %v1693_v53, 7  ;;  %v653_v12 = vrot.slane %v621_v25, 4  ;;  %v540_v55 = vmul.f32 %v1407_v48, %v1680_v40 }
 0x19d   :  { %v365_v1 = vmul.f32 %v1401_v45, %v1672_v17  ;;  %v465_v38 = vmul.f32 %v1395_v33, %v1672_v17  ;;  %v440_v30 = vadd.f32 %v408_v4, %v358_v60  ;;  %v490_v5 = vrot.slane %v458_v43, 2 }
 0x19e   :  { %v1099_v61 = vpop.eup %1098  ;;  %v735_v14 = vrot.slane %v703_v63, 5  ;;  %v817_v51 = vrot.slane %v785_v52, 6  ;;  %v899_v20 = vrot.slane %v1707_v16, 7  ;;  %v1722_v62 = vadd.f32 %v1390_v26, %v326_v41 }
 0x19f   :  { %v774_v8 = vadd.f32 %v742_v32, %v692_v50  ;;  %v685_v2 = vadd.f32 %v653_v12, %v603_v19  ;;  %v447_v11 = vadd.f32 %v415_v49, %v365_v1  ;;  %v522_v21 = vadd.f32 %v490_v5, %v440_v30 }
 0x1a0   :  { %v547_v57 = vmul.f32 %v1407_v48, %v1672_v17  ;;  %v572_v18 = vrot.slane %v540_v55, 3  ;;  %v622_v24 = vmul.f32 %v1418_v59, %v1680_v40  ;;  %v384_v29 = vmul.f32 %v1393_v37, %v1722_v62 }
 0x1a1   :  { %v497_v27 = vrot.slane %v465_v38, 2  ;;  %v629_v47 = vmul.f32 %v1418_v59, %v1672_v17  ;;  %v466_v32 = vmul.f32 %v1395_v33, %v1722_v62  ;;  %v297_v35 = vmul.f32 %v1099_v61, %v1370_v7 }
 0x1a2   :  { %v711_v36 = vmul.f32 %v1425_v6, %v1672_v17  ;;  %v604_v25 = vadd.f32 %v572_v18, %v522_v21  ;;  %v366_v63 = vmul.f32 %v1401_v45, %v1722_v62  ;;  %v416_v9 = vrot.slane %v384_v29, 1 }
 0x1a3   :  { %v1101_v43 = vpop.eup %1100  ;;  %v767_v50 = vadd.f32 %v735_v14, %v685_v2  ;;  %v529_v52 = vadd.f32 %v497_v27, %v447_v11  ;;  %v1741_v16 = vmul.f32 %v1438_v22, %v1672_v17  ;;  %v548_v41 = vmul.f32 %v1407_v48, %v1722_v62 }
 0x1a4   :  { %v654_v19 = vrot.slane %v622_v24, 4  ;;  %v704_v7 = vmul.f32 %v1425_v6, %v1680_v40  ;;  %v448_v49 = vadd.f32 %v416_v9, %v366_v63  ;;  %v498_v60 = vrot.slane %v466_v32, 2 }
 0x1a5   :  { %v1747_v4 = vadd.f32 %v824_v34, %v774_v8  ;;  %v579_v12 = vrot.slane %v547_v57, 3  ;;  %v661_v55 = vrot.slane %v629_v47, 4  ;;  %v319_v1 = vmul.f32 %v1384_v28, %v297_v35 }
 0x1a6   :  { %v743_v38 = vrot.slane %v711_v36, 5  ;;  %v686_v30 = vadd.f32 %v654_v19, %v604_v25  ;;  %v530_v5 = vadd.f32 %v498_v60, %v448_v49  ;;  %v305_v61 = vmul.f32 %v1101_v43, %v1375_v10 }
 0x1a7   :  { %v849_v14 = vadd.f32 %v817_v51, %v767_v50  ;;  %v580_v2 = vrot.slane %v548_v41, 3  ;;  %v630_v11 = vmul.f32 %v1418_v59, %v1722_v62  ;;  %v341_v21 = vadd.f32 %v1390_v26, %v319_v1 }
 0x1a8   :  { %v611_v18 = vadd.f32 %v579_v12, %v529_v52  ;;  %v825_v34 = vrot.slane %v1741_v16, 6  ;;  %v736_v8 = vrot.slane %v704_v7, 5  ;;  %v786_v57 = vmul.f32 %v1438_v22, %v1680_v40 }
 0x1a9   :  { %v1759_v24 = vmul.f32 %v1446_v44, %v1672_v17  ;;  %v612_v29 = vadd.f32 %v580_v2, %v530_v5  ;;  %v377_v10 = vmul.f32 %v1393_v37, %v341_v21  ;;  %v459_v51 = vmul.f32 %v1395_v33, %v341_v21 }
 0x1aa   :  { %v768_v27 = vadd.f32 %v736_v8, %v686_v30  ;;  %v868_v47 = vmul.f32 %v1446_v44, %v1680_v40  ;;  %v712_v32 = vmul.f32 %v1425_v6, %v1722_v62  ;;  %v327_v35 = vmul.f32 %v1384_v28, %v305_v61 }
 0x1ab   :  { %v662_v36 = vrot.slane %v630_v11, 4  ;;  %v359_v25 = vmul.f32 %v1401_v45, %v341_v21  ;;  %v409_v63 = vrot.slane %v377_v10, 1  ;;  %v541_v17 = vmul.f32 %v1407_v48, %v341_v21 }
 0x1ac   :  { %v931_v9 = vadd.f32 %v899_v20, %v849_v14  ;;  %v693_v43 = vadd.f32 %v661_v55, %v611_v18  ;;  %v818_v50 = vrot.slane %v786_v57, 6  ;;  %v794_v52 = vmul.f32 %v1438_v22, %v1722_v62 }
 0x1ad   :  { %v694_v16 = vadd.f32 %v662_v36, %v612_v29  ;;  %v441_v41 = vadd.f32 %v409_v63, %v359_v25  ;;  %v491_v40 = vrot.slane %v459_v51, 2  ;;  %v623_v19 = vmul.f32 %v1418_v59, %v341_v21 }
 0x1ae   :  { %v907_v7 = vrot.slane %v1759_v24, 7  ;;  %v850_v28 = vadd.f32 %v818_v50, %v768_v27  ;;  %v900_v49 = vrot.slane %v868_v47, 7  ;;  %v349_v60 = vadd.f32 %v1390_v26, %v327_v35 }
 0x1af   :  { %v744_v12 = vrot.slane %v712_v32, 5  ;;  %v523_v1 = vadd.f32 %v491_v40, %v441_v41  ;;  %v573_v30 = vrot.slane %v541_v17, 3  ;;  %v705_v20 = vmul.f32 %v1425_v6, %v341_v21 }
 0x1b0   :  { %v775_v55 = vadd.f32 %v743_v38, %v693_v43  ;;  %v826_v5 = vrot.slane %v794_v52, 6  ;;  %v385_v61 = vmul.f32 %v1393_v37, %v349_v60  ;;  %v467_v14 = vmul.f32 %v1395_v33, %v349_v60 }
 0x1b1   :  { %v776_v2 = vadd.f32 %v744_v12, %v694_v16  ;;  %v605_v11 = vadd.f32 %v573_v30, %v523_v1  ;;  %v655_v18 = vrot.slane %v623_v19, 4  ;;  %v787_v8 = vmul.f32 %v1438_v22, %v341_v21 }
 0x1b2   :  { %v932_v26 = vadd.f32 %v900_v49, %v850_v28  ;;  %v367_v57 = vmul.f32 %v1401_v45, %v349_v60  ;;  %v417_v24 = vrot.slane %v385_v61, 1  ;;  %v549_v29 = vmul.f32 %v1407_v48, %v349_v60 }
 0x1b3   :  { %v876_v38 = vmul.f32 %v1446_v44, %v1722_v62  ;;  %v687_v37 = vadd.f32 %v655_v18, %v605_v11  ;;  %v737_v10 = vrot.slane %v705_v20, 5  ;;  %v869_v33 = vmul.f32 %v1446_v44, %v341_v21 }
 0x1b4   :  { %v857_v51 = vadd.f32 %v825_v34, %v775_v55  ;;  %v449_v27 = vadd.f32 %v417_v24, %v367_v57  ;;  %v499_v47 = vrot.slane %v467_v14, 2  ;;  %v631_v32 = vmul.f32 %v1418_v59, %v349_v60 }
 0x1b5   :  { %v949_v35 = vadd.f32 %v1472_v23, %v931_v9  ;;  %v858_v45 = vadd.f32 %v826_v5, %v776_v2  ;;  %v769_v36 = vadd.f32 %v737_v10, %v687_v37  ;;  %v819_v25 = vrot.slane %v787_v8, 6 }
 0x1b6   :  { %v950_v48 = vadd.f32 %v1472_v23, %v932_v26  ;;  %v531_v63 = vadd.f32 %v499_v47, %v449_v27  ;;  %v581_v17 = vrot.slane %v549_v29, 3  ;;  %v713_v62 = vmul.f32 %v1425_v6, %v349_v60 }
 0x1b7   :  { %v938_v21 = vadd.f32 %v906_v56, %v1747_v4  ;;  %v908_v34 = vrot.slane %v876_v38, 7  ;;  %v851_v43 = vadd.f32 %v819_v25, %v769_v36  ;;  %v901_v50 = vrot.slane %v869_v33, 7 }
 0x1b8   :  { %v939_v52 = vadd.f32 %v907_v7, %v857_v51  ;;  %v613_v59 = vadd.f32 %v581_v17, %v531_v63  ;;  %v663_v16 = vrot.slane %v631_v32, 4  ;;  %v795_v9 = vmul.f32 %v1438_v22, %v349_v60 }
 0x1b9   :  { %v955_v41 = vadd.f32 %v1472_v23, %v1682_v58  ;;  %v988_v40 = vrot.slane %v949_v35, 3  ;;  %v940_v19 = vadd.f32 %v908_v34, %v858_v45  ;;  %v933_v28 = vadd.f32 %v901_v50, %v851_v43 }
 0x1ba   :  { %v991_v49 = vrot.slane %v950_v48, 2  ;;  %v695_v6 = vadd.f32 %v663_v16, %v613_v59  ;;  %v745_v12 = vrot.slane %v713_v62, 5  ;;  %v877_v53 = vmul.f32 %v1446_v44, %v349_v60 }
 0x1bb   :  { %v954_v56 = vadd.f32 %v1472_v23, %v1627_v15  ;;  %v984_v4 = vsel %vm983_vm2, %v982_v46, %v1644_v31  ;;  %v956_v22 = vadd.f32 %v1472_v23, %v938_v21  ;;  %v951_v58 = vadd.f32 %v1472_v23, %v933_v28 }
 0x1bc   :  { %v987_v7 = vsel %vm986_vm3, %v985_v0, %v984_v4  ;;  %v957_v1 = vadd.f32 %v1472_v23, %v939_v52  ;;  %v777_v30 = vadd.f32 %v745_v12, %v695_v6  ;;  %v827_v44 = vrot.slane %v795_v9, 6 }
 0x1bd   :  { %v998_v15 = vsel %vm977_vm0, %v997_v54, %v1677_v39  ;;  %v990_v13 = vsel %vm989_vm4, %v988_v40, %v987_v7  ;;  %v958_v31 = vadd.f32 %v1472_v23, %v940_v19  ;;  %v994_v46 = vrot.slane %v951_v58, 1 }
 0x1be   :  { %v1001_v60 = vrot.slane %v955_v41, 5  ;;  %v993_v20 = vsel %vm992_vm5, %v991_v49, %v990_v13  ;;  %v859_v42 = vadd.f32 %v827_v44, %v777_v30  ;;  %v909_v55 = vrot.slane %v877_v53, 7 }
 0x1bf   :  { %v999_v0 = vrot.slane %v954_v56, 6  ;;  %v1003_v5 = vrot.slane %v956_v22, 4  ;;  %v996_v61 = vsel %vm995_vm6, %v994_v46, %v993_v20  ;;  %v1005_v14 = vrot.slane %v957_v1, 3 }
 0x1c0   :  { %1013 = vst [vmem:[%s1835_s7] sm:$0xff] %v996_v61  ;;  %v941_v3 = vadd.f32 %v909_v55, %v859_v42  ;;  %v1007_v39 = vrot.slane %v958_v31, 2 }
 0x1c1   :  { %v1000_v54 = vsel %vm980_vm1, %v999_v0, %v998_v15 }
 0x1c2   :  { %v1002_v2 = vsel %vm983_vm2, %v1001_v60, %v1000_v54  ;;  %v959_v11 = vadd.f32 %v1472_v23, %v941_v3 }
 0x1c3   :  { %v1004_v18 = vsel %vm986_vm3, %v1003_v5, %v1002_v2 }
 0x1c4   :  { %v1006_v8 = vsel %vm989_vm4, %v1005_v14, %v1004_v18  ;;  %v1009_v26 = vrot.slane %v959_v11, 1 }
 0x1c5   :  { %v1008_v57 = vsel %vm992_vm5, %v1007_v39, %v1006_v8 }
 0x1c6   :  { %v1010_v24 = vsel %vm995_vm6, %v1009_v26, %v1008_v57 }
 0x1c7   :  { %1014 = vst [vmem:[%s1835_s7 + $0x8] sm:$0xff] %v1010_v24 }
 0x1c8   :  { %1019 = vsyncpa [#allocation4], 1 }

// kernel: _lambda_.11
= control target key start
LH: loop header
LB: loop body
LE: loop exit
PB: predicated region body
PF: predicated region fallthrough
CT: control target
= control target key end

     0   :  { %8 = vsyncpa [#allocation3], 0  ;;  %s691_s0 = inlined_call_operand.vmem [shape: f32[16,128], index: 0, kind: input, shape index: {}]   ;;  %s692_s1 = inlined_call_operand.vmem [shape: bf16[512,128], index: 1, kind: input, shape index: {}]   ;;  %s693_s2 = inlined_call_operand.vmem [shape: f32[1,512], index: 2, kind: input, shape index: {}]   ;;  %s694_s3 = inlined_call_operand.hbm [shape: f32[16,512], index: 3, kind: output, shape index: {}]  }
   0x1   :  { %10 = vsyncpa [#allocation3 + $0x1], 0  ;;  %s578_s12 = smov 0   ;;  %s580_s13 = smov 0  }
   0x2   :  { %s582_s14 = smov 0   ;;  %s584_s15 = smov 0  }
   0x3 LB: > { %s599_s16 = sadd.s32 4294967295, %s550_s15   ;;  %s387_s17 = sadd.s32 4294967294, %s550_s15   ;;  %s550_s15 = sphi %s584_s15, %s700_s15   ;;  %s546_s14 = sphi %s582_s14, %s699_s14   ;;  %s542_s13 = sphi %s580_s13, %s698_s13   ;;  %s538_s12 = sphi %s578_s12, %s697_s12  }
   0x4   : > { %s603_s18 = sadd.s32 1, %s550_s15   ;;  %s96_s19 = sadd.s32 1, %s546_s14 }
   0x5   : > { %s93_s20 = ssub.s32 %s550_s15, %s603_s18  ;;  %p106_p0 = scmp.ne.s32.totalorder %s546_s14, %s542_s13 }
   0x6   : > { %p94_p1 = scmp.eq.s32.totalorder %s93_s20, 0  ;;  %p107_p2 = scmp.eq.s32.totalorder %s599_s16, 3 }
   0x7   : > { %p112_p3 = scmp.ne.s32.totalorder %s542_s13, %s538_s12  ;;  %p113_p4 = scmp.eq.s32.totalorder %s387_s17, 3 }
   0x8   : > { %s614_s21 = scalar_select %p94_p1, %s546_s14, %s96_s19  }
   0x9   : > { %p616_p5 = por %p107_p2, %p106_p0  ;;  %p620_p6 = por %p113_p4, %p112_p3 }
   0xa   : > { %p390_p7 = scmp.ge.s32.totalorder %s550_s15, 1  ;;  %p149_p8 = scmp.lt.s32.totalorder %s550_s15, 5 }
   0xc   : > { %p150_p9 = pnand %p390_p7, %p149_p8 }
   0xd   : > { %s392_s24 = sshll.u32 (!%p150_p9), %s599_s16, 4  ;;  %v552_v0 = vmov (!%p150_p9), 0.0   ;;  %vm553_vm0 = vmmov (!%p150_p9), 0   ;;  %v186_v9 = vld [vmem:[%s691_s0] sm:$0xff] (!%p150_p9)  ;;  %v187_v10 = vld [vmem:[%s691_s0 + $0x8] sm:$0xff] (!%p150_p9)  ;;  %p182_p11 = scmp.lt.s32.totalorder (!%p150_p9), %s599_s16, 3 }
   0xe   : > { %153 = sbr.rel (%p150_p9) target bundleno = 320 (0x140), region = 32  ;;  %416 = vmatprep.subr.bf16.mxu0 (!%p150_p9), %v552_v0  ;;  %p177_p10 = scmp.lt.s32.totalorder (!%p150_p9), %s392_s24, 63  ;;  %432 = vmatprep.mubr.msk.bf16.mxu0 (!%p150_p9), %vm553_vm0, %v552_v0  ;;  %v188_v11 = vpack.c.bf16 (!%p150_p9), %v187_v10, %v186_v9 }
   0xf   : > { %s173_s6 = sand.u32 (!%p150_p9), 1, %s542_s13   ;;  %s404_s20 = sshll.u32 (!%p150_p9), %s599_s16, 7 }
  0x10   : > { %s391_s8 = sshll.u32 (!%p150_p9), %s173_s6, 4  ;;  %s648_s26 = scalar_lea.hbm (!%p150_p9), %s694_s3, %s404_s20 }
  0x11   : > { %s175_s17 = scalar_lea.vmem (!%p150_p9), [#allocation2], %s391_s8  ;;  %s650_s27 = scalar_lea.sflag (!%p150_p9), [#allocation3], %s173_s6 }
  0x12   : > { %s316_s19 = sshll.u32 (!%p150_p9), %s175_s17, 4  ;;  %s643_s19 = int_to_ptr.vmem [resolvable:$true] %s316_s19 }
  0x15   : > { %s702_s24 = smov (!%p177_p10, %s392_s24), 63 }
  0x16   : > { %s393_s25 = sshll.u32 %s702_s24, 2 }
  0x17   : > { %s180_s28 = scalar_lea.vmem %s692_s1, %s393_s25 }
  0x18   : > { %v480_v1 = vld [vmem:[%s180_s28] sm:$0xff]   ;;  %v481_v2 = vld [vmem:[%s180_s28 + $0x8] sm:$0xff]   ;;  %v482_v3 = vld [vmem:[%s180_s28 + $0x10] sm:$0xff]   ;;  %s183_s7 = scalar_select %p182_p11, %s599_s16, 3 }
  0x19   : > { %417 = vmatpush3.bf16.xpose.msra.mxu0 %v480_v1  ;;  %v483_v4 = vld [vmem:[%s180_s28 + $0x18] sm:$0xff]   ;;  %v484_v5 = vld [vmem:[%s180_s28 + $0x20] sm:$0xff]   ;;  %v485_v6 = vld [vmem:[%s180_s28 + $0x28] sm:$0xff]   ;;  %s488_s16 = scalar_lea.vmem %s643_s19, 256 }
  0x1a   : > { %418 = vmatprep.subr.bf16.mxu0 %v552_v0  ;;  %v486_v7 = vld [vmem:[%s180_s28 + $0x30] sm:$0xff]   ;;  %v487_v8 = vld [vmem:[%s180_s28 + $0x38] sm:$0xff]   ;;  %s184_s11 = scalar_lea.vmem %s693_s2, %s183_s7  ;;  %p489_p12 = scmp.ne.s32.totalorder %s643_s19, %s488_s16 }
  0x1b   : > { %v394_v12 = vld [vmem:[%s184_s11] ss:$0 sm:$0xff]  ;;  %s554_s28 = smov [#allocation2]  }
  0x1c   : > { %p490_p13 = pnand %p489_p12, %p616_p5  ;;  %s492_s29 = sshll.u32 %s554_s28, 4  ;;  %s493_s29 = int_to_ptr.vmem [resolvable:$false] %s492_s29 }
  0x1d   : > { %s494_s30 = scalar_lea.vmem %s493_s29, 512  ;;  %p495_p1 = scmp.lt.s32.totalorder %s643_s19, %s493_s29 }
  0x1e   : > { %p491_p0 = pneg %p490_p13  ;;  %p496_p2 = scmp.lt.s32.totalorder %s494_s30, %s488_s16 }
  0x20   : > { %p497_p3 = por %p496_p2, %p495_p1 }
  0x21   : > { %419 = vmatpush3.bf16.xpose.msra.mxu0 %v481_v2 }
  0x22   : > { %420 = vmatprep.subr.bf16.mxu0 %v552_v0  ;;  %p498_p4 = pnand %p497_p3, %p491_p0 }
  0x29   : > { %421 = vmatpush3.bf16.xpose.msra.mxu0 %v482_v3 }
  0x2a   : > { %422 = vmatprep.subr.bf16.mxu0 %v552_v0 }
  0x31   : > { %423 = vmatpush3.bf16.xpose.msra.mxu0 %v483_v4 }
  0x32   : > { %424 = vmatprep.subr.bf16.mxu0 %v552_v0 }
  0x39   : > { %425 = vmatpush3.bf16.xpose.msra.mxu0 %v484_v5 }
  0x3a   : > { %426 = vmatprep.subr.bf16.mxu0 %v552_v0 }
  0x41   : > { %427 = vmatpush3.bf16.xpose.msra.mxu0 %v485_v6 }
  0x42   : > { %428 = vmatprep.subr.bf16.mxu0 %v552_v0 }
  0x49   : > { %429 = vmatpush3.bf16.xpose.msra.mxu0 %v486_v7 }
  0x4a   : > { %430 = vmatprep.subr.bf16.mxu0 %v552_v0 }
  0x51   : > { %431 = vmatpush3.bf16.xpose.msra.mxu0 %v487_v8 }
  0x58   : > { %433 = vmatmul.mubr.bf16.vlgmr.msra.gmra.mrb[0].mxu0 %v188_v11 }
 0x12b   : > { %v294_v13 = vpop.f32.mrb[0].mxu0 }
 0x12c   : > { %v295_v14 = vadd.f32 %v394_v12, %v294_v13  ;;  %v434_v15 = vpop.f32.mrb[1].mxu0 }
 0x12d   : > { %v297_v16 = vpop.f32.mrb[2].mxu0 }
 0x12e   : > { %301 = vst [vmem:[%s175_s17] sm:$0xff] %v295_v14  ;;  %v298_v17 = vadd.f32 %v394_v12, %v297_v16  ;;  %v435_v18 = vpop.f32.mrb[3].mxu0 }
 0x130   : > { %302 = vst [vmem:[%s175_s17 + $0x8] sm:$0xff] %v298_v17 }
 0x131   : > { %501 = shalt.err (!%p498_p4)
}
 0x132   : > { %s502_s4 = scalar_lea.hbm %s648_s26, 256  ;;  %s506_s7 = scalar_lea.hbm %s694_s3, 1024 }
 0x133   : > { %p503_p7 = scmp.ne.s32.totalorder %s648_s26, %s502_s4  ;;  %p507_p10 = scmp.lt.u32.totalorder %s648_s26, %s694_s3 }
 0x134   : > { %p508_p11 = scmp.lt.u32.totalorder %s506_s7, %s502_s4  ;;  %p510_p13 = scmp.lt.u32.totalorder %s502_s4, %s648_s26 }
 0x135   : > { %p504_p8 = pnand %p503_p7, %p616_p5 }
 0x136   : > { %p509_p12 = por %p508_p11, %p507_p10 }
 0x137   : > { %p505_p9 = pneg %p504_p8 }
 0x138   : > { %p511_p0 = por %p510_p13, %p509_p12 }
 0x13a   : > { %p512_p1 = pnand %p511_p0, %p505_p9 }
 0x13c   : > { %515 = shalt.err (!%p512_p1)
}
 0x13d   : > { %s555_s10 = smov 128   ;;  %s556_s11 = smov 512  }
 0x13e   : > { %s557_s17 = smov 8  }
 0x13f   : > { %436 = dma.vmem_to_hbm [thread:$0]  (%p616_p5), %s643_s19, 256, %s648_s26, %s650_s27, %s555_s10, %s556_s11, %s557_s17  }
 0x140 PF: > { %p442_p2 = scmp.ge.s32.totalorder %s550_s15, 2  ;;  %s331_s20 = sand.u32 1, %s538_s12  }
 0x141   : > { %s332_s24 = scalar_lea.sflag [#allocation3], %s331_s20 }
 0x142   : > { %p439_p3 = pnand %p442_p2, %p620_p6 }
 0x144   : > { %533 = dma.done.wait (!%p439_p3), %s332_s24, 256  }
 0x145   : > { %535 = vsyncadd (!%p439_p3), %s332_s24, 4294967040  ;;  %p13_p4 = scmp.ge.s32.totalorder %s603_s18, 6   ;;  %s697_s12 = smov %s542_s13 }
 0x146   : > { %s698_s13 = smov %s546_s14  ;;  %s699_s14 = smov %s614_s21 }
 0x147   : > { %s700_s15 = smov %s603_s18  ;;  %15 = sbr.rel (!%p13_p4) target bundleno = 3 (0x3), region = 70 }
 0x14e   :  { %337 = vsyncpa [#allocation3], 1 }
 0x14f   :  { %339 = vsyncpa [#allocation3 + $0x1], 1 }

// kernel: _lambda_.10
= control target key start
LH: loop header
LB: loop body
LE: loop exit
PB: predicated region body
PF: predicated region fallthrough
CT: control target
= control target key end

     0   :  { %v259_v0 = vmov 0.0   ;;  %vm260_vm0 = vmmov 0   ;;  %s336_s1 = inlined_call_operand.vmem [shape: bf16[128,128], index: 1, kind: input, shape index: {}]   ;;  %s337_s0 = inlined_call_operand.vmem [shape: f32[16,128], index: 0, kind: input, shape index: {}]   ;;  %s338_s2 = inlined_call_operand.vmem [shape: f32[1,128], index: 2, kind: input, shape index: {}, may-alias: {2,4}]   ;;  %s339_s3 = inlined_call_operand.vmem [shape: f32[1,128], index: 3, kind: input, shape index: {}]   ;;  %s340_s4 = inlined_call_operand.vmem [shape: f32[1,128], index: 4, kind: input, shape index: {}, may-alias: {2,4}]   ;;  %s341_s5 = inlined_call_operand.vmem [shape: f32[16,128], index: 5, kind: output, shape index: {}]  }
   0x1   :  { %221 = vmatprep.subr.bf16.mxu0 %v259_v0  ;;  %v243_v1 = vld [vmem:[%s336_s1] sm:$0xff]   ;;  %237 = vmatprep.mubr.msk.bf16.mxu0 %vm260_vm0, %v259_v0  ;;  %v244_v2 = vld [vmem:[%s336_s1 + $0x8] sm:$0xff]   ;;  %v245_v3 = vld [vmem:[%s336_s1 + $0x10] sm:$0xff]  }
   0x2   :  { %222 = vmatpush3.bf16.msra.mxu0 %v243_v1  ;;  %v246_v4 = vld [vmem:[%s336_s1 + $0x18] sm:$0xff]   ;;  %v247_v5 = vld [vmem:[%s336_s1 + $0x20] sm:$0xff]   ;;  %v248_v6 = vld [vmem:[%s336_s1 + $0x28] sm:$0xff]  }
   0x3   :  { %223 = vmatprep.subr.bf16.mxu0 %v259_v0  ;;  %v249_v7 = vld [vmem:[%s336_s1 + $0x30] sm:$0xff]   ;;  %v250_v8 = vld [vmem:[%s336_s1 + $0x38] sm:$0xff]   ;;  %v21_v9 = vld [vmem:[%s337_s0] sm:$0xff] }
   0x4   :  { %v22_v10 = vld [vmem:[%s337_s0 + $0x8] sm:$0xff]  ;;  %v201_v12 = vld [vmem:[%s338_s2] ss:$0 sm:$0xff] }
   0x5   :  { %v23_v11 = vpack.c.bf16 %v22_v10, %v21_v9  ;;  %v210_v52 = vld [vmem:[%s339_s3] ss:$0 sm:$0xff] }
   0x6   :  { %224 = vmatpush3.bf16.msra.mxu0 %v244_v2  ;;  %v211_v54 = vld [vmem:[%s340_s4] ss:$0 sm:$0xff] }
   0x7   :  { %225 = vmatprep.subr.bf16.mxu0 %v259_v0 }
   0xa   :  { %226 = vmatpush3.bf16.msra.mxu0 %v245_v3 }
   0xb   :  { %227 = vmatprep.subr.bf16.mxu0 %v259_v0 }
   0xe   :  { %228 = vmatpush3.bf16.msra.mxu0 %v246_v4 }
   0xf   :  { %229 = vmatprep.subr.bf16.mxu0 %v259_v0 }
  0x12   :  { %230 = vmatpush3.bf16.msra.mxu0 %v247_v5 }
  0x13   :  { %231 = vmatprep.subr.bf16.mxu0 %v259_v0 }
  0x16   :  { %232 = vmatpush3.bf16.msra.mxu0 %v248_v6 }
  0x17   :  { %233 = vmatprep.subr.bf16.mxu0 %v259_v0 }
  0x1a   :  { %234 = vmatpush3.bf16.msra.mxu0 %v249_v7 }
  0x1b   :  { %235 = vmatprep.subr.bf16.mxu0 %v259_v0 }
  0x1e   :  { %236 = vmatpush3.bf16.msra.mxu0 %v250_v8 }
  0x21   :  { %238 = vmatmul.mubr.bf16.vlgmr.msra.gmra.mrb[0].mxu0 %v23_v11 }
  0xf4   :  { %v129_v13 = vpop.f32.mrb[0].mxu0 }
  0xf5   :  { %v130_v14 = vadd.f32 %v201_v12, %v129_v13  ;;  %v239_v15 = vpop.f32.mrb[1].mxu0 }
  0xf6   :  { %v132_v16 = vpop.f32.mrb[2].mxu0 }
  0xf7   :  { %v136_v17 = vmul.f32 %v130_v14, %v130_v14  ;;  %v133_v18 = vadd.f32 %v201_v12, %v132_v16  ;;  %v240_v19 = vpop.f32.mrb[3].mxu0 }
  0xf9   :  { %v138_v20 = vmul.f32 %v136_v17, %v130_v14  ;;  %v137_v21 = vmul.f32 %v133_v18, %v133_v18 }
  0xfb   :  { %v140_v22 = vmul.f32 0.044715, %v138_v20  ;;  %v139_v23 = vmul.f32 %v137_v21, %v133_v18 }
  0xfd   :  { %v141_v24 = vmul.f32 0.044715, %v139_v23  ;;  %v142_v25 = vadd.f32 %v140_v22, %v130_v14 }
  0xff   :  { %v144_v26 = vmul.f32 0.7978846, %v142_v25  ;;  %v143_v27 = vadd.f32 %v141_v24, %v133_v18 }
 0x101   :  { %251 = vtanh.f32 %v144_v26  ;;  %v145_v28 = vmul.f32 0.7978846, %v143_v27 }
 0x103   :  { %253 = vtanh.f32 %v145_v28 }
 0x10b   :  { %v252_v29 = vpop.eup %251 }
 0x10c   :  { %v148_v30 = vadd.f32 1.0, %v252_v29 }
 0x10d   :  { %v254_v31 = vpop.eup %253 }
 0x10e   :  { %v150_v32 = vmul.f32 0.5, %v148_v30  ;;  %v149_v33 = vadd.f32 1.0, %v254_v31 }
 0x110   :  { %v152_v34 = vmul.f32 %v150_v32, %v130_v14  ;;  %v151_v35 = vmul.f32 0.5, %v149_v33 }
 0x112   :  { %156 = vadd.xlane.f32.xlu0 %v152_v34  ;;  %v153_v36 = vmul.f32 %v151_v35, %v133_v18 }
 0x116   :  { %158 = vadd.xlane.f32.xlu0 %v153_v36 }
 0x19f   :  { %v157_v37 = vpop.xlane.xlu0 %156 }
 0x1a0   :  { %v161_v38 = vmul.f32 0.0078125, %v157_v37 }
 0x1a2   :  { %v163_v39 = vsub.f32 %v152_v34, %v161_v38 }
 0x1a3   :  { %v159_v40 = vpop.xlane.xlu0 %158 }
 0x1a4   :  { %v162_v41 = vmul.f32 0.0078125, %v159_v40  ;;  %v165_v42 = vmul.f32 %v163_v39, %v163_v39 }
 0x1a6   :  { %v164_v43 = vsub.f32 %v153_v36, %v162_v41  ;;  %167 = vadd.xlane.f32.xlu1 %v165_v42 }
 0x1a8   :  { %v166_v44 = vmul.f32 %v164_v43, %v164_v43 }
 0x1aa   :  { %169 = vadd.xlane.f32.xlu1 %v166_v44 }
 0x233   :  { %v168_v45 = vpop.xlane.xlu1 %167 }
 0x234   :  { %v171_v46 = vmul.f32 0.0078125, %v168_v45 }
 0x236   :  { %v173_v47 = vadd.f32 1e-05, %v171_v46 }
 0x237   :  { %v170_v48 = vpop.xlane.xlu1 %169 }
 0x238   :  { %255 = vrsqrt.f32 %v173_v47  ;;  %v172_v49 = vmul.f32 0.0078125, %v170_v48 }
 0x23a   :  { %v174_v50 = vadd.f32 1e-05, %v172_v49 }
 0x23c   :  { %257 = vrsqrt.f32 %v174_v50 }
 0x242   :  { %v256_v51 = vpop.eup %255 }
 0x243   :  { %v177_v53 = vmul.f32 %v256_v51, %v163_v39 }
 0x245   :  { %v185_v55 = vmul.f32 %v210_v52, %v177_v53 }
 0x246   :  { %v258_v56 = vpop.eup %257 }
 0x247   :  { %v193_v57 = vadd.f32 %v211_v54, %v185_v55  ;;  %v178_v58 = vmul.f32 %v258_v56, %v164_v43 }
 0x249   :  { %195 = vst [vmem:[%s341_s5] sm:$0xff] %v193_v57  ;;  %v186_v59 = vmul.f32 %v210_v52, %v178_v58 }
 0x24b   :  { %v194_v60 = vadd.f32 %v211_v54, %v186_v59 }
 0x24d   :  { %196 = vst [vmem:[%s341_s5 + $0x8] sm:$0xff] %v194_v60 }

// kernel: _lambda_.8
= control target key start
LH: loop header
LB: loop body
LE: loop exit
PB: predicated region body
PF: predicated region fallthrough
CT: control target
= control target key end

     0   :  { %s2229_s29 = smov 0   ;;  %s2594_s0 = inlined_call_operand.vmem [shape: f32[2,8,128], index: 0, kind: input, shape index: {}]   ;;  %s2595_s1 = inlined_call_operand.vmem [shape: f32[2,1,8], index: 1, kind: input, shape index: {}]   ;;  %s2596_s2 = inlined_call_operand.vmem [shape: bf16[128,384], index: 2, kind: input, shape index: {}]   ;;  %s2597_s3 = inlined_call_operand.vmem [shape: f32[1,384], index: 3, kind: input, shape index: {}]   ;;  %s2598_s4 = inlined_call_operand.vmem [shape: bf16[128,128], index: 4, kind: input, shape index: {}]   ;;  %s2599_s5 = inlined_call_operand.vmem [shape: f32[1,128], index: 5, kind: input, shape index: {}, may-alias: {5,7,11,13}]   ;;  %s2600_s6 = inlined_call_operand.vmem [shape: f32[1,128], index: 6, kind: input, shape index: {}, may-alias: {6,12}]   ;;  %s2601_s7 = inlined_call_operand.vmem [shape: f32[1,128], index: 7, kind: input, shape index: {}, may-alias: {5,7,11,13}]   ;;  %s2602_s8 = inlined_call_operand.vmem [shape: bf16[128,256], index: 8, kind: input, shape index: {}]   ;;  %s2603_s9 = inlined_call_operand.vmem [shape: f32[1,256], index: 9, kind: input, shape index: {}]   ;;  %s2604_s10 = inlined_call_operand.vmem [shape: bf16[256,128], index: 10, kind: input, shape index: {}]   ;;  %s2605_s11 = inlined_call_operand.vmem [shape: f32[1,128], index: 11, kind: input, shape index: {}, may-alias: {5,7,11,13}]   ;;  %s2606_s12 = inlined_call_operand.vmem [shape: f32[1,128], index: 12, kind: input, shape index: {}, may-alias: {6,12}]   ;;  %s2607_s13 = inlined_call_operand.vmem [shape: f32[1,128], index: 13, kind: input, shape index: {}, may-alias: {5,7,11,13}]   ;;  %s2608_s14 = inlined_call_operand.vmem [shape: f32[2,8,128], index: 14, kind: output, shape index: {}]  }
   0x1 LB: > { %s1790_s30 = sadd.s32 4294967295, %s2146_s29   ;;  %p1794_p0 = scmp.ge.s32.totalorder %s2146_s29, 1  ;;  %s2146_s29 = sphi %s2229_s29, %s24_s29  }
   0x2   : > { %p419_p1 = scmp.lt.s32.totalorder %s2146_s29, 3 }
   0x4   : > { %p420_p2 = pnand %p1794_p0, %p419_p1 }
   0x5   : > { %v2036_v0 = vld [vmem:[%s2596_s2 + $0x4] ss:$12 sps:$4 sm:$0xff] (!%p420_p2)   ;;  %v2038_v1 = vld [vmem:[%s2596_s2] ss:$12 sps:$4 sm:$0xff] (!%p420_p2)   ;;  %v2148_v2 = vmov (!%p420_p2), 0   ;;  %v2149_v4 = vmov (!%p420_p2), 0.0   ;;  %v515_v28 = vlaneseq (!%p420_p2) }
   0x6   : > { %423 = sbr.rel (%p420_p2) target bundleno = 2994 (0xbb2), region = 76  ;;  %690 = vmatprep.mubr.bf16.mxu0 (!%p420_p2), %v2148_v2  ;;  %658 = vmatprep.subr.bf16.mxu0 (!%p420_p2), %v2036_v0  ;;  %v2039_v3 = vld [vmem:[%s2596_s2 + $0x1c] ss:$12 sps:$4 sm:$0xff] (!%p420_p2)   ;;  %v2041_v5 = vld [vmem:[%s2596_s2 + $0x18] ss:$12 sps:$4 sm:$0xff] (!%p420_p2)   ;;  %p466_p3 = scmp.lt.s32.totalorder (!%p420_p2), %s1790_s30, 1 }
   0x7   : > { %1934 = vmatprep.subr.bf16.mxu1 (!%p420_p2), %v2149_v4  ;;  %659 = vmatpush1.bf16.msra.mxu0 (!%p420_p2), %v2038_v1  ;;  %v2042_v6 = vld [vmem:[%s2596_s2 + $0x34] ss:$12 sps:$4 sm:$0xff] (!%p420_p2)   ;;  %v2044_v7 = vld [vmem:[%s2596_s2 + $0x30] ss:$12 sps:$4 sm:$0xff] (!%p420_p2)   ;;  %v2045_v8 = vld [vmem:[%s2596_s2 + $0x4c] ss:$12 sps:$4 sm:$0xff] (!%p420_p2)  }
   0x8   : > { %660 = vmatprep.subr.bf16.mxu0 (!%p420_p2), %v2039_v3  ;;  %v2047_v9 = vld [vmem:[%s2596_s2 + $0x48] ss:$12 sps:$4 sm:$0xff] (!%p420_p2)   ;;  %v2048_v11 = vld [vmem:[%s2596_s2 + $0x64] ss:$12 sps:$4 sm:$0xff] (!%p420_p2)   ;;  %v2061_v12 = vld [vmem:[%s2596_s2 + $0x20] ss:$12 sps:$4 sm:$0xff] (!%p420_p2)  }
   0x9   : > { %v2060_v10 = vld [vmem:[%s2596_s2 + $0x8] ss:$12 sps:$4 sm:$0xff] (!%p420_p2)   ;;  %v2050_v13 = vld [vmem:[%s2596_s2 + $0x60] ss:$12 sps:$4 sm:$0xff] (!%p420_p2)   ;;  %v2053_v15 = vld [vmem:[%s2596_s2 + $0x78] ss:$12 sps:$4 sm:$0xff] (!%p420_p2)  }
   0xa   : > { %1935 = vmatpush3.bf16.msra.mxu1 (!%p420_p2), %v2060_v10  ;;  %v2051_v14 = vld [vmem:[%s2596_s2 + $0x7c] ss:$12 sps:$4 sm:$0xff] (!%p420_p2)   ;;  %v2062_v16 = vld [vmem:[%s2596_s2 + $0x38] ss:$12 sps:$4 sm:$0xff] (!%p420_p2)   ;;  %v2054_v17 = vld [vmem:[%s2596_s2 + $0x94] ss:$12 sps:$4 sm:$0xff] (!%p420_p2)  }
   0xb   : > { %661 = vmatpush1.bf16.msra.mxu0 (!%p420_p2), %v2041_v5  ;;  %1936 = vmatprep.subr.bf16.mxu1 (!%p420_p2), %v2149_v4  ;;  %v2063_v18 = vld [vmem:[%s2596_s2 + $0x50] ss:$12 sps:$4 sm:$0xff] (!%p420_p2)   ;;  %v2057_v20 = vld [vmem:[%s2596_s2 + $0xac] ss:$12 sps:$4 sm:$0xff] (!%p420_p2)   ;;  %v2064_v21 = vld [vmem:[%s2596_s2 + $0x68] ss:$12 sps:$4 sm:$0xff] (!%p420_p2)  }
   0xc   : > { %662 = vmatprep.subr.bf16.mxu0 (!%p420_p2), %v2042_v6  ;;  %v2056_v19 = vld [vmem:[%s2596_s2 + $0x90] ss:$12 sps:$4 sm:$0xff] (!%p420_p2)   ;;  %v2059_v22 = vld [vmem:[%s2596_s2 + $0xa8] ss:$12 sps:$4 sm:$0xff] (!%p420_p2)   ;;  %v2065_v24 = vld [vmem:[%s2596_s2 + $0x80] ss:$12 sps:$4 sm:$0xff] (!%p420_p2)  }
   0xd   : > { %s2610_s30 = smov (!%p466_p3, %s1790_s30), 1  ;;  %v2066_v26 = vld [vmem:[%s2596_s2 + $0x98] ss:$12 sps:$4 sm:$0xff]   ;;  %v2067_v27 = vld [vmem:[%s2596_s2 + $0xb0] ss:$12 sps:$4 sm:$0xff]   ;;  %vm2150_vm0 = vmmov 0  }
   0xe   : > { %s1795_s23 = sshll.u32 %s2610_s30, 3  ;;  %1937 = vmatpush3.bf16.msra.mxu1 %v2061_v12  ;;  %1950 = vmatprep.mubr.msk.bf16.mxu1 %vm2150_vm0, %v2149_v4  ;;  %v2338_v29 = vshrl.u32 %v515_v28, 7  ;;  %v513_v31 = vld [vmem:[%s2597_s3] sm:$0x7]  ;;  %vm741_vm1 = vcmask 261120   ;;  %s2152_s16 = smov 64  }
   0xf   : > { %663 = vmatpush1.bf16.msra.mxu0 %v2044_v7  ;;  %1938 = vmatprep.subr.bf16.mxu1 %v2149_v4  ;;  %s469_s15 = scalar_lea.vmem %s2594_s0, %s1795_s23  ;;  %s2153_s17 = smov 32   ;;  %vm813_vm2 = vcmask 1043456   ;;  %vm796_vm3 = vcmask 64512   ;;  %vm1209_vm4 = vcmask 523264   ;;  %vm1211_vm5 = vcmask 785408  }
  0x10   : > { %664 = vmatprep.subr.bf16.mxu0 %v2045_v8  ;;  %v2313_v23 = vld [vmem:[%s469_s15] sm:$0xff]  ;;  %v521_v30 = vsub.s32 1, %v2338_v29  ;;  %v517_v32 = vsub.s32 0, %v2338_v29  ;;  %s2151_s15 = smov 96   ;;  %v525_v44 = vsub.s32 2, %v2338_v29  ;;  %s472_s20 = scalar_lea.vmem %s2595_s1, %s2610_s30 }
  0x11   : > { %v480_v25 = vpack.c.bf16 %v2313_v23, %v2313_v23  ;;  %v2369_v54 = vld [vmem:[%s472_s20] ss:$0 sm:$0xff] }
  0x12   : > { %1939 = vmatpush3.bf16.msra.mxu1 %v2062_v16  ;;  %v522_v33 = vrot.slane %v513_v31, %v521_v30  ;;  %v518_v34 = vrot.slane %v513_v31, %v517_v32  ;;  %v526_v45 = vrot.slane %v513_v31, %v525_v44 }
  0x13   : > { %665 = vmatpush1.bf16.msra.mxu0 %v2047_v9  ;;  %1940 = vmatprep.subr.bf16.mxu1 %v2149_v4 }
  0x14   : > { %666 = vmatprep.subr.bf16.mxu0 %v2048_v11 }
  0x16   : > { %1941 = vmatpush3.bf16.msra.mxu1 %v2063_v18 }
  0x17   : > { %667 = vmatpush1.bf16.msra.mxu0 %v2050_v13  ;;  %1942 = vmatprep.subr.bf16.mxu1 %v2149_v4 }
  0x18   : > { %668 = vmatprep.subr.bf16.mxu0 %v2051_v14 }
  0x1a   : > { %1943 = vmatpush3.bf16.msra.mxu1 %v2064_v21 }
  0x1b   : > { %669 = vmatpush1.bf16.msra.mxu0 %v2053_v15  ;;  %1944 = vmatprep.subr.bf16.mxu1 %v2149_v4 }
  0x1c   : > { %670 = vmatprep.subr.bf16.mxu0 %v2054_v17 }
  0x1e   : > { %1945 = vmatpush3.bf16.msra.mxu1 %v2065_v24 }
  0x1f   : > { %671 = vmatpush1.bf16.msra.mxu0 %v2056_v19  ;;  %1946 = vmatprep.subr.bf16.mxu1 %v2149_v4 }
  0x20   : > { %672 = vmatprep.subr.bf16.mxu0 %v2057_v20 }
  0x22   : > { %1947 = vmatpush3.bf16.msra.mxu1 %v2066_v26 }
  0x23   : > { %673 = vmatpush1.bf16.msra.mxu0 %v2059_v22  ;;  %1948 = vmatprep.subr.bf16.mxu1 %v2149_v4 }
  0x24   : > { %1978 = vmatprep.subr.bf16.mxu0 %v2149_v4 }
  0x26   : > { %691 = vmatmul.mubr.bf16.vlgmr.msra.gmra.mrb[0].mxu0 %v480_v25  ;;  %1949 = vmatpush3.bf16.msra.mxu1 %v2067_v27 }
  0x27   : > { %1954 = vmatprep.subr.bf16.mxu1 %v2149_v4  ;;  %1980 = vmatprep.mubr.msk.bf16.mxu0 %vm2150_vm0, %v2149_v4 }
  0x29   : > { %1951 = vmatmul.mubr.bf16.vlgmr.msra.gmra.mrb[0].mxu1 %v480_v25 }
  0x2a   : > { %1956 = vmatprep.mubr.msk.bf16.mxu1 %vm2150_vm0, %v2149_v4 }
  0xf9   : > { %v692_v35 = vpop.f32.mrb[0].mxu0 }
  0xfa   : > { %v694_v36 = vpop.f32.mrb[1].mxu0  ;;  %v693_v40 = vadd.f32 %v692_v35, %v518_v34 }
  0xfb   : > { %v695_v37 = vadd.f32 %v694_v36, %v522_v33  ;;  %v696_v38 = vpop.f32.mrb[2].mxu0 }
  0xfc   : > { %v697_v39 = vpop.f32.mrb[3].mxu0  ;;  %v739_v43 = vpack.c.bf16 %v693_v40, %v693_v40  ;;  %v733_v46 = vpop.f32.mrb[0].mxu1 }
  0xfd   : > { %v740_v41 = vpack.c.bf16 %v695_v37, %v695_v37  ;;  %v734_v47 = vadd.f32 %v733_v46, %v526_v45  ;;  %v1952_v48 = vpop.f32.mrb[1].mxu1 }
  0xfe   : > { %v736_v49 = vpop.f32.mrb[2].mxu1 }
  0xff   : > { %861 = vrot.lane.b32.xlu1 %v740_v41, %s2151_s15  ;;  %v746_v42 = vsel %vm741_vm1, %v740_v41, 0  ;;  %v2360_v50 = vpack.c.bf16 %v734_v47, %v734_v47  ;;  %v1953_v51 = vpop.f32.mrb[3].mxu1 }
 0x100   : > { %1955 = vmatpush3.bf16.xpose.msra.mxu1 %v746_v42 }
 0x101   : > { %1960 = vmatprep.subr.bf16.mxu1 %v2149_v4  ;;  %v815_v52 = vsel %vm813_vm2, %v2360_v50, 0 }
 0x103   : > { %858 = vrot.lane.b32.xlu1 %v739_v43, %s2151_s15 }
 0x107   : > { %972 = vrot.lane.b32.xlu1 %v739_v43, %s2152_s16  ;;  %1957 = vmatmul.mubr.msk.bf16.vlgmr.msra.gmra.mrb[4].mxu1 %vm741_vm1, %v739_v43 }
 0x108   : > { %1962 = vmatprep.mubr.msk.bf16.mxu1 %vm2150_vm0, %v2149_v4  ;;  %1961 = vmatpush3.bf16.msra.mxu1 %v815_v52 }
 0x109   : > { %1966 = vmatprep.subr.bf16.mxu1 %v2149_v4 }
 0x10b   : > { %1086 = vrot.lane.b32.xlu1 %v740_v41, %s2153_s17 }
 0x10f   : > { %1084 = vrot.lane.b32.xlu1 %v739_v43, %s2153_s17 }
 0x171   : > { %v862_v3 = vpop.permute.xlu1 %861 }
 0x172   : > { %v867_v15 = vsel %vm741_vm1, %v862_v3, 0 }
 0x175   : > { %v859_v5 = vpop.permute.xlu1 %858 }
 0x179   : > { %v973_v7 = vpop.permute.xlu1 %972 }
 0x17d   : > { %v1087_v10 = vpop.permute.xlu1 %1086 }
 0x17e   : > { %v1092_v13 = vsel %vm741_vm1, %v1087_v10, 0 }
 0x181   : > { %v1085_v16 = vpop.permute.xlu1 %1084 }
 0x1da   : > { %v782_v53 = vpop.f32.mrb[4].mxu1 }
 0x1db   : > { %v788_v55 = vmul.f32 0.17677669, %v782_v53  ;;  %v1958_v56 = vpop.f32.mrb[5].mxu1 }
 0x1dc   : > { %v785_v57 = vpop.f32.mrb[6].mxu1 }
 0x1dd   : > { %v1959_v58 = vpop.f32.mrb[7].mxu1  ;;  %v795_v59 = vadd.f32 %v2369_v54, %v788_v55 }
 0x1df   : > { %v797_v60 = vsel %vm796_vm3, %v795_v59, -inf }
 0x1e0   : > { %798 = vmax.xlane.f32.xlu0 %v797_v60 }
 0x26d   : > { %v799_v61 = vpop.xlane.xlu0 %798 }
 0x26e   : > { %v800_v62 = vsub.f32 %v795_v59, %v799_v61 }
 0x270   : > { %v801_v63 = vmul.f32 1.442695, %v800_v62 }
 0x272   : > { %2116 = vpow2.f32 %v801_v63 }
 0x27c   : > { %v2117_v0 = vpop.eup %2116 }
 0x27d   : > { %v803_v1 = vsel %vm796_vm3, %v2117_v0, 0.0 }
 0x27e   : > { %804 = vadd.xlane.f32.xlu0 %v803_v1 }
 0x294   : > { %974 = vrot.lane.b32.xlu0 %v740_v41, %s2152_s16 }
 0x30b   : > { %v805_v6 = vpop.xlane.xlu0 %804 }
 0x30c   : > { %2118 = vrcp.f32 %v805_v6 }
 0x30f   : > { %v975_v8 = vpop.permute.xlu0 %974 }
 0x310   : > { %v980_v9 = vsel %vm741_vm1, %v975_v8, 0 }
 0x311   : > { %1979 = vmatpush3.bf16.xpose.msra.mxu0 %v980_v9 }
 0x312   : > { %1990 = vmatprep.subr.bf16.mxu0 %v2149_v4 }
 0x316   : > { %v2119_v11 = vpop.eup %2118 }
 0x317   : > { %v807_v12 = vmul.f32 %v2119_v11, %v2117_v0 }
 0x318   : > { %1981 = vmatmul.mubr.msk.bf16.vlgmr.msra.gmra.mrb[4].mxu0 %vm741_vm1, %v973_v7 }
 0x319   : > { %1991 = vmatpush3.bf16.xpose.msra.mxu0 %v1092_v13  ;;  %v808_v14 = vpack.c.bf16 %v807_v12, %v807_v12  ;;  %1992 = vmatprep.mubr.msk.bf16.mxu0 %vm2150_vm0, %v2149_v4 }
 0x31a   : > { %2002 = vmatprep.subr.bf16.mxu0 %v2149_v4 }
 0x31b   : > { %1963 = vmatmul.mubr.msk.bf16.vlgmr.msra.gmra.mrb[8].mxu1 %vm796_vm3, %v808_v14 }
 0x31c   : > { %1967 = vmatpush3.bf16.xpose.msra.mxu1 %v867_v15  ;;  %1968 = vmatprep.mubr.msk.bf16.mxu1 %vm2150_vm0, %v2149_v4 }
 0x31d   : > { %1972 = vmatprep.subr.bf16.mxu1 %v2149_v4 }
 0x320   : > { %1993 = vmatmul.mubr.msk.bf16.vlgmr.msra.gmra.mrb[8].mxu0 %vm741_vm1, %v1085_v16 }
 0x321   : > { %2018 = vmatprep.mubr.msk.bf16.mxu0 %vm2150_vm0, %v2149_v4 }
 0x323   : > { %1969 = vmatmul.mubr.msk.bf16.vlgmr.msra.gmra.mrb[12].mxu1 %vm741_vm1, %v859_v5 }
 0x324   : > { %1974 = vmatprep.mubr.msk.bf16.mxu1 %vm2150_vm0, %v2149_v4 }
 0x3eb   : > { %v1016_v17 = vpop.f32.mrb[4].mxu0 }
 0x3ec   : > { %v1022_v18 = vmul.f32 0.17677669, %v1016_v17  ;;  %v1982_v19 = vpop.f32.mrb[5].mxu0  ;;  %v2068_v17 = vld [vmem:[%s2598_s4] sm:$0xff]  }
 0x3ed   : > { %v1019_v20 = vpop.f32.mrb[6].mxu0  ;;  %2003 = vmatpush3.bf16.msra.mxu0 %v2068_v17  ;;  %v2070_v19 = vld [vmem:[%s2598_s4 + $0x10] sm:$0xff]  }
 0x3ee   : > { %v2393_v21 = vpop.f32.mrb[8].mxu1  ;;  %v1983_v22 = vpop.f32.mrb[7].mxu0  ;;  %v1023_v24 = vadd.f32 %v2369_v54, %v1022_v18  ;;  %v2069_v18 = vld [vmem:[%s2598_s4 + $0x8] sm:$0xff]   ;;  %2004 = vmatprep.subr.bf16.mxu0 %v2149_v4  ;;  %v2072_v20 = vld [vmem:[%s2598_s4 + $0x20] sm:$0xff]  }
 0x3ef   : > { %v1964_v25 = vpop.f32.mrb[9].mxu1  ;;  %v2073_v22 = vld [vmem:[%s2598_s4 + $0x28] sm:$0xff]  }
 0x3f0   : > { %v854_v26 = vpop.f32.mrb[10].mxu1  ;;  %v1024_v27 = vsel %vm796_vm3, %v1023_v24, -inf }
 0x3f1   : > { %1025 = vmax.xlane.f32.xlu0 %v1024_v27  ;;  %v1965_v28 = vpop.f32.mrb[11].mxu1  ;;  %2005 = vmatpush3.bf16.msra.mxu0 %v2069_v18 }
 0x3f2   : > { %2006 = vmatprep.subr.bf16.mxu0 %v2149_v4 }
 0x3f3   : > { %v1128_v31 = vpop.f32.mrb[8].mxu0 }
 0x3f4   : > { %v1994_v33 = vpop.f32.mrb[9].mxu0  ;;  %v1134_v37 = vmul.f32 0.17677669, %v1128_v31  ;;  %v2075_v31 = vld [vmem:[%s2598_s4 + $0x38] sm:$0xff]  }
 0x3f5   : > { %v1131_v34 = vpop.f32.mrb[10].mxu0  ;;  %2007 = vmatpush3.bf16.msra.mxu0 %v2070_v19 }
 0x3f6   : > { %v903_v35 = vpop.f32.mrb[12].mxu1  ;;  %v1995_v36 = vpop.f32.mrb[11].mxu0  ;;  %v1135_v44 = vadd.f32 %v2369_v54, %v1134_v37  ;;  %2008 = vmatprep.subr.bf16.mxu0 %v2149_v4 }
 0x3f7   : > { %v909_v38 = vmul.f32 0.17677669, %v903_v35  ;;  %v1970_v39 = vpop.f32.mrb[13].mxu1 }
 0x3f8   : > { %v906_v40 = vpop.f32.mrb[14].mxu1  ;;  %v1136_v45 = vsel %vm796_vm3, %v1135_v44, -inf }
 0x3f9   : > { %v1971_v41 = vpop.f32.mrb[15].mxu1  ;;  %v910_v42 = vadd.f32 %v2369_v54, %v909_v38 }
 0x3fb   : > { %v911_v43 = vsel %vm796_vm3, %v910_v42, -inf }
 0x3fc   : > { %912 = vmax.xlane.f32.xlu1 %v911_v43 }
 0x400   : > { %1137 = vmax.xlane.f32.xlu1 %v1136_v45 }
 0x47e   : > { %v1026_v46 = vpop.xlane.xlu0 %1025 }
 0x47f   : > { %v1027_v47 = vsub.f32 %v1023_v24, %v1026_v46  ;;  %v2074_v24 = vld [vmem:[%s2598_s4 + $0x30] sm:$0xff]  }
 0x481   : > { %v1028_v48 = vmul.f32 1.442695, %v1027_v47  ;;  %v1830_v47 = vld [vmem:[%s2599_s5] ss:$0 sm:$0xff] }
 0x483   : > { %2120 = vpow2.f32 %v1028_v48 }
 0x489   : > { %v913_v49 = vpop.xlane.xlu1 %912 }
 0x48a   : > { %v914_v51 = vsub.f32 %v910_v42, %v913_v49 }
 0x48c   : > { %v915_v57 = vmul.f32 1.442695, %v914_v51 }
 0x48d   : > { %v2121_v52 = vpop.eup %2120  ;;  %v1138_v53 = vpop.xlane.xlu1 %1137 }
 0x48e   : > { %v1139_v55 = vsub.f32 %v1135_v44, %v1138_v53  ;;  %v1030_v56 = vsel %vm796_vm3, %v2121_v52, 0.0 }
 0x48f   : > { %1031 = vadd.xlane.f32.xlu0 %v1030_v56  ;;  %v2078_v56 = vld [vmem:[%s2602_s8 + $0x4] ss:$8 sps:$4 sm:$0xff]  }
 0x490   : > { %v1140_v58 = vmul.f32 1.442695, %v1139_v55 }
 0x492   : > { %2122 = vpow2.f32 %v1140_v58  ;;  %v2079_v58 = vld [vmem:[%s2602_s8 + $0x10] ss:$8 sps:$4 sm:$0xff]  }
 0x493   : > { %2124 = vpow2.f32 %v915_v57  ;;  %v2081_v57 = vld [vmem:[%s2602_s8 + $0x14] ss:$8 sps:$4 sm:$0xff]  }
 0x49c   : > { %v2123_v54 = vpop.eup %2122 }
 0x49d   : > { %v1142_v59 = vsel %vm796_vm3, %v2123_v54, 0.0  ;;  %v2125_v60 = vpop.eup %2124 }
 0x49e   : > { %1143 = vadd.xlane.f32.xlu1 %v1142_v59  ;;  %v917_v61 = vsel %vm796_vm3, %v2125_v60, 0.0 }
 0x4a2   : > { %918 = vadd.xlane.f32.xlu1 %v917_v61 }
 0x4a5   : > { %924 = vrot.lane.b32.xlu0 %v2360_v50, %s2151_s15 }
 0x4b3   : > { %1036 = vrot.lane.b32.xlu1 %v2360_v50, %s2152_s16 }
 0x4b7   : > { %1148 = vrot.lane.b32.xlu1 %v2360_v50, %s2153_s17 }
 0x51c   : > { %v1032_v62 = vpop.xlane.xlu0 %1031 }
 0x520   : > { %v925_v63 = vpop.permute.xlu0 %924 }
 0x521   : > { %v930_v0 = vsel %vm813_vm2, %v925_v63, 0  ;;  %v2087_v63 = vld [vmem:[%s2602_s8 + $0x34] ss:$8 sps:$4 sm:$0xff]  }
 0x522   : > { %1973 = vmatpush3.bf16.msra.mxu1 %v930_v0  ;;  %v2085_v0 = vld [vmem:[%s2602_s8 + $0x30] ss:$8 sps:$4 sm:$0xff]  }
 0x523   : > { %1984 = vmatprep.subr.bf16.mxu1 %v2149_v4 }
 0x52b   : > { %v1144_v1 = vpop.xlane.xlu1 %1143 }
 0x52f   : > { %v919_v3 = vpop.xlane.xlu1 %918 }
 0x530   : > { %2126 = vrcp.f32 %v919_v3  ;;  %v2088_v3 = vld [vmem:[%s2602_s8 + $0x40] ss:$8 sps:$4 sm:$0xff]  }
 0x531   : > { %2128 = vrcp.f32 %v1032_v62 }
 0x532   : > { %2130 = vrcp.f32 %v1144_v1  ;;  %v2090_v1 = vld [vmem:[%s2602_s8 + $0x44] ss:$8 sps:$4 sm:$0xff]  }
 0x533   : > { %v1037_v7 = vpop.permute.xlu1 %1036 }
 0x534   : > { %v1042_v10 = vsel %vm813_vm2, %v1037_v7, 0  ;;  %v2096_v7 = vld [vmem:[%s2602_s8 + $0x64] ss:$8 sps:$4 sm:$0xff]  }
 0x537   : > { %v1149_v11 = vpop.permute.xlu1 %1148 }
 0x538   : > { %v1154_v14 = vsel %vm813_vm2, %v1149_v11, 0 }
 0x53a   : > { %v2127_v5 = vpop.eup %2126 }
 0x53b   : > { %v921_v6 = vmul.f32 %v2127_v5, %v2125_v60  ;;  %v2129_v9 = vpop.eup %2128  ;;  %v2093_v5 = vld [vmem:[%s2602_s8 + $0x54] ss:$8 sps:$4 sm:$0xff]  }
 0x53c   : > { %v1034_v50 = vmul.f32 %v2129_v9, %v2121_v52  ;;  %v2131_v13 = vpop.eup %2130  ;;  %v2099_v9 = vld [vmem:[%s2602_s8 + $0x74] ss:$8 sps:$4 sm:$0xff]  }
 0x53d   : > { %v922_v8 = vpack.c.bf16 %v921_v6, %v921_v6  ;;  %v1146_v15 = vmul.f32 %v2131_v13, %v2123_v54  ;;  %v2082_v54 = vld [vmem:[%s2602_s8 + $0x20] ss:$8 sps:$4 sm:$0xff]   ;;  %v2091_v6 = vld [vmem:[%s2602_s8 + $0x50] ss:$8 sps:$4 sm:$0xff]  }
 0x53e   : > { %v1035_v12 = vpack.c.bf16 %v1034_v50, %v1034_v50 }
 0x53f   : > { %1975 = vmatmul.mubr.msk.bf16.vlgmr.msra.gmra.mrb[16].mxu1 %vm796_vm3, %v922_v8  ;;  %v1147_v16 = vpack.c.bf16 %v1146_v15, %v1146_v15  ;;  %v2094_v8 = vld [vmem:[%s2602_s8 + $0x60] ss:$8 sps:$4 sm:$0xff]  }
 0x540   : > { %1985 = vmatpush3.bf16.msra.mxu1 %v1042_v10  ;;  %1986 = vmatprep.mubr.msk.bf16.mxu1 %vm2150_vm0, %v2149_v4  ;;  %v2097_v10 = vld [vmem:[%s2602_s8 + $0x70] ss:$8 sps:$4 sm:$0xff]  }
 0x541   : > { %1996 = vmatprep.subr.bf16.mxu1 %v2149_v4 }
 0x547   : > { %1987 = vmatmul.mubr.msk.bf16.vlgmr.msra.gmra.mrb[20].mxu1 %vm796_vm3, %v1035_v12 }
 0x548   : > { %1997 = vmatpush3.bf16.msra.mxu1 %v1154_v14  ;;  %1998 = vmatprep.mubr.msk.bf16.mxu1 %vm2150_vm0, %v2149_v4  ;;  %v1839_v14 = vld [vmem:[%s2600_s6] ss:$0 sm:$0xff] }
 0x549   : > { %1463 = vmatprep.subr.bf16.mxu1 %v2078_v56 }
 0x54f   : > { %1999 = vmatmul.mubr.msk.bf16.vlgmr.msra.gmra.mrb[24].mxu1 %vm796_vm3, %v1147_v16  ;;  %v1840_v16 = vld [vmem:[%s2601_s7] ss:$0 sm:$0xff] }
 0x550   : > { %1495 = vmatprep.mubr.bf16.mxu1 %v2148_v2  ;;  %v2071_v2 = vld [vmem:[%s2598_s4 + $0x18] sm:$0xff]  }
 0x551   : > { %2009 = vmatpush3.bf16.msra.mxu0 %v2071_v2  ;;  %v2100_v2 = vld [vmem:[%s2604_s10 + $0x40] sm:$0xff]  }
 0x552   : > { %2010 = vmatprep.subr.bf16.mxu0 %v2149_v4 }
 0x555   : > { %2011 = vmatpush3.bf16.msra.mxu0 %v2072_v20  ;;  %v2101_v20 = vld [vmem:[%s2604_s10] sm:$0xff]  }
 0x556   : > { %2012 = vmatprep.subr.bf16.mxu0 %v2149_v4 }
 0x559   : > { %2013 = vmatpush3.bf16.msra.mxu0 %v2073_v22  ;;  %v2102_v22 = vld [vmem:[%s2604_s10 + $0x48] sm:$0xff]  }
 0x55a   : > { %2014 = vmatprep.subr.bf16.mxu0 %v2149_v4 }
 0x55d   : > { %2015 = vmatpush3.bf16.msra.mxu0 %v2074_v24  ;;  %v2103_v24 = vld [vmem:[%s2604_s10 + $0x8] sm:$0xff]  }
 0x55e   : > { %2016 = vmatprep.subr.bf16.mxu0 %v2149_v4 }
 0x561   : > { %2017 = vmatpush3.bf16.msra.mxu0 %v2075_v31  ;;  %v2108_v31 = vld [vmem:[%s2604_s10 + $0x60] sm:$0xff]  }
 0x562   : > { %1912 = vmatprep.subr.bf16.mxu0 %v2100_v2 }
 0x612   : > { %v966_v25 = vpop.f32.mrb[16].mxu1 }
 0x613   : > { %1197 = vrot.lane.b32.xlu0 %v966_v25, %s2153_s17  ;;  %v1976_v26 = vpop.f32.mrb[17].mxu1  ;;  %v2104_v25 = vld [vmem:[%s2604_s10 + $0x50] sm:$0xff]  }
 0x614   : > { %v969_v27 = vpop.f32.mrb[18].mxu1  ;;  %v2105_v26 = vld [vmem:[%s2604_s10 + $0x10] sm:$0xff]  }
 0x615   : > { %v1977_v28 = vpop.f32.mrb[19].mxu1  ;;  %v2106_v27 = vld [vmem:[%s2604_s10 + $0x58] sm:$0xff]  }
 0x616   : > { %v2107_v28 = vld [vmem:[%s2604_s10 + $0x18] sm:$0xff]  }
 0x61a   : > { %v1078_v33 = vpop.f32.mrb[20].mxu1 }
 0x61b   : > { %1201 = vrot.lane.b32.xlu1 %v1078_v33, %s2152_s16  ;;  %v1988_v34 = vpop.f32.mrb[21].mxu1  ;;  %v2109_v33 = vld [vmem:[%s2604_s10 + $0x20] sm:$0xff]  }
 0x61c   : > { %v1081_v35 = vpop.f32.mrb[22].mxu1  ;;  %v2110_v34 = vld [vmem:[%s2604_s10 + $0x68] sm:$0xff]  }
 0x61d   : > { %v1989_v36 = vpop.f32.mrb[23].mxu1  ;;  %v2111_v35 = vld [vmem:[%s2604_s10 + $0x28] sm:$0xff]  }
 0x61e   : > { %v2112_v36 = vld [vmem:[%s2604_s10 + $0x70] sm:$0xff]  }
 0x622   : > { %v1190_v37 = vpop.f32.mrb[24].mxu1 }
 0x623   : > { %1205 = vrot.lane.b32.xlu0 %v1190_v37, %s2151_s15  ;;  %v2000_v38 = vpop.f32.mrb[25].mxu1  ;;  %v2113_v37 = vld [vmem:[%s2604_s10 + $0x30] sm:$0xff]   ;;  %s476_s15 = scalar_lea.vmem %s2608_s14, %s1795_s23 }
 0x624   : > { %v1193_v39 = vpop.f32.mrb[26].mxu1  ;;  %v2114_v38 = vld [vmem:[%s2604_s10 + $0x78] sm:$0xff]  }
 0x625   : > { %v2001_v40 = vpop.f32.mrb[27].mxu1  ;;  %v2115_v39 = vld [vmem:[%s2604_s10 + $0x38] sm:$0xff]  }
 0x626   : > { %v1371_v40 = vld [vmem:[%s2603_s9] sm:$0x3] }
 0x685   : > { %v1198_v41 = vpop.permute.xlu0 %1197 }
 0x686   : > { %v1208_v42 = vsel %vm741_vm1, %v2393_v21, %v1198_v41  ;;  %v2076_v21 = vld [vmem:[%s2602_s8] ss:$8 sps:$4 sm:$0xff]   ;;  %v1376_v41 = vrot.slane %v1371_v40, %v517_v32 }
 0x687   : > { %1464 = vmatpush1.bf16.msra.mxu1 %v2076_v21 }
 0x688   : > { %1465 = vmatprep.subr.bf16.mxu1 %v2081_v57 }
 0x68b   : > { %1466 = vmatpush1.bf16.msra.mxu1 %v2079_v58 }
 0x68d   : > { %v1202_v4 = vpop.permute.xlu1 %1201 }
 0x68e   : > { %v1210_v43 = vsel %vm1209_vm4, %v1208_v42, %v1202_v4  ;;  %v1380_v4 = vrot.slane %v1371_v40, %v521_v30 }
 0x695   : > { %v1206_v44 = vpop.permute.xlu0 %1205 }
 0x696   : > { %v1212_v45 = vsel %vm1211_vm5, %v1210_v43, %v1206_v44 }
 0x697   : > { %v1213_v46 = vpack.c.bf16 %v1212_v45, %v1212_v45 }
 0x699   : > { %2019 = vmatmul.mubr.bf16.vlgmr.msra.gmra.mrb[12].mxu0 %v1213_v46 }
 0x69a   : > { %1913 = vmatpush3.bf16.msra.mxu0 %v2101_v20 }
 0x69b   : > { %1914 = vmatprep.subr.bf16.mxu0 %v2102_v22 }
 0x69e   : > { %1915 = vmatpush3.bf16.msra.mxu0 %v2103_v24 }
 0x69f   : > { %1916 = vmatprep.subr.bf16.mxu0 %v2104_v25 }
 0x6a2   : > { %1917 = vmatpush3.bf16.msra.mxu0 %v2105_v26 }
 0x6a3   : > { %1918 = vmatprep.subr.bf16.mxu0 %v2106_v27 }
 0x6a6   : > { %1919 = vmatpush3.bf16.msra.mxu0 %v2107_v28 }
 0x6a7   : > { %1920 = vmatprep.subr.bf16.mxu0 %v2108_v31 }
 0x6aa   : > { %1921 = vmatpush3.bf16.msra.mxu0 %v2109_v33 }
 0x6ab   : > { %1922 = vmatprep.subr.bf16.mxu0 %v2110_v34 }
 0x6ae   : > { %1923 = vmatpush3.bf16.msra.mxu0 %v2111_v35 }
 0x6af   : > { %1924 = vmatprep.subr.bf16.mxu0 %v2112_v36 }
 0x6b2   : > { %1925 = vmatpush3.bf16.msra.mxu0 %v2113_v37 }
 0x6b3   : > { %1926 = vmatprep.subr.bf16.mxu0 %v2114_v38 }
 0x6b6   : > { %1927 = vmatpush3.bf16.msra.mxu0 %v2115_v39 }
 0x76c   : > { %v1319_v48 = vpop.f32.mrb[12].mxu0 }
 0x76d   : > { %v1320_v49 = vadd.f32 %v1830_v47, %v1319_v48  ;;  %v2020_v51 = vpop.f32.mrb[13].mxu0 }
 0x76e   : > { %v1322_v52 = vpop.f32.mrb[14].mxu0 }
 0x76f   : > { %v2021_v53 = vpop.f32.mrb[15].mxu0  ;;  %v1325_v55 = vadd.f32 %v1320_v49, %v2313_v23  ;;  %v2084_v23 = vld [vmem:[%s2602_s8 + $0x24] ss:$8 sps:$4 sm:$0xff]  }
 0x770   : > { %1467 = vmatprep.subr.bf16.mxu1 %v2084_v23 }
 0x771   : > { %1328 = vadd.xlane.f32.xlu1 %v1325_v55  ;;  %1468 = vmatpush1.bf16.msra.mxu1 %v2082_v54 }
 0x772   : > { %1469 = vmatprep.subr.bf16.mxu1 %v2087_v63 }
 0x775   : > { %1470 = vmatpush1.bf16.msra.mxu1 %v2085_v0 }
 0x776   : > { %1471 = vmatprep.subr.bf16.mxu1 %v2090_v1  ;;  %v1857_v1 = vld [vmem:[%s2605_s11] ss:$0 sm:$0xff] }
 0x779   : > { %1472 = vmatpush1.bf16.msra.mxu1 %v2088_v3 }
 0x77a   : > { %1473 = vmatprep.subr.bf16.mxu1 %v2093_v5 }
 0x77d   : > { %1474 = vmatpush1.bf16.msra.mxu1 %v2091_v6 }
 0x77e   : > { %1475 = vmatprep.subr.bf16.mxu1 %v2096_v7 }
 0x781   : > { %1476 = vmatpush1.bf16.msra.mxu1 %v2094_v8 }
 0x782   : > { %1477 = vmatprep.subr.bf16.mxu1 %v2099_v9 }
 0x785   : > { %1478 = vmatpush1.bf16.msra.mxu1 %v2097_v10 }
 0x7fe   : > { %v1329_v59 = vpop.xlane.xlu1 %1328 }
 0x7ff   : > { %v1331_v60 = vmul.f32 0.0078125, %v1329_v59 }
 0x801   : > { %v1332_v61 = vsub.f32 %v1325_v55, %v1331_v60 }
 0x803   : > { %v1333_v62 = vmul.f32 %v1332_v61, %v1332_v61 }
 0x805   : > { %1334 = vadd.xlane.f32.xlu0 %v1333_v62 }
 0x892   : > { %v1335_v50 = vpop.xlane.xlu0 %1334 }
 0x893   : > { %v1336_v11 = vmul.f32 0.0078125, %v1335_v50 }
 0x895   : > { %v1337_v12 = vadd.f32 1e-05, %v1336_v11 }
 0x897   : > { %2132 = vrsqrt.f32 %v1337_v12 }
 0x8a1   : > { %v2133_v13 = vpop.eup %2132 }
 0x8a2   : > { %v1339_v15 = vmul.f32 %v2133_v13, %v1332_v61 }
 0x8a4   : > { %v1346_v17 = vmul.f32 %v1839_v14, %v1339_v15 }
 0x8a6   : > { %v2517_v18 = vadd.f32 %v1840_v16, %v1346_v17  ;;  %v1874_v17 = vld [vmem:[%s2606_s12] ss:$0 sm:$0xff] }
 0x8a8   : > { %v1354_v19 = vpack.c.bf16 %v2517_v18, %v2517_v18 }
 0x8aa   : > { %1496 = vmatmul.mubr.bf16.vlgmr.msra.gmra.mrb[28].mxu1 %v1354_v19 }
 0x97d   : > { %v1497_v42 = vpop.f32.mrb[28].mxu1 }
 0x97e   : > { %v1498_v43 = vadd.f32 %v1497_v42, %v1376_v41  ;;  %v1499_v44 = vpop.f32.mrb[29].mxu1 }
 0x97f   : > { %v1500_v45 = vadd.f32 %v1499_v44, %v1380_v4  ;;  %v1501_v46 = vpop.f32.mrb[30].mxu1 }
 0x980   : > { %v1504_v47 = vmul.f32 %v1498_v43, %v1498_v43  ;;  %v1502_v48 = vpop.f32.mrb[31].mxu1 }
 0x981   : > { %v1505_v49 = vmul.f32 %v1500_v45, %v1500_v45 }
 0x982   : > { %v1506_v51 = vmul.f32 %v1504_v47, %v1498_v43 }
 0x983   : > { %v1507_v52 = vmul.f32 %v1505_v49, %v1500_v45 }
 0x984   : > { %v1508_v53 = vmul.f32 0.044715, %v1506_v51 }
 0x985   : > { %v1509_v55 = vmul.f32 0.044715, %v1507_v52 }
 0x986   : > { %v1510_v21 = vadd.f32 %v1508_v53, %v1498_v43 }
 0x987   : > { %v1511_v56 = vadd.f32 %v1509_v55, %v1500_v45 }
 0x988   : > { %v1512_v57 = vmul.f32 0.7978846, %v1510_v21 }
 0x989   : > { %v1513_v58 = vmul.f32 0.7978846, %v1511_v56 }
 0x98a   : > { %2134 = vtanh.f32 %v1512_v57 }
 0x98b   : > { %2136 = vtanh.f32 %v1513_v58 }
 0x994   : > { %v2135_v29 = vpop.eup %2134 }
 0x995   : > { %v2137_v30 = vpop.eup %2136  ;;  %v1516_v32 = vadd.f32 1.0, %v2135_v29 }
 0x996   : > { %v1517_v23 = vadd.f32 1.0, %v2137_v30 }
 0x997   : > { %v1518_v54 = vmul.f32 0.5, %v1516_v32 }
 0x998   : > { %v1519_v59 = vmul.f32 0.5, %v1517_v23 }
 0x999   : > { %v1520_v60 = vmul.f32 %v1518_v54, %v1498_v43 }
 0x99a   : > { %v1521_v61 = vmul.f32 %v1519_v59, %v1500_v45 }
 0x99b   : > { %v1522_v63 = vpack.c.bf16 %v1520_v60, %v1520_v60 }
 0x99c   : > { %v1523_v62 = vpack.c.bf16 %v1521_v61, %v1521_v61 }
 0x99e   : > { %1691 = vmatprep.mubr.bf16.mxu0 %v1523_v62 }
 0x99f   : > { %1692 = vmatmul.mubr.bf16.vlgmr.msra.gmra.mrb[16].mxu0 %v1522_v63 }
 0xa72   : > { %v1928_v0 = vpop.f32.mrb[16].mxu0 }
 0xa73   : > { %v1929_v3 = vpop.f32.mrb[17].mxu0 }
 0xa74   : > { %v1930_v5 = vadd.f32 %v1929_v3, %v1928_v0  ;;  %v1931_v6 = vpop.f32.mrb[18].mxu0 }
 0xa75   : > { %v1932_v7 = vpop.f32.mrb[19].mxu0 }
 0xa76   : > { %v1694_v8 = vadd.f32 %v1930_v5, %v1857_v1 }
 0xa78   : > { %v1699_v9 = vadd.f32 %v1694_v8, %v2517_v18  ;;  %v1875_v18 = vld [vmem:[%s2607_s13] ss:$0 sm:$0xff] }
 0xa7a   : > { %1702 = vadd.xlane.f32.xlu0 %v1699_v9 }
 0xb07   : > { %v1703_v10 = vpop.xlane.xlu0 %1702 }
 0xb08   : > { %v1704_v50 = vmul.f32 0.0078125, %v1703_v10 }
 0xb0a   : > { %v1705_v11 = vsub.f32 %v1699_v9, %v1704_v50 }
 0xb0c   : > { %v1706_v12 = vmul.f32 %v1705_v11, %v1705_v11 }
 0xb0e   : > { %1707 = vadd.xlane.f32.xlu1 %v1706_v12 }
 0xb9b   : > { %v1708_v13 = vpop.xlane.xlu1 %1707 }
 0xb9c   : > { %v1709_v14 = vmul.f32 0.0078125, %v1708_v13 }
 0xb9e   : > { %v1710_v15 = vadd.f32 1e-05, %v1709_v14 }
 0xba0   : > { %2138 = vrsqrt.f32 %v1710_v15 }
 0xbaa   : > { %v2139_v16 = vpop.eup %2138 }
 0xbab   : > { %v1712_v19 = vmul.f32 %v2139_v16, %v1705_v11 }
 0xbad   : > { %v1719_v2 = vmul.f32 %v1874_v17, %v1712_v19 }
 0xbaf   : > { %v1726_v20 = vadd.f32 %v1875_v18, %v1719_v2 }
 0xbb1   : > { %1727 = vst [vmem:[%s476_s15] sm:$0xff] %v1726_v20 }
 0xbb2 PF: > { %s24_s29 = sadd.s32 1, %s2146_s29  }
 0xbb3   : > { %p21_p4 = scmp.ge.s32.totalorder %s24_s29, 4  }
 0xbb5   :  { %23 = sbr.rel (!%p21_p4) target bundleno = 1 (0x1), region = 109 }

</bundles_post_ra>
